<compile_context>
chip_gen: v6e
topology: v6e:2x2x1
jax: 0.10.0
libtpu: 0.0.40
codegen_flags: <defaults>
</compile_context>

<pallas_src>
import functools

import jax
import jax.numpy as jnp
from jax.experimental import pallas as pl
from jax.experimental.pallas import tpu as pltpu

BN_EPS = 1e-5                      # PyTorch BatchNorm2d default eps
LANES = 128
MM_MAX_TILE = 512                  # matmul M-tile (two-pass path)
BN_MAX_TILE = 2048                 # elementwise BN/ReLU M-tile (two-pass path)
VMEM_LIMIT = 40 * 1024 * 1024      # safe on v7x (64 MiB phys) and v5e/v6e
FUSED_VMEM_BUDGET = 20 * 1024 * 1024


# ---------------------------------------------------------------------------
# helpers
# ---------------------------------------------------------------------------
def _ru(x, m):
    return ((x + m - 1) // m) * m


def _pick_tile(m, max_tile):
    """Pick an M tile (multiple of 16 = native bf16 sublane tile) that divides
    the padded M whenever possible, so no jnp.pad copy is needed."""
    m16 = _ru(m, 16)
    if m16 <= max_tile:
        return m16, m16
    t = (max_tile // 16) * 16
    while t >= 128 and m16 % t:
        t -= 16
    if t >= 128 and m16 % t == 0:
        return t, m16
    return max_tile, _ru(m16, max_tile)


def _fits_fused(p, m, k, c_pad):
    """Conservative VMEM estimate for the fully fused (single grid step) path."""
    bytes_in = p * m * k * 2 + p * k * c_pad * 2
    bytes_tmp = p * m * c_pad * 4 * 2        # f32 y + elementwise temps
    bytes_out = p * m * c_pad * 2
    return bytes_in + bytes_tmp + bytes_out <= FUSED_VMEM_BUDGET


# ---------------------------------------------------------------------------
# Pallas kernels
# ---------------------------------------------------------------------------
def _fused_matmul_bn_relu_kernel(p_ref, w_ref, g_ref, b_ref, o_ref, *, inv_count):
    """Whole layer in VMEM: batched matmul over phases (MXU, f32 accumulation),
    single-pass BN stats, affine + ReLU, bf16 store.  No HBM round trip of y."""
    y = jnp.einsum("pmk,pkc->pmc", p_ref[...], w_ref[...],
                   preferred_element_type=jnp.float32)
    ssum = jnp.sum(jnp.sum(y, axis=1, keepdims=True), axis=0, keepdims=True)
    ssq = jnp.sum(jnp.sum(y * y, axis=1, keepdims=True), axis=0, keepdims=True)
    mean = ssum * inv_count
    # TODO(synk): E[x^2]-E[x]^2 in f32 can cancel if |mean| >> std; fine at
    # DCGAN activation scales (see review's correctness note).
    var = jnp.maximum(ssq * inv_count - mean * mean, 0.0)
    scale = g_ref[...] * jax.lax.rsqrt(var + BN_EPS)
    shift = b_ref[...] - mean * scale
    o_ref[...] = jnp.maximum(y * scale + shift, 0.0).astype(o_ref.dtype)


def _fused_matmul_kernel(p_ref, w_ref, o_ref):
    o_ref[...] = jnp.einsum("pmk,pkc->pmc", p_ref[...], w_ref[...],
                            preferred_element_type=jnp.float32).astype(o_ref.dtype)


def _matmul_stats_kernel(p_ref, w_ref, y_ref, s_ref):
    """(1, TILE_M, K)bf16 @ (1, K, Cpad)bf16 -> bf16 y + f32 partial BN stats."""
    y = jnp.dot(p_ref[0], w_ref[0], preferred_element_type=jnp.float32)
    y_ref[0] = y.astype(y_ref.dtype)                          # bf16 writeback
    # separate row stores (no in-kernel concatenate / relayout)
    s_ref[0, 0, 0:1, :] = jnp.sum(y, axis=0, keepdims=True)
    s_ref[0, 0, 1:2, :] = jnp.sum(y * y, axis=0, keepdims=True)


def _matmul_tiled_kernel(p_ref, w_ref, y_ref):
    y_ref[0] = jnp.dot(p_ref[0], w_ref[0],
                       preferred_element_type=jnp.float32).astype(y_ref.dtype)


def _bn_relu_kernel(y_ref, sc_ref, sh_ref, o_ref):
    y = y_ref[...].astype(jnp.float32)
    o_ref[...] = jnp.maximum(y * sc_ref[...] + sh_ref[...], 0.0).astype(o_ref.dtype)


# ---------------------------------------------------------------------------
# pallas_call wrappers
# ---------------------------------------------------------------------------
def _matmul_stats_tiled(patches, w_mats, with_stats=True):
    """patches (P, M, K) bf16, w_mats (P, K, Cpad) bf16 ->
       y (P, M_pad, Cpad) bf16 [, stats (2, Cpad) f32]."""
    p, m, k = patches.shape
    c_pad = w_mats.shape[2]
    tile, m_pad = _pick_tile(m, MM_MAX_TILE)
    if m_pad != m:
        patches = jnp.pad(patches, ((0, 0), (0, m_pad - m), (0, 0)))
    grid = (p, m_pad // tile)
    in_specs = [pl.BlockSpec((1, tile, k), lambda pi, i: (pi, i, 0)),
                pl.BlockSpec((1, k, c_pad), lambda pi, i: (pi, 0, 0))]
    cp = pltpu.CompilerParams(dimension_semantics=("parallel", "parallel"),
                              vmem_limit_bytes=VMEM_LIMIT)
    if with_stats:
        y, stats = pl.pallas_call(
            _matmul_stats_kernel,
            out_shape=(jax.ShapeDtypeStruct((p, m_pad, c_pad), jnp.bfloat16),
                       jax.ShapeDtypeStruct((p, grid[1], 2, c_pad), jnp.float32)),
            grid=grid,
            in_specs=in_specs,
            out_specs=(pl.BlockSpec((1, tile, c_pad), lambda pi, i: (pi, i, 0)),
                       pl.BlockSpec((1, 1, 2, c_pad), lambda pi, i: (pi, i, 0, 0))),
            compiler_params=cp,
            cost_estimate=pl.CostEstimate(
                flops=2 * p * m_pad * k * c_pad + 4 * p * m_pad * c_pad,
                transcendentals=0,
                bytes_accessed=(p * m_pad * k * 2 + p * k * c_pad * 2
                                + p * m_pad * c_pad * 2
                                + p * grid[1] * 2 * c_pad * 4)),
        )(patches, w_mats)
        # zero-padded rows contribute nothing to the partial sums
        return y, jnp.sum(stats, axis=(0, 1))
    y = pl.pallas_call(
        _matmul_tiled_kernel,
        out_shape=jax.ShapeDtypeStruct((p, m_pad, c_pad), jnp.bfloat16),
        grid=grid,
        in_specs=in_specs,
        out_specs=pl.BlockSpec((1, tile, c_pad), lambda pi, i: (pi, i, 0)),
        compiler_params=cp,
        cost_estimate=pl.CostEstimate(
            flops=2 * p * m_pad * k * c_pad,
            transcendentals=0,
            bytes_accessed=(p * m_pad * k * 2 + p * k * c_pad * 2
                            + p * m_pad * c_pad * 2)),
    )(patches, w_mats)
    return y, None


def _bn_relu_tiled(y2, scale, shift):
    """y2 (M, Cpad) bf16; scale/shift (1, Cpad) f32 -> (M, Cpad) bf16."""
    m, c_pad = y2.shape
    tile, m_pad = _pick_tile(m, BN_MAX_TILE)
    if m_pad != m:
        y2 = jnp.pad(y2, ((0, m_pad - m), (0, 0)))
    out = pl.pallas_call(
        _bn_relu_kernel,
        out_shape=jax.ShapeDtypeStruct((m_pad, c_pad), jnp.bfloat16),
        grid=(m_pad // tile,),
        in_specs=[pl.BlockSpec((tile, c_pad), lambda i: (i, 0)),
                  pl.BlockSpec((1, c_pad), lambda i: (0, 0)),
                  pl.BlockSpec((1, c_pad), lambda i: (0, 0))],
        out_specs=pl.BlockSpec((tile, c_pad), lambda i: (i, 0)),
        compiler_params=pltpu.CompilerParams(
            dimension_semantics=("parallel",), vmem_limit_bytes=VMEM_LIMIT),
        cost_estimate=pl.CostEstimate(
            flops=3 * m_pad * c_pad, transcendentals=0,
            bytes_accessed=4 * m_pad * c_pad),
    )(y2, scale, shift)
    return out[:m] if m_pad != m else out


def _bn_scale_shift(stats, count, gamma_pad, beta_pad):
    """Fold training-mode BN (batch stats) into a per-channel affine (f32)."""
    mean = stats[0] / count
    var = jnp.maximum(stats[1] / count - mean * mean, 0.0)
    inv = jax.lax.rsqrt(var + BN_EPS)
    scale = (gamma_pad * inv).reshape(1, -1).astype(jnp.float32)
    shift = (beta_pad - mean * gamma_pad * inv).reshape(1, -1).astype(jnp.float32)
    return scale, shift


def _deconv_core_bn_relu(patches, w_mats, gamma_pad, beta_pad, count,
                         force_two_pass):
    """patches (P, M, K) bf16 @ w_mats (P, K, Cpad) bf16, training-mode BN,
    ReLU -> (P, M, Cpad) bf16."""
    p, m, k = patches.shape
    c_pad = w_mats.shape[2]
    if (not force_two_pass) and _fits_fused(p, m, k, c_pad):
        g3 = gamma_pad.reshape(1, 1, c_pad).astype(jnp.float32)
        b3 = beta_pad.reshape(1, 1, c_pad).astype(jnp.float32)
        kern = functools.partial(_fused_matmul_bn_relu_kernel,
                                 inv_count=1.0 / count)
        return pl.pallas_call(
            kern,
            out_shape=jax.ShapeDtypeStruct((p, m, c_pad), jnp.bfloat16),
            grid=(1,),
            in_specs=[pl.BlockSpec((p, m, k), lambda i: (0, 0, 0)),
                      pl.BlockSpec((p, k, c_pad), lambda i: (0, 0, 0)),
                      pl.BlockSpec((1, 1, c_pad), lambda i: (0, 0, 0)),
                      pl.BlockSpec((1, 1, c_pad), lambda i: (0, 0, 0))],
            out_specs=pl.BlockSpec((p, m, c_pad), lambda i: (0, 0, 0)),
            compiler_params=pltpu.CompilerParams(
                dimension_semantics=("arbitrary",),
                vmem_limit_bytes=VMEM_LIMIT),
            cost_estimate=pl.CostEstimate(
                flops=2 * p * m * k * c_pad + 8 * p * m * c_pad,
                transcendentals=c_pad,
                bytes_accessed=(p * m * k + p * k * c_pad + p * m * c_pad) * 2),
        )(patches, w_mats, g3, b3)
    # ---- two-pass tiled path (large shapes) ----
    y, stats = _matmul_stats_tiled(patches, w_mats, with_stats=True)
    scale, shift = _bn_scale_shift(stats, count, gamma_pad, beta_pad)
    m_pad = y.shape[1]
    out2 = _bn_relu_tiled(y.reshape(p * m_pad, c_pad), scale, shift)
    return out2.reshape(p, m_pad, c_pad)[:, :m]


def _matmul_core(patches, w_mats, force_two_pass):
    """Final layer (no BN): (P, M, K) @ (P, K, Cpad) -> (P, M, Cpad) bf16."""
    p, m, k = patches.shape
    c_pad = w_mats.shape[2]
    if (not force_two_pass) and _fits_fused(p, m, k, c_pad):
        return pl.pallas_call(
            _fused_matmul_kernel,
            out_shape=jax.ShapeDtypeStruct((p, m, c_pad), jnp.bfloat16),
            grid=(1,),
            in_specs=[pl.BlockSpec((p, m, k), lambda i: (0, 0, 0)),
                      pl.BlockSpec((p, k, c_pad), lambda i: (0, 0, 0))],
            out_specs=pl.BlockSpec((p, m, c_pad), lambda i: (0, 0, 0)),
            compiler_params=pltpu.CompilerParams(
                dimension_semantics=("arbitrary",),
                vmem_limit_bytes=VMEM_LIMIT),
            cost_estimate=pl.CostEstimate(
                flops=2 * p * m * k * c_pad,
                transcendentals=0,
                bytes_accessed=(p * m * k + p * k * c_pad + p * m * c_pad) * 2),
        )(patches, w_mats)
    y, _ = _matmul_stats_tiled(patches, w_mats, with_stats=False)
    return y[:, :m]


# ---------------------------------------------------------------------------
# ConvTranspose2d (stride 2, k=4, pad=1) -> 4 sub-pixel phases, each a dense
# 2x2 conv over the (undilated) NHWC input.  No zero-dilation buffer.
#
# out[n, 2m+ph, 2q+pw, co] = sum_{dh,dw,ci} xp[n, m+ph+dh, q+pw+dw, ci]
#                                           * W[ci, co, 3-ph-2*dh, 3-pw-2*dw]
# where xp is the input zero-padded by 1 on each spatial side.
# ---------------------------------------------------------------------------
def _phase_patches(x):
    """x (N, H, W, C) bf16 -> patches (4, N*H*W, 4*C) bf16; phase p = ph*2+pw,
    columns ordered (dh, dw, c)."""
    n, h, w, c = x.shape
    xp = jnp.pad(x, ((0, 0), (1, 1), (1, 1), (0, 0)))
    phases = []
    for ph in range(2):
        for pw in range(2):
            views = [xp[:, ph + dh:ph + dh + h, pw + dw:pw + dw + w, :]
                     for dh in range(2) for dw in range(2)]
            phases.append(jnp.concatenate(views, axis=-1).reshape(n * h * w, 4 * c))
    return jnp.stack(phases, axis=0)


def _phase_weights(wt, c_pad):
    """wt (Cin, Cout, 4, 4) -> (4, 4*Cin, Cpad) bf16; rows ordered (dh, dw, ci)
    to match _phase_patches column order."""
    cin, cout, k, _ = wt.shape
    assert k == 4
    wp = jnp.pad(wt, ((0, 0), (0, c_pad - cout), (0, 0), (0, 0)))
    mats = []
    for ph in range(2):
        for pw in range(2):
            rows = [wp[:, :, 3 - ph - 2 * dh, 3 - pw - 2 * dw]     # (Cin, Cpad)
                    for dh in range(2) for dw in range(2)]
            mats.append(jnp.stack(rows, axis=0).reshape(4 * cin, c_pad))
    return jnp.stack(mats, axis=0).astype(jnp.bfloat16)


# ---------------------------------------------------------------------------
# layers
# ---------------------------------------------------------------------------
def _first_deconv_bn_relu(z, wt, gamma, beta, force_two_pass=False):
    """Layer 1: 1x1 spatial input, kernel k1, stride 1, padding 0.
       Output pixel (oh, ow) = z @ W[:, :, oh, ow]  ->  P = k1*k1 phases."""
    n, zdim = z.shape
    _, cout, k1, _ = wt.shape
    c_pad = _ru(cout, LANES)
    num_p = k1 * k1
    wp = jnp.pad(wt, ((0, 0), (0, c_pad - cout), (0, 0), (0, 0)))
    w_mats = (wp.transpose(2, 3, 0, 1)
                .reshape(num_p, zdim, c_pad).astype(jnp.bfloat16))
    patches = jnp.broadcast_to(z[None], (num_p, n, zdim))
    gp = jnp.pad(gamma, (0, c_pad - cout)).astype(jnp.float32)
    bp = jnp.pad(beta, (0, c_pad - cout)).astype(jnp.float32)
    # NOTE: conv-transpose bias dropped (cancels against training-BN mean).
    out = _deconv_core_bn_relu(patches, w_mats, gp, bp, num_p * n, force_two_pass)
    out = out[..., :cout]                                       # (P, N, cout)
    return out.reshape(k1, k1, n, cout).transpose(2, 0, 1, 3)   # (N, k1, k1, C)


def _deconv_bn_relu(x, wt, gamma, beta, force_two_pass=False):
    """stride-2, k=4, pad=1 ConvTranspose2d + training-mode BN + ReLU (NHWC bf16)."""
    n, h, w_sp, _ = x.shape
    _, cout, _, _ = wt.shape
    c_pad = _ru(cout, LANES)
    patches = _phase_patches(x)                    # (4, N*H*W, 4*Cin) bf16
    w_mats = _phase_weights(wt, c_pad)             # (4, 4*Cin, Cpad) bf16
    gp = jnp.pad(gamma, (0, c_pad - cout)).astype(jnp.float32)
    bp = jnp.pad(beta, (0, c_pad - cout)).astype(jnp.float32)
    count = 4 * n * h * w_sp                       # == N * Ho * Wo
    out = _deconv_core_bn_relu(patches, w_mats, gp, bp, count, force_two_pass)
    out = out[..., :cout]                          # (4, N*H*W, cout)
    out = out.reshape(2, 2, n, h, w_sp, cout).transpose(2, 3, 0, 4, 1, 5)
    return out.reshape(n, 2 * h, 2 * w_sp, cout)


def _deconv_tanh(x, wt, b, force_two_pass=False):
    n, h, w_sp, _ = x.shape
    _, cout, _, _ = wt.shape
    c_pad = _ru(cout, LANES)
    patches = _phase_patches(x)
    w_mats = _phase_weights(wt, c_pad)
    y = _matmul_core(patches, w_mats, force_two_pass)     # (4, N*H*W, Cpad) bf16
    y = y[..., :cout]
    y = y.reshape(2, 2, n, h, w_sp, cout).transpose(2, 3, 0, 4, 1, 5)
    y = y.reshape(n, 2 * h, 2 * w_sp, cout)
    # bias + tanh on the 3 real channels only, in f32 (fuses with NCHW transpose)
    return jnp.tanh(y.astype(jnp.float32) + b.reshape(1, 1, 1, cout))


# ---------------------------------------------------------------------------
# Generator: parameter init + forward
# ---------------------------------------------------------------------------
def init_generator_params(key, z_dim, image_size, conv_dim, mean=0.0, std=0.02):
    k1 = image_size // 16
    shapes = [
        (z_dim,        conv_dim * 8, k1, k1),
        (conv_dim * 8, conv_dim * 4, 4, 4),
        (conv_dim * 4, conv_dim * 2, 4, 4),
        (conv_dim * 2, conv_dim,     4, 4),
        (conv_dim,     3,            4, 4),
    ]
    # Weights ~ N(mean, std) as in normal_init.  Bias / BN gamma / BN beta are
    # given small random values (instead of the zero / default init) purely to
    # exercise the BN-affine and bias-cancellation paths - the forward-pass
    # semantics are parameter-agnostic.
    keys = jax.random.split(key, 4 * len(shapes))
    params = []
    for idx, s in enumerate(shapes):
        kw, kb, kg, kbe = keys[4 * idx:4 * idx + 4]
        w = mean + std * jax.random.normal(kw, s, jnp.float32)
        b = 0.1 * jax.random.normal(kb, (s[1],), jnp.float32)
        gamma = 1.0 + 0.1 * jax.random.normal(kg, (s[1],), jnp.float32)
        beta = 0.1 * jax.random.normal(kbe, (s[1],), jnp.float32)
        params.append((w, b, gamma, beta))
    return params


def generator_forward(x, params, force_two_pass=False):
    """x: (N, z_dim, 1, 1) NCHW f32  ->  (N, 3, image_size, image_size) NCHW f32."""
    (w1, _b1, g1, be1), (w2, _b2, g2, be2), (w3, _b3, g3, be3), \
        (w4, _b4, g4, be4), (w5, b5, _g5, _be5) = params
    n = x.shape[0]
    z = x.reshape(n, -1).astype(jnp.bfloat16)                  # (N, z_dim)
    h = _first_deconv_bn_relu(z, w1, g1, be1, force_two_pass)  # NHWC bf16
    h = _deconv_bn_relu(h, w2, g2, be2, force_two_pass)
    h = _deconv_bn_relu(h, w3, g3, be3, force_two_pass)
    h = _deconv_bn_relu(h, w4, g4, be4, force_two_pass)
    out = _deconv_tanh(h, w5, b5, force_two_pass)              # NHWC f32
    return out.transpose(0, 3, 1, 2).astype(jnp.float32)       # back to NCHW


# ---------------------------------------------------------------------------
# pure-JAX f32 reference (exact PyTorch semantics) for the self-check
# ---------------------------------------------------------------------------
def _ref_conv_transpose(x, wt, b, stride, padding):
    k = wt.shape[2]
    w_conv = jnp.flip(wt, axis=(2, 3)).transpose(1, 0, 2, 3)   # (Cout, Cin, k, k)
    pad = k - 1 - padding
    out = jax.lax.conv_general_dilated(
        x.astype(jnp.float32), w_conv.astype(jnp.float32),
        window_strides=(1, 1), padding=((pad, pad), (pad, pad)),
        lhs_dilation=(stride, stride), rhs_dilation=(1, 1),
        dimension_numbers=("NCHW", "OIHW", "NCHW"))
    return out + b.reshape(1, -1, 1, 1)


def _ref_bn_relu(x, gamma, beta):
    mean = jnp.mean(x, axis=(0, 2, 3), keepdims=True)
    var = jnp.mean((x - mean) ** 2, axis=(0, 2, 3), keepdims=True)  # biased
    xn = (x - mean) * jax.lax.rsqrt(var + BN_EPS)
    return jnp.maximum(xn * gamma.reshape(1, -1, 1, 1)
                       + beta.reshape(1, -1, 1, 1), 0.0)


def reference_forward(x, params):
    (w1, b1, g1, be1), (w2, b2, g2, be2), (w3, b3, g3, be3), \
        (w4, b4, g4, be4), (w5, b5, _g5, _be5) = params
    h = _ref_bn_relu(_ref_conv_transpose(x, w1, b1, 1, 0), g1, be1)
    h = _ref_bn_relu(_ref_conv_transpose(h, w2, b2, 2, 1), g2, be2)
    h = _ref_bn_relu(_ref_conv_transpose(h, w3, b3, 2, 1), g3, be3)
    h = _ref_bn_relu(_ref_conv_transpose(h, w4, b4, 2, 1), g4, be4)
    return jnp.tanh(_ref_conv_transpose(h, w5, b5, 2, 1))


if __name__ == "__main__":
    # Small shapes consistent with the module: DCGAN generator input is
    # (N, z_dim, 1, 1); layer-1 kernel = image_size // 16 = 2.
    BATCH, Z_DIM, IMAGE_SIZE, CONV_DIM = 2, 32, 32, 16

    key = jax.random.PRNGKey(0)
    k_params, k_x = jax.random.split(key)
    params = init_generator_params(k_params, Z_DIM, IMAGE_SIZE, CONV_DIM)
    x = jax.random.normal(k_x, (BATCH, Z_DIM, 1, 1), jnp.float32)

    fwd = jax.jit(generator_forward, static_argnames=("force_two_pass",))
    out = jax.block_until_ready(fwd(x, params))

    assert out.shape == (BATCH, 3, IMAGE_SIZE, IMAGE_SIZE), out.shape
    assert out.dtype == jnp.float32
    assert bool(jnp.all(jnp.isfinite(out)))
    assert bool(jnp.all(jnp.abs(out) <= 1.0 + 1e-6))   # tanh range

    # numerical check against an exact f32 reference (training-mode BN)
    ref = jax.block_until_ready(jax.jit(reference_forward)(x, params))
    max_ref = float(jnp.max(jnp.abs(ref)))
    err = float(jnp.max(jnp.abs(out - ref)))
    assert err <= 0.2 * max_ref + 5e-3, (err, max_ref)

    # exercise the tiled two-pass path (auto-selected at larger shapes) too
    out2 = jax.block_until_ready(fwd(x, params, force_two_pass=True))
    err2 = float(jnp.max(jnp.abs(out2 - out)))
    assert err2 <= 0.1 * max_ref + 5e-3, (err2, max_ref)

    print("KERNEL_OK")
</pallas_src>

<mosaic_0001>
module attributes {stable_mosaic.version = 11 : i64} {
  func.func @_fused_matmul_bn_relu_kernel(%arg0: i32, %arg1: memref<4x2x32xbf16, #tpu.memory_space<vmem>>, %arg2: memref<4x32x128xbf16, #tpu.memory_space<vmem>>, %arg3: memref<1x1x128xf32, #tpu.memory_space<vmem>>, %arg4: memref<1x1x128xf32, #tpu.memory_space<vmem>>, %arg5: memref<4x2x128xbf16, #tpu.memory_space<vmem>>) attributes {dimension_semantics = [#tpu.dimension_semantics<arbitrary>], iteration_bounds = array<i64: 1>, scalar_prefetch = 0 : i64, scratch_operands = 0 : i64, tpu.core_type = #tpu.core_type<tc>, window_params = [{pipeline_mode = #tpu.pipeline_mode<synchronous>, transform_indices = @transform_0, window_bounds = array<i64: 4, 2, 32>}, {pipeline_mode = #tpu.pipeline_mode<synchronous>, transform_indices = @transform_1, window_bounds = array<i64: 4, 32, 128>}, {pipeline_mode = #tpu.pipeline_mode<synchronous>, transform_indices = @transform_2, window_bounds = array<i64: 1, 1, 128>}, {pipeline_mode = #tpu.pipeline_mode<synchronous>, transform_indices = @transform_3, window_bounds = array<i64: 1, 1, 128>}, {pipeline_mode = #tpu.pipeline_mode<synchronous>, transform_indices = @transform_4, window_bounds = array<i64: 4, 2, 128>}]} {
    %c0 = arith.constant 0 : index
    %c0_0 = arith.constant 0 : index
    %c0_1 = arith.constant 0 : index
    %0 = vector.load %arg1[%c0, %c0_0, %c0_1] : memref<4x2x32xbf16, #tpu.memory_space<vmem>>, vector<4x2x32xbf16>
    %c0_2 = arith.constant 0 : index
    %c0_3 = arith.constant 0 : index
    %c0_4 = arith.constant 0 : index
    %1 = vector.load %arg2[%c0_2, %c0_3, %c0_4] : memref<4x32x128xbf16, #tpu.memory_space<vmem>>, vector<4x32x128xbf16>
    "tpu.trace_start"() <{level = 10 : i32, message = "pmk,pkc->pmc"}> : () -> ()
    %cst = arith.constant dense<0.000000e+00> : vector<4x2x128xf32>
    %2 = tpu.matmul %0, %1, %cst {dimension_numbers = #tpu.dot_dimension_numbers<[2], [1], [1], [2], [0, 0, 0, 1, 1, 2], [0], [0]>} : vector<4x2x32xbf16>, vector<4x32x128xbf16>, vector<4x2x128xf32> -> vector<4x2x128xf32>
    "tpu.trace_stop"() : () -> ()
    %cst_5 = arith.constant dense<0.000000e+00> : vector<4x128xf32>
    %3 = vector.multi_reduction <add>, %2, %cst_5 [1] : vector<4x2x128xf32> to vector<4x128xf32>
    %4 = vector.shape_cast %3 : vector<4x128xf32> to vector<4x1x128xf32>
    %cst_6 = arith.constant dense<0.000000e+00> : vector<1x128xf32>
    %5 = vector.multi_reduction <add>, %4, %cst_6 [0] : vector<4x1x128xf32> to vector<1x128xf32>
    %6 = vector.shape_cast %5 : vector<1x128xf32> to vector<1x1x128xf32>
    %7 = arith.mulf %2, %2 : vector<4x2x128xf32>
    %cst_7 = arith.constant dense<0.000000e+00> : vector<4x128xf32>
    %8 = vector.multi_reduction <add>, %7, %cst_7 [1] : vector<4x2x128xf32> to vector<4x128xf32>
    %9 = vector.shape_cast %8 : vector<4x128xf32> to vector<4x1x128xf32>
    %cst_8 = arith.constant dense<0.000000e+00> : vector<1x128xf32>
    %10 = vector.multi_reduction <add>, %9, %cst_8 [0] : vector<4x1x128xf32> to vector<1x128xf32>
    %11 = vector.shape_cast %10 : vector<1x128xf32> to vector<1x1x128xf32>
    %cst_9 = arith.constant 1.250000e-01 : f32
    %12 = vector.broadcast %cst_9 : f32 to vector<1x1x128xf32>
    %13 = arith.mulf %6, %12 : vector<1x1x128xf32>
    %cst_10 = arith.constant 1.250000e-01 : f32
    %14 = vector.broadcast %cst_10 : f32 to vector<1x1x128xf32>
    %15 = arith.mulf %11, %14 : vector<1x1x128xf32>
    %16 = arith.mulf %13, %13 : vector<1x1x128xf32>
    %17 = arith.subf %15, %16 : vector<1x1x128xf32>
    %cst_11 = arith.constant 0.000000e+00 : f32
    %18 = vector.broadcast %cst_11 : f32 to vector<1x1x128xf32>
    %19 = arith.maximumf %17, %18 : vector<1x1x128xf32>
    %c0_12 = arith.constant 0 : index
    %c0_13 = arith.constant 0 : index
    %c0_14 = arith.constant 0 : index
    %20 = vector.load %arg3[%c0_12, %c0_13, %c0_14] : memref<1x1x128xf32, #tpu.memory_space<vmem>>, vector<1x1x128xf32>
    %cst_15 = arith.constant 9.99999974E-6 : f32
    %21 = vector.broadcast %cst_15 : f32 to vector<1x1x128xf32>
    %22 = arith.addf %19, %21 : vector<1x1x128xf32>
    %23 = math.rsqrt %22 : vector<1x1x128xf32>
    %24 = arith.mulf %20, %23 : vector<1x1x128xf32>
    %c0_16 = arith.constant 0 : index
    %c0_17 = arith.constant 0 : index
    %c0_18 = arith.constant 0 : index
    %25 = vector.load %arg4[%c0_16, %c0_17, %c0_18] : memref<1x1x128xf32, #tpu.memory_space<vmem>>, vector<1x1x128xf32>
    %26 = arith.mulf %13, %24 : vector<1x1x128xf32>
    %27 = arith.subf %25, %26 : vector<1x1x128xf32>
    %28 = vector.broadcast %24 : vector<1x1x128xf32> to vector<4x2x128xf32>
    %29 = arith.mulf %2, %28 : vector<4x2x128xf32>
    %30 = vector.broadcast %27 : vector<1x1x128xf32> to vector<4x2x128xf32>
    %31 = arith.addf %29, %30 : vector<4x2x128xf32>
    %cst_19 = arith.constant 0.000000e+00 : f32
    %32 = vector.broadcast %cst_19 : f32 to vector<4x2x128xf32>
    %33 = arith.maximumf %31, %32 : vector<4x2x128xf32>
    %34 = arith.truncf %33 : vector<4x2x128xf32> to vector<4x2x128xbf16>
    %c0_20 = arith.constant 0 : index
    %c0_21 = arith.constant 0 : index
    %c0_22 = arith.constant 0 : index
    %35 = vector.load %arg5[%c0_20, %c0_21, %c0_22] : memref<4x2x128xbf16, #tpu.memory_space<vmem>>, vector<4x2x128xbf16>
    tpu.vector_store %arg5[%c0_20, %c0_21, %c0_22], %34 {strides = array<i32>} : memref<4x2x128xbf16, #tpu.memory_space<vmem>>, vector<4x2x128xbf16>,
    return
  }
  func.func @transform_0(%arg0: i32) -> (i32, i32, i32) {
    %c0_i32 = arith.constant 0 : i32
    %c0_i32_0 = arith.constant 0 : i32
    %c0_i32_1 = arith.constant 0 : i32
    %c0_i32_2 = arith.constant 0 : i32
    return %c0_i32, %c0_i32_0, %c0_i32_1 : i32, i32, i32
  }
  func.func @transform_1(%arg0: i32) -> (i32, i32, i32) {
    %c0_i32 = arith.constant 0 : i32
    %c0_i32_0 = arith.constant 0 : i32
    %c0_i32_1 = arith.constant 0 : i32
    %c0_i32_2 = arith.constant 0 : i32
    return %c0_i32, %c0_i32_0, %c0_i32_1 : i32, i32, i32
  }
  func.func @transform_2(%arg0: i32) -> (i32, i32, i32) {
    %c0_i32 = arith.constant 0 : i32
    %c0_i32_0 = arith.constant 0 : i32
    %c0_i32_1 = arith.constant 0 : i32
    %c0_i32_2 = arith.constant 0 : i32
    return %c0_i32, %c0_i32_0, %c0_i32_1 : i32, i32, i32
  }
  func.func @transform_3(%arg0: i32) -> (i32, i32, i32) {
    %c0_i32 = arith.constant 0 : i32
    %c0_i32_0 = arith.constant 0 : i32
    %c0_i32_1 = arith.constant 0 : i32
    %c0_i32_2 = arith.constant 0 : i32
    return %c0_i32, %c0_i32_0, %c0_i32_1 : i32, i32, i32
  }
  func.func @transform_4(%arg0: i32) -> (i32, i32, i32) {
    %c0_i32 = arith.constant 0 : i32
    %c0_i32_0 = arith.constant 0 : i32
    %c0_i32_1 = arith.constant 0 : i32
    %c0_i32_2 = arith.constant 0 : i32
    return %c0_i32, %c0_i32_0, %c0_i32_1 : i32, i32, i32
  }
}

module attributes {stable_mosaic.version = 11 : i64} {
  func.func @_fused_matmul_bn_relu_kernel(%arg0: i32, %arg1: memref<4x8x512xbf16, #tpu.memory_space<vmem>>, %arg2: memref<4x512x128xbf16, #tpu.memory_space<vmem>>, %arg3: memref<1x1x128xf32, #tpu.memory_space<vmem>>, %arg4: memref<1x1x128xf32, #tpu.memory_space<vmem>>, %arg5: memref<4x8x128xbf16, #tpu.memory_space<vmem>>) attributes {dimension_semantics = [#tpu.dimension_semantics<arbitrary>], iteration_bounds = array<i64: 1>, scalar_prefetch = 0 : i64, scratch_operands = 0 : i64, tpu.core_type = #tpu.core_type<tc>, window_params = [{pipeline_mode = #tpu.pipeline_mode<synchronous>, transform_indices = @transform_0, window_bounds = array<i64: 4, 8, 512>}, {pipeline_mode = #tpu.pipeline_mode<synchronous>, transform_indices = @transform_1, window_bounds = array<i64: 4, 512, 128>}, {pipeline_mode = #tpu.pipeline_mode<synchronous>, transform_indices = @transform_2, window_bounds = array<i64: 1, 1, 128>}, {pipeline_mode = #tpu.pipeline_mode<synchronous>, transform_indices = @transform_3, window_bounds = array<i64: 1, 1, 128>}, {pipeline_mode = #tpu.pipeline_mode<synchronous>, transform_indices = @transform_4, window_bounds = array<i64: 4, 8, 128>}]} {
    %c0 = arith.constant 0 : index
    %c0_0 = arith.constant 0 : index
    %c0_1 = arith.constant 0 : index
    %0 = vector.load %arg1[%c0, %c0_0, %c0_1] : memref<4x8x512xbf16, #tpu.memory_space<vmem>>, vector<4x8x512xbf16>
    %c0_2 = arith.constant 0 : index
    %c0_3 = arith.constant 0 : index
    %c0_4 = arith.constant 0 : index
    %1 = vector.load %arg2[%c0_2, %c0_3, %c0_4] : memref<4x512x128xbf16, #tpu.memory_space<vmem>>, vector<4x512x128xbf16>
    "tpu.trace_start"() <{level = 10 : i32, message = "pmk,pkc->pmc"}> : () -> ()
    %cst = arith.constant dense<0.000000e+00> : vector<4x8x128xf32>
    %2 = tpu.matmul %0, %1, %cst {dimension_numbers = #tpu.dot_dimension_numbers<[2], [1], [1], [2], [0, 0, 0, 1, 1, 2], [0], [0]>} : vector<4x8x512xbf16>, vector<4x512x128xbf16>, vector<4x8x128xf32> -> vector<4x8x128xf32>
    "tpu.trace_stop"() : () -> ()
    %cst_5 = arith.constant dense<0.000000e+00> : vector<4x128xf32>
    %3 = vector.multi_reduction <add>, %2, %cst_5 [1] : vector<4x8x128xf32> to vector<4x128xf32>
    %4 = vector.shape_cast %3 : vector<4x128xf32> to vector<4x1x128xf32>
    %cst_6 = arith.constant dense<0.000000e+00> : vector<1x128xf32>
    %5 = vector.multi_reduction <add>, %4, %cst_6 [0] : vector<4x1x128xf32> to vector<1x128xf32>
    %6 = vector.shape_cast %5 : vector<1x128xf32> to vector<1x1x128xf32>
    %7 = arith.mulf %2, %2 : vector<4x8x128xf32>
    %cst_7 = arith.constant dense<0.000000e+00> : vector<4x128xf32>
    %8 = vector.multi_reduction <add>, %7, %cst_7 [1] : vector<4x8x128xf32> to vector<4x128xf32>
    %9 = vector.shape_cast %8 : vector<4x128xf32> to vector<4x1x128xf32>
    %cst_8 = arith.constant dense<0.000000e+00> : vector<1x128xf32>
    %10 = vector.multi_reduction <add>, %9, %cst_8 [0] : vector<4x1x128xf32> to vector<1x128xf32>
    %11 = vector.shape_cast %10 : vector<1x128xf32> to vector<1x1x128xf32>
    %cst_9 = arith.constant 3.125000e-02 : f32
    %12 = vector.broadcast %cst_9 : f32 to vector<1x1x128xf32>
    %13 = arith.mulf %6, %12 : vector<1x1x128xf32>
    %cst_10 = arith.constant 3.125000e-02 : f32
    %14 = vector.broadcast %cst_10 : f32 to vector<1x1x128xf32>
    %15 = arith.mulf %11, %14 : vector<1x1x128xf32>
    %16 = arith.mulf %13, %13 : vector<1x1x128xf32>
    %17 = arith.subf %15, %16 : vector<1x1x128xf32>
    %cst_11 = arith.constant 0.000000e+00 : f32
    %18 = vector.broadcast %cst_11 : f32 to vector<1x1x128xf32>
    %19 = arith.maximumf %17, %18 : vector<1x1x128xf32>
    %c0_12 = arith.constant 0 : index
    %c0_13 = arith.constant 0 : index
    %c0_14 = arith.constant 0 : index
    %20 = vector.load %arg3[%c0_12, %c0_13, %c0_14] : memref<1x1x128xf32, #tpu.memory_space<vmem>>, vector<1x1x128xf32>
    %cst_15 = arith.constant 9.99999974E-6 : f32
    %21 = vector.broadcast %cst_15 : f32 to vector<1x1x128xf32>
    %22 = arith.addf %19, %21 : vector<1x1x128xf32>
    %23 = math.rsqrt %22 : vector<1x1x128xf32>
    %24 = arith.mulf %20, %23 : vector<1x1x128xf32>
    %c0_16 = arith.constant 0 : index
    %c0_17 = arith.constant 0 : index
    %c0_18 = arith.constant 0 : index
    %25 = vector.load %arg4[%c0_16, %c0_17, %c0_18] : memref<1x1x128xf32, #tpu.memory_space<vmem>>, vector<1x1x128xf32>
    %26 = arith.mulf %13, %24 : vector<1x1x128xf32>
    %27 = arith.subf %25, %26 : vector<1x1x128xf32>
    %28 = vector.broadcast %24 : vector<1x1x128xf32> to vector<4x8x128xf32>
    %29 = arith.mulf %2, %28 : vector<4x8x128xf32>
    %30 = vector.broadcast %27 : vector<1x1x128xf32> to vector<4x8x128xf32>
    %31 = arith.addf %29, %30 : vector<4x8x128xf32>
    %cst_19 = arith.constant 0.000000e+00 : f32
    %32 = vector.broadcast %cst_19 : f32 to vector<4x8x128xf32>
    %33 = arith.maximumf %31, %32 : vector<4x8x128xf32>
    %34 = arith.truncf %33 : vector<4x8x128xf32> to vector<4x8x128xbf16>
    %c0_20 = arith.constant 0 : index
    %c0_21 = arith.constant 0 : index
    %c0_22 = arith.constant 0 : index
    %35 = vector.load %arg5[%c0_20, %c0_21, %c0_22] : memref<4x8x128xbf16, #tpu.memory_space<vmem>>, vector<4x8x128xbf16>
    tpu.vector_store %arg5[%c0_20, %c0_21, %c0_22], %34 {strides = array<i32>} : memref<4x8x128xbf16, #tpu.memory_space<vmem>>, vector<4x8x128xbf16>,
    return
  }
  func.func @transform_0(%arg0: i32) -> (i32, i32, i32) {
    %c0_i32 = arith.constant 0 : i32
    %c0_i32_0 = arith.constant 0 : i32
    %c0_i32_1 = arith.constant 0 : i32
    %c0_i32_2 = arith.constant 0 : i32
    return %c0_i32, %c0_i32_0, %c0_i32_1 : i32, i32, i32
  }
  func.func @transform_1(%arg0: i32) -> (i32, i32, i32) {
    %c0_i32 = arith.constant 0 : i32
    %c0_i32_0 = arith.constant 0 : i32
    %c0_i32_1 = arith.constant 0 : i32
    %c0_i32_2 = arith.constant 0 : i32
    return %c0_i32, %c0_i32_0, %c0_i32_1 : i32, i32, i32
  }
  func.func @transform_2(%arg0: i32) -> (i32, i32, i32) {
    %c0_i32 = arith.constant 0 : i32
    %c0_i32_0 = arith.constant 0 : i32
    %c0_i32_1 = arith.constant 0 : i32
    %c0_i32_2 = arith.constant 0 : i32
    return %c0_i32, %c0_i32_0, %c0_i32_1 : i32, i32, i32
  }
  func.func @transform_3(%arg0: i32) -> (i32, i32, i32) {
    %c0_i32 = arith.constant 0 : i32
    %c0_i32_0 = arith.constant 0 : i32
    %c0_i32_1 = arith.constant 0 : i32
    %c0_i32_2 = arith.constant 0 : i32
    return %c0_i32, %c0_i32_0, %c0_i32_1 : i32, i32, i32
  }
  func.func @transform_4(%arg0: i32) -> (i32, i32, i32) {
    %c0_i32 = arith.constant 0 : i32
    %c0_i32_0 = arith.constant 0 : i32
    %c0_i32_1 = arith.constant 0 : i32
    %c0_i32_2 = arith.constant 0 : i32
    return %c0_i32, %c0_i32_0, %c0_i32_1 : i32, i32, i32
  }
}

module attributes {stable_mosaic.version = 11 : i64} {
  func.func @_fused_matmul_bn_relu_kernel(%arg0: i32, %arg1: memref<4x32x256xbf16, #tpu.memory_space<vmem>>, %arg2: memref<4x256x128xbf16, #tpu.memory_space<vmem>>, %arg3: memref<1x1x128xf32, #tpu.memory_space<vmem>>, %arg4: memref<1x1x128xf32, #tpu.memory_space<vmem>>, %arg5: memref<4x32x128xbf16, #tpu.memory_space<vmem>>) attributes {dimension_semantics = [#tpu.dimension_semantics<arbitrary>], iteration_bounds = array<i64: 1>, scalar_prefetch = 0 : i64, scratch_operands = 0 : i64, tpu.core_type = #tpu.core_type<tc>, window_params = [{pipeline_mode = #tpu.pipeline_mode<synchronous>, transform_indices = @transform_0, window_bounds = array<i64: 4, 32, 256>}, {pipeline_mode = #tpu.pipeline_mode<synchronous>, transform_indices = @transform_1, window_bounds = array<i64: 4, 256, 128>}, {pipeline_mode = #tpu.pipeline_mode<synchronous>, transform_indices = @transform_2, window_bounds = array<i64: 1, 1, 128>}, {pipeline_mode = #tpu.pipeline_mode<synchronous>, transform_indices = @transform_3, window_bounds = array<i64: 1, 1, 128>}, {pipeline_mode = #tpu.pipeline_mode<synchronous>, transform_indices = @transform_4, window_bounds = array<i64: 4, 32, 128>}]} {
    %c0 = arith.constant 0 : index
    %c0_0 = arith.constant 0 : index
    %c0_1 = arith.constant 0 : index
    %0 = vector.load %arg1[%c0, %c0_0, %c0_1] : memref<4x32x256xbf16, #tpu.memory_space<vmem>>, vector<4x32x256xbf16>
    %c0_2 = arith.constant 0 : index
    %c0_3 = arith.constant 0 : index
    %c0_4 = arith.constant 0 : index
    %1 = vector.load %arg2[%c0_2, %c0_3, %c0_4] : memref<4x256x128xbf16, #tpu.memory_space<vmem>>, vector<4x256x128xbf16>
    "tpu.trace_start"() <{level = 10 : i32, message = "pmk,pkc->pmc"}> : () -> ()
    %cst = arith.constant dense<0.000000e+00> : vector<4x32x128xf32>
    %2 = tpu.matmul %0, %1, %cst {dimension_numbers = #tpu.dot_dimension_numbers<[2], [1], [1], [2], [0, 0, 0, 1, 1, 2], [0], [0]>} : vector<4x32x256xbf16>, vector<4x256x128xbf16>, vector<4x32x128xf32> -> vector<4x32x128xf32>
    "tpu.trace_stop"() : () -> ()
    %cst_5 = arith.constant dense<0.000000e+00> : vector<4x128xf32>
    %3 = vector.multi_reduction <add>, %2, %cst_5 [1] : vector<4x32x128xf32> to vector<4x128xf32>
    %4 = vector.shape_cast %3 : vector<4x128xf32> to vector<4x1x128xf32>
    %cst_6 = arith.constant dense<0.000000e+00> : vector<1x128xf32>
    %5 = vector.multi_reduction <add>, %4, %cst_6 [0] : vector<4x1x128xf32> to vector<1x128xf32>
    %6 = vector.shape_cast %5 : vector<1x128xf32> to vector<1x1x128xf32>
    %7 = arith.mulf %2, %2 : vector<4x32x128xf32>
    %cst_7 = arith.constant dense<0.000000e+00> : vector<4x128xf32>
    %8 = vector.multi_reduction <add>, %7, %cst_7 [1] : vector<4x32x128xf32> to vector<4x128xf32>
    %9 = vector.shape_cast %8 : vector<4x128xf32> to vector<4x1x128xf32>
    %cst_8 = arith.constant dense<0.000000e+00> : vector<1x128xf32>
    %10 = vector.multi_reduction <add>, %9, %cst_8 [0] : vector<4x1x128xf32> to vector<1x128xf32>
    %11 = vector.shape_cast %10 : vector<1x128xf32> to vector<1x1x128xf32>
    %cst_9 = arith.constant 7.812500e-03 : f32
    %12 = vector.broadcast %cst_9 : f32 to vector<1x1x128xf32>
    %13 = arith.mulf %6, %12 : vector<1x1x128xf32>
    %cst_10 = arith.constant 7.812500e-03 : f32
    %14 = vector.broadcast %cst_10 : f32 to vector<1x1x128xf32>
    %15 = arith.mulf %11, %14 : vector<1x1x128xf32>
    %16 = arith.mulf %13, %13 : vector<1x1x128xf32>
    %17 = arith.subf %15, %16 : vector<1x1x128xf32>
    %cst_11 = arith.constant 0.000000e+00 : f32
    %18 = vector.broadcast %cst_11 : f32 to vector<1x1x128xf32>
    %19 = arith.maximumf %17, %18 : vector<1x1x128xf32>
    %c0_12 = arith.constant 0 : index
    %c0_13 = arith.constant 0 : index
    %c0_14 = arith.constant 0 : index
    %20 = vector.load %arg3[%c0_12, %c0_13, %c0_14] : memref<1x1x128xf32, #tpu.memory_space<vmem>>, vector<1x1x128xf32>
    %cst_15 = arith.constant 9.99999974E-6 : f32
    %21 = vector.broadcast %cst_15 : f32 to vector<1x1x128xf32>
    %22 = arith.addf %19, %21 : vector<1x1x128xf32>
    %23 = math.rsqrt %22 : vector<1x1x128xf32>
    %24 = arith.mulf %20, %23 : vector<1x1x128xf32>
    %c0_16 = arith.constant 0 : index
    %c0_17 = arith.constant 0 : index
    %c0_18 = arith.constant 0 : index
    %25 = vector.load %arg4[%c0_16, %c0_17, %c0_18] : memref<1x1x128xf32, #tpu.memory_space<vmem>>, vector<1x1x128xf32>
    %26 = arith.mulf %13, %24 : vector<1x1x128xf32>
    %27 = arith.subf %25, %26 : vector<1x1x128xf32>
    %28 = vector.broadcast %24 : vector<1x1x128xf32> to vector<4x32x128xf32>
    %29 = arith.mulf %2, %28 : vector<4x32x128xf32>
    %30 = vector.broadcast %27 : vector<1x1x128xf32> to vector<4x32x128xf32>
    %31 = arith.addf %29, %30 : vector<4x32x128xf32>
    %cst_19 = arith.constant 0.000000e+00 : f32
    %32 = vector.broadcast %cst_19 : f32 to vector<4x32x128xf32>
    %33 = arith.maximumf %31, %32 : vector<4x32x128xf32>
    %34 = arith.truncf %33 : vector<4x32x128xf32> to vector<4x32x128xbf16>
    %c0_20 = arith.constant 0 : index
    %c0_21 = arith.constant 0 : index
    %c0_22 = arith.constant 0 : index
    %35 = vector.load %arg5[%c0_20, %c0_21, %c0_22] : memref<4x32x128xbf16, #tpu.memory_space<vmem>>, vector<4x32x128xbf16>
    tpu.vector_store %arg5[%c0_20, %c0_21, %c0_22], %34 {strides = array<i32>} : memref<4x32x128xbf16, #tpu.memory_space<vmem>>, vector<4x32x128xbf16>,
    return
  }
  func.func @transform_0(%arg0: i32) -> (i32, i32, i32) {
    %c0_i32 = arith.constant 0 : i32
    %c0_i32_0 = arith.constant 0 : i32
    %c0_i32_1 = arith.constant 0 : i32
    %c0_i32_2 = arith.constant 0 : i32
    return %c0_i32, %c0_i32_0, %c0_i32_1 : i32, i32, i32
  }
  func.func @transform_1(%arg0: i32) -> (i32, i32, i32) {
    %c0_i32 = arith.constant 0 : i32
    %c0_i32_0 = arith.constant 0 : i32
    %c0_i32_1 = arith.constant 0 : i32
    %c0_i32_2 = arith.constant 0 : i32
    return %c0_i32, %c0_i32_0, %c0_i32_1 : i32, i32, i32
  }
  func.func @transform_2(%arg0: i32) -> (i32, i32, i32) {
    %c0_i32 = arith.constant 0 : i32
    %c0_i32_0 = arith.constant 0 : i32
    %c0_i32_1 = arith.constant 0 : i32
    %c0_i32_2 = arith.constant 0 : i32
    return %c0_i32, %c0_i32_0, %c0_i32_1 : i32, i32, i32
  }
  func.func @transform_3(%arg0: i32) -> (i32, i32, i32) {
    %c0_i32 = arith.constant 0 : i32
    %c0_i32_0 = arith.constant 0 : i32
    %c0_i32_1 = arith.constant 0 : i32
    %c0_i32_2 = arith.constant 0 : i32
    return %c0_i32, %c0_i32_0, %c0_i32_1 : i32, i32, i32
  }
  func.func @transform_4(%arg0: i32) -> (i32, i32, i32) {
    %c0_i32 = arith.constant 0 : i32
    %c0_i32_0 = arith.constant 0 : i32
    %c0_i32_1 = arith.constant 0 : i32
    %c0_i32_2 = arith.constant 0 : i32
    return %c0_i32, %c0_i32_0, %c0_i32_1 : i32, i32, i32
  }
}

module attributes {stable_mosaic.version = 11 : i64} {
  func.func @_fused_matmul_bn_relu_kernel(%arg0: i32, %arg1: memref<4x128x128xbf16, #tpu.memory_space<vmem>>, %arg2: memref<4x128x128xbf16, #tpu.memory_space<vmem>>, %arg3: memref<1x1x128xf32, #tpu.memory_space<vmem>>, %arg4: memref<1x1x128xf32, #tpu.memory_space<vmem>>, %arg5: memref<4x128x128xbf16, #tpu.memory_space<vmem>>) attributes {dimension_semantics = [#tpu.dimension_semantics<arbitrary>], iteration_bounds = array<i64: 1>, scalar_prefetch = 0 : i64, scratch_operands = 0 : i64, tpu.core_type = #tpu.core_type<tc>, window_params = [{pipeline_mode = #tpu.pipeline_mode<synchronous>, transform_indices = @transform_0, window_bounds = array<i64: 4, 128, 128>}, {pipeline_mode = #tpu.pipeline_mode<synchronous>, transform_indices = @transform_1, window_bounds = array<i64: 4, 128, 128>}, {pipeline_mode = #tpu.pipeline_mode<synchronous>, transform_indices = @transform_2, window_bounds = array<i64: 1, 1, 128>}, {pipeline_mode = #tpu.pipeline_mode<synchronous>, transform_indices = @transform_3, window_bounds = array<i64: 1, 1, 128>}, {pipeline_mode = #tpu.pipeline_mode<synchronous>, transform_indices = @transform_4, window_bounds = array<i64: 4, 128, 128>}]} {
    %c0 = arith.constant 0 : index
    %c0_0 = arith.constant 0 : index
    %c0_1 = arith.constant 0 : index
    %0 = vector.load %arg1[%c0, %c0_0, %c0_1] : memref<4x128x128xbf16, #tpu.memory_space<vmem>>, vector<4x128x128xbf16>
    %c0_2 = arith.constant 0 : index
    %c0_3 = arith.constant 0 : index
    %c0_4 = arith.constant 0 : index
    %1 = vector.load %arg2[%c0_2, %c0_3, %c0_4] : memref<4x128x128xbf16, #tpu.memory_space<vmem>>, vector<4x128x128xbf16>
    "tpu.trace_start"() <{level = 10 : i32, message = "pmk,pkc->pmc"}> : () -> ()
    %cst = arith.constant dense<0.000000e+00> : vector<4x128x128xf32>
    %2 = tpu.matmul %0, %1, %cst {dimension_numbers = #tpu.dot_dimension_numbers<[2], [1], [1], [2], [0, 0, 0, 1, 1, 2], [0], [0]>} : vector<4x128x128xbf16>, vector<4x128x128xbf16>, vector<4x128x128xf32> -> vector<4x128x128xf32>
    "tpu.trace_stop"() : () -> ()
    %cst_5 = arith.constant dense<0.000000e+00> : vector<4x128xf32>
    %3 = vector.multi_reduction <add>, %2, %cst_5 [1] : vector<4x128x128xf32> to vector<4x128xf32>
    %4 = vector.shape_cast %3 : vector<4x128xf32> to vector<4x1x128xf32>
    %cst_6 = arith.constant dense<0.000000e+00> : vector<1x128xf32>
    %5 = vector.multi_reduction <add>, %4, %cst_6 [0] : vector<4x1x128xf32> to vector<1x128xf32>
    %6 = vector.shape_cast %5 : vector<1x128xf32> to vector<1x1x128xf32>
    %7 = arith.mulf %2, %2 : vector<4x128x128xf32>
    %cst_7 = arith.constant dense<0.000000e+00> : vector<4x128xf32>
    %8 = vector.multi_reduction <add>, %7, %cst_7 [1] : vector<4x128x128xf32> to vector<4x128xf32>
    %9 = vector.shape_cast %8 : vector<4x128xf32> to vector<4x1x128xf32>
    %cst_8 = arith.constant dense<0.000000e+00> : vector<1x128xf32>
    %10 = vector.multi_reduction <add>, %9, %cst_8 [0] : vector<4x1x128xf32> to vector<1x128xf32>
    %11 = vector.shape_cast %10 : vector<1x128xf32> to vector<1x1x128xf32>
    %cst_9 = arith.constant 0.001953125 : f32
    %12 = vector.broadcast %cst_9 : f32 to vector<1x1x128xf32>
    %13 = arith.mulf %6, %12 : vector<1x1x128xf32>
    %cst_10 = arith.constant 0.001953125 : f32
    %14 = vector.broadcast %cst_10 : f32 to vector<1x1x128xf32>
    %15 = arith.mulf %11, %14 : vector<1x1x128xf32>
    %16 = arith.mulf %13, %13 : vector<1x1x128xf32>
    %17 = arith.subf %15, %16 : vector<1x1x128xf32>
    %cst_11 = arith.constant 0.000000e+00 : f32
    %18 = vector.broadcast %cst_11 : f32 to vector<1x1x128xf32>
    %19 = arith.maximumf %17, %18 : vector<1x1x128xf32>
    %c0_12 = arith.constant 0 : index
    %c0_13 = arith.constant 0 : index
    %c0_14 = arith.constant 0 : index
    %20 = vector.load %arg3[%c0_12, %c0_13, %c0_14] : memref<1x1x128xf32, #tpu.memory_space<vmem>>, vector<1x1x128xf32>
    %cst_15 = arith.constant 9.99999974E-6 : f32
    %21 = vector.broadcast %cst_15 : f32 to vector<1x1x128xf32>
    %22 = arith.addf %19, %21 : vector<1x1x128xf32>
    %23 = math.rsqrt %22 : vector<1x1x128xf32>
    %24 = arith.mulf %20, %23 : vector<1x1x128xf32>
    %c0_16 = arith.constant 0 : index
    %c0_17 = arith.constant 0 : index
    %c0_18 = arith.constant 0 : index
    %25 = vector.load %arg4[%c0_16, %c0_17, %c0_18] : memref<1x1x128xf32, #tpu.memory_space<vmem>>, vector<1x1x128xf32>
    %26 = arith.mulf %13, %24 : vector<1x1x128xf32>
    %27 = arith.subf %25, %26 : vector<1x1x128xf32>
    %28 = vector.broadcast %24 : vector<1x1x128xf32> to vector<4x128x128xf32>
    %29 = arith.mulf %2, %28 : vector<4x128x128xf32>
    %30 = vector.broadcast %27 : vector<1x1x128xf32> to vector<4x128x128xf32>
    %31 = arith.addf %29, %30 : vector<4x128x128xf32>
    %cst_19 = arith.constant 0.000000e+00 : f32
    %32 = vector.broadcast %cst_19 : f32 to vector<4x128x128xf32>
    %33 = arith.maximumf %31, %32 : vector<4x128x128xf32>
    %34 = arith.truncf %33 : vector<4x128x128xf32> to vector<4x128x128xbf16>
    %c0_20 = arith.constant 0 : index
    %c0_21 = arith.constant 0 : index
    %c0_22 = arith.constant 0 : index
    %35 = vector.load %arg5[%c0_20, %c0_21, %c0_22] : memref<4x128x128xbf16, #tpu.memory_space<vmem>>, vector<4x128x128xbf16>
    tpu.vector_store %arg5[%c0_20, %c0_21, %c0_22], %34 {strides = array<i32>} : memref<4x128x128xbf16, #tpu.memory_space<vmem>>, vector<4x128x128xbf16>,
    return
  }
  func.func @transform_0(%arg0: i32) -> (i32, i32, i32) {
    %c0_i32 = arith.constant 0 : i32
    %c0_i32_0 = arith.constant 0 : i32
    %c0_i32_1 = arith.constant 0 : i32
    %c0_i32_2 = arith.constant 0 : i32
    return %c0_i32, %c0_i32_0, %c0_i32_1 : i32, i32, i32
  }
  func.func @transform_1(%arg0: i32) -> (i32, i32, i32) {
    %c0_i32 = arith.constant 0 : i32
    %c0_i32_0 = arith.constant 0 : i32
    %c0_i32_1 = arith.constant 0 : i32
    %c0_i32_2 = arith.constant 0 : i32
    return %c0_i32, %c0_i32_0, %c0_i32_1 : i32, i32, i32
  }
  func.func @transform_2(%arg0: i32) -> (i32, i32, i32) {
    %c0_i32 = arith.constant 0 : i32
    %c0_i32_0 = arith.constant 0 : i32
    %c0_i32_1 = arith.constant 0 : i32
    %c0_i32_2 = arith.constant 0 : i32
    return %c0_i32, %c0_i32_0, %c0_i32_1 : i32, i32, i32
  }
  func.func @transform_3(%arg0: i32) -> (i32, i32, i32) {
    %c0_i32 = arith.constant 0 : i32
    %c0_i32_0 = arith.constant 0 : i32
    %c0_i32_1 = arith.constant 0 : i32
    %c0_i32_2 = arith.constant 0 : i32
    return %c0_i32, %c0_i32_0, %c0_i32_1 : i32, i32, i32
  }
  func.func @transform_4(%arg0: i32) -> (i32, i32, i32) {
    %c0_i32 = arith.constant 0 : i32
    %c0_i32_0 = arith.constant 0 : i32
    %c0_i32_1 = arith.constant 0 : i32
    %c0_i32_2 = arith.constant 0 : i32
    return %c0_i32, %c0_i32_0, %c0_i32_1 : i32, i32, i32
  }
}

module attributes {stable_mosaic.version = 11 : i64} {
  func.func @_fused_matmul_kernel(%arg0: i32, %arg1: memref<4x512x64xbf16, #tpu.memory_space<vmem>>, %arg2: memref<4x64x128xbf16, #tpu.memory_space<vmem>>, %arg3: memref<4x512x128xbf16, #tpu.memory_space<vmem>>) attributes {dimension_semantics = [#tpu.dimension_semantics<arbitrary>], iteration_bounds = array<i64: 1>, scalar_prefetch = 0 : i64, scratch_operands = 0 : i64, tpu.core_type = #tpu.core_type<tc>, window_params = [{pipeline_mode = #tpu.pipeline_mode<synchronous>, transform_indices = @transform_0, window_bounds = array<i64: 4, 512, 64>}, {pipeline_mode = #tpu.pipeline_mode<synchronous>, transform_indices = @transform_1, window_bounds = array<i64: 4, 64, 128>}, {pipeline_mode = #tpu.pipeline_mode<synchronous>, transform_indices = @transform_2, window_bounds = array<i64: 4, 512, 128>}]} {
    %c0 = arith.constant 0 : index
    %c0_0 = arith.constant 0 : index
    %c0_1 = arith.constant 0 : index
    %0 = vector.load %arg1[%c0, %c0_0, %c0_1] : memref<4x512x64xbf16, #tpu.memory_space<vmem>>, vector<4x512x64xbf16>
    %c0_2 = arith.constant 0 : index
    %c0_3 = arith.constant 0 : index
    %c0_4 = arith.constant 0 : index
    %1 = vector.load %arg2[%c0_2, %c0_3, %c0_4] : memref<4x64x128xbf16, #tpu.memory_space<vmem>>, vector<4x64x128xbf16>
    "tpu.trace_start"() <{level = 10 : i32, message = "pmk,pkc->pmc"}> : () -> ()
    %cst = arith.constant dense<0.000000e+00> : vector<4x512x128xf32>
    %2 = tpu.matmul %0, %1, %cst {dimension_numbers = #tpu.dot_dimension_numbers<[2], [1], [1], [2], [0, 0, 0, 1, 1, 2], [0], [0]>} : vector<4x512x64xbf16>, vector<4x64x128xbf16>, vector<4x512x128xf32> -> vector<4x512x128xf32>
    "tpu.trace_stop"() : () -> ()
    %3 = arith.truncf %2 : vector<4x512x128xf32> to vector<4x512x128xbf16>
    %c0_5 = arith.constant 0 : index
    %c0_6 = arith.constant 0 : index
    %c0_7 = arith.constant 0 : index
    %4 = vector.load %arg3[%c0_5, %c0_6, %c0_7] : memref<4x512x128xbf16, #tpu.memory_space<vmem>>, vector<4x512x128xbf16>
    tpu.vector_store %arg3[%c0_5, %c0_6, %c0_7], %3 {strides = array<i32>} : memref<4x512x128xbf16, #tpu.memory_space<vmem>>, vector<4x512x128xbf16>,
    return
  }
  func.func @transform_0(%arg0: i32) -> (i32, i32, i32) {
    %c0_i32 = arith.constant 0 : i32
    %c0_i32_0 = arith.constant 0 : i32
    %c0_i32_1 = arith.constant 0 : i32
    %c0_i32_2 = arith.constant 0 : i32
    return %c0_i32, %c0_i32_0, %c0_i32_1 : i32, i32, i32
  }
  func.func @transform_1(%arg0: i32) -> (i32, i32, i32) {
    %c0_i32 = arith.constant 0 : i32
    %c0_i32_0 = arith.constant 0 : i32
    %c0_i32_1 = arith.constant 0 : i32
    %c0_i32_2 = arith.constant 0 : i32
    return %c0_i32, %c0_i32_0, %c0_i32_1 : i32, i32, i32
  }
  func.func @transform_2(%arg0: i32) -> (i32, i32, i32) {
    %c0_i32 = arith.constant 0 : i32
    %c0_i32_0 = arith.constant 0 : i32
    %c0_i32_1 = arith.constant 0 : i32
    %c0_i32_2 = arith.constant 0 : i32
    return %c0_i32, %c0_i32_0, %c0_i32_1 : i32, i32, i32
  }
}

</mosaic_0001>

<bundles_post_ra>
// kernel: generator_forward.5
= control target key start
LH: loop header
LB: loop body
LE: loop exit
PB: predicated region body
PF: predicated region fallthrough
CT: control target
= control target key end

     0   :  { %9 = vsyncpa [#allocation3], 0  ;;  %s637_s0 = inlined_call_operand.vmem [shape: bf16[4,2,32], index: 0, kind: input, shape index: {}]   ;;  %s638_s1 = inlined_call_operand.vmem [shape: bf16[4,32,128], index: 1, kind: input, shape index: {}]   ;;  %s639_s2 = inlined_call_operand.hbm [shape: f32[1,1,128], index: 2, kind: input, shape index: {}]   ;;  %s640_s3 = inlined_call_operand.hbm [shape: f32[1,1,128], index: 3, kind: input, shape index: {}]   ;;  %s641_s4 = inlined_call_operand.vmem [shape: bf16[4,2,128], index: 4, kind: output, shape index: {}]  }
   0x1   :  { %10 = vsyncpa [#allocation5], 0  ;;  %s514_s15 = smov [#allocation2]   ;;  %s515_s17 = smov [#allocation4]  }
   0x2   :  { %s21_s16 = sshll.u32 %s514_s15, 4  ;;  %s31_s18 = sshll.u32 %s515_s17, 4  ;;  %s22_s16 = int_to_ptr.vmem [resolvable:$true] %s21_s16  ;;  %s32_s18 = int_to_ptr.vmem [resolvable:$true] %s31_s18 }
   0x3   :  { %s478_s19 = scalar_lea.vmem %s22_s16, 16  ;;  %s482_s20 = scalar_lea.vmem %s22_s16, 32 }
   0x4   :  { %p479_p0 = scmp.ne.s32.totalorder %s22_s16, %s478_s19  ;;  %p483_p1 = scmp.lt.s32.totalorder %s22_s16, %s22_s16 }
   0x5   :  { %p484_p2 = scmp.lt.s32.totalorder %s482_s20, %s478_s19 }
   0x7   :  { %p485_p3 = por %p484_p2, %p483_p1 }
   0x9   :  { %p486_p4 = pnand %p485_p3, %p479_p0 }
   0xb   :  { %489 = shalt.err (!%p486_p4)
}
   0xc   :  { %24 = dma.hbm_to_vmem [thread:$0]  %s639_s2, 16, %s22_s16, [#allocation3]  }
   0xd   :  { %s498_s23 = scalar_lea.vmem %s32_s18, 16  ;;  %s502_s24 = scalar_lea.vmem %s32_s18, 32 }
   0xe   :  { %p499_p5 = scmp.ne.s32.totalorder %s32_s18, %s498_s23  ;;  %p503_p6 = scmp.lt.s32.totalorder %s32_s18, %s32_s18 }
   0xf   :  { %p504_p7 = scmp.lt.s32.totalorder %s502_s24, %s498_s23 }
  0x11   :  { %p505_p8 = por %p504_p7, %p503_p6 }
  0x13   :  { %p506_p9 = pnand %p505_p8, %p499_p5 }
  0x15   :  { %509 = shalt.err (!%p506_p9)
}
  0x16   :  { %34 = dma.hbm_to_vmem [thread:$0]  %s640_s3, 16, %s32_s18, [#allocation5]  }
  0x17   :  { %510 = dma.done.wait [#allocation3], 16  }
  0x18   :  { %511 = vsyncadd [#allocation3], 4294967280 }
  0x19   :  { %512 = dma.done.wait [#allocation5], 16  }
  0x1a   :  { %513 = vsyncadd [#allocation5], 4294967280  ;;  %v516_v0 = vmov 0.0   ;;  %vm517_vm0 = vmmov 0   ;;  %v460_v1 = vld [vmem:[%s638_s1 + $0x8] sm:$0xff]   ;;  %v461_v2 = vld [vmem:[%s638_s1 + $0x18] sm:$0xff]  }
  0x1b   :  { %424 = vmatprep.subr.bf16.mxu0 %v516_v0  ;;  %432 = vmatprep.subr.bf16.mxu1 %v516_v0  ;;  %v462_v3 = vld [vmem:[%s638_s1] sm:$0xff]   ;;  %v463_v4 = vld [vmem:[%s638_s1 + $0x10] sm:$0xff]   ;;  %vm74_vm1 = vcmask 261120   ;;  %v464_v7 = vld [vmem:[%s638_s1 + $0x28] sm:$0xff]   ;;  %vm283_vm2 = vcmask 1041408  }
  0x1c   :  { %428 = vmatprep.mubr.msk.bf16.mxu0 %vm517_vm0, %v516_v0  ;;  %436 = vmatprep.mubr.msk.bf16.mxu1 %vm517_vm0, %v516_v0  ;;  %v42_v5 = vld [vmem:[%s637_s0] sm:$0x1]  ;;  %v43_v6 = vld [vmem:[%s637_s0 + $0x1] sm:$0x1]  ;;  %v465_v8 = vld [vmem:[%s638_s1 + $0x38] sm:$0xff]  }
  0x1d   :  { %425 = vmatpush3.bf16.msra.mxu0 %v460_v1  ;;  %433 = vmatpush3.bf16.msra.mxu1 %v461_v2  ;;  %v466_v9 = vld [vmem:[%s638_s1 + $0x20] sm:$0xff]   ;;  %v467_v10 = vld [vmem:[%s638_s1 + $0x30] sm:$0xff]  }
  0x1e   :  { %426 = vmatprep.subr.bf16.mxu0 %v516_v0  ;;  %434 = vmatprep.subr.bf16.mxu1 %v516_v0  ;;  %v44_v11 = vld [vmem:[%s637_s0 + $0x2] sm:$0x1]  ;;  %v45_v12 = vld [vmem:[%s637_s0 + $0x3] sm:$0x1] }
  0x21   :  { %427 = vmatpush3.bf16.msra.mxu0 %v462_v3  ;;  %435 = vmatpush3.bf16.msra.mxu1 %v463_v4 }
  0x22   :  { %440 = vmatprep.subr.bf16.mxu0 %v516_v0  ;;  %448 = vmatprep.subr.bf16.mxu1 %v516_v0 }
  0x24   :  { %429 = vmatmul.mubr.msk.bf16.vlgmr.msra.gmra.mxu0 %vm74_vm1, %v42_v5  ;;  %437 = vmatmul.mubr.msk.bf16.vlgmr.msra.gmra.mxu1 %vm74_vm1, %v43_v6 }
  0x25   :  { %441 = vmatpush3.bf16.msra.mxu0 %v464_v7  ;;  %449 = vmatpush3.bf16.msra.mxu1 %v465_v8 }
  0x26   :  { %442 = vmatprep.subr.bf16.mxu0 %v516_v0  ;;  %450 = vmatprep.subr.bf16.mxu1 %v516_v0 }
  0x27   :  { %444 = vmatprep.mubr.msk.bf16.mxu0 %vm517_vm0, %v516_v0  ;;  %452 = vmatprep.mubr.msk.bf16.mxu1 %vm517_vm0, %v516_v0 }
  0x29   :  { %443 = vmatpush3.bf16.msra.mxu0 %v466_v9  ;;  %451 = vmatpush3.bf16.msra.mxu1 %v467_v10 }
  0x2c   :  { %445 = vmatmul.mubr.msk.bf16.vlgmr.msra.gmra.mxu0 %vm74_vm1, %v44_v11  ;;  %453 = vmatmul.mubr.msk.bf16.vlgmr.msra.gmra.mxu1 %vm74_vm1, %v45_v12 }
  0xe4   :  { %v593_v13 = vpop.f32.mrf.mxu0  ;;  %v599_v16 = vpop.f32.mrf.mxu1 }
  0xe5   :  { %v284_v14 = vsel %vm283_vm2, %v593_v13, 0.0  ;;  %v315_v15 = vmul.f32 %v593_v13, %v593_v13  ;;  %v291_v18 = vsel %vm283_vm2, %v599_v16, 0.0  ;;  %v316_v19 = vmul.f32 %v599_v16, %v599_v16 }
  0xe6   :  { %v285_v17 = vrot.slane %v284_v14, 4  ;;  %v430_v20 = vpop.f32.mrf.mxu0  ;;  %v292_v22 = vrot.slane %v291_v18, 4  ;;  %v438_v23 = vpop.f32.mrf.mxu1 }
  0xe7   :  { %v319_v21 = vsel %vm283_vm2, %v315_v15, 0.0  ;;  %v326_v26 = vsel %vm283_vm2, %v316_v19, 0.0 }
  0xe8   :  { %v286_v24 = vadd.f32 %v285_v17, %v284_v14  ;;  %v320_v25 = vrot.slane %v319_v21, 4  ;;  %v115_v27 = vpop.f32.mrf.mxu0  ;;  %v293_v28 = vadd.f32 %v292_v22, %v291_v18  ;;  %v327_v29 = vrot.slane %v326_v26, 4  ;;  %v170_v30 = vpop.f32.mrf.mxu1 }
  0xea   :  { %v287_v31 = vrot.slane %v286_v24, 2  ;;  %v321_v32 = vadd.f32 %v320_v25, %v319_v21  ;;  %v431_v33 = vpop.f32.mrf.mxu0  ;;  %v294_v34 = vrot.slane %v293_v28, 2  ;;  %v328_v35 = vadd.f32 %v327_v29, %v326_v26  ;;  %v439_v36 = vpop.f32.mrf.mxu1 }
  0xec   :  { %v288_v37 = vadd.f32 %v287_v31, %v286_v24  ;;  %v322_v38 = vrot.slane %v321_v32, 2  ;;  %v607_v39 = vpop.f32.mrf.mxu0  ;;  %v295_v40 = vadd.f32 %v294_v34, %v293_v28  ;;  %v329_v41 = vrot.slane %v328_v35, 2  ;;  %v613_v44 = vpop.f32.mrf.mxu1 }
  0xed   :  { %v298_v42 = vsel %vm283_vm2, %v607_v39, 0.0  ;;  %v317_v43 = vmul.f32 %v607_v39, %v607_v39  ;;  %v305_v47 = vsel %vm283_vm2, %v613_v44, 0.0  ;;  %v318_v61 = vmul.f32 %v613_v44, %v613_v44 }
  0xee   :  { %v323_v45 = vadd.f32 %v322_v38, %v321_v32  ;;  %v299_v46 = vrot.slane %v298_v42, 4  ;;  %v446_v48 = vpop.f32.mrf.mxu0  ;;  %v289_v49 = vrot.slane %v288_v37, 1  ;;  %v330_v50 = vadd.f32 %v329_v41, %v328_v35  ;;  %v454_v53 = vpop.f32.mrf.mxu1 }
  0xef   :  { %v333_v51 = vsel %vm283_vm2, %v317_v43, 0.0  ;;  %v306_v52 = vrot.slane %v305_v47, 4  ;;  %v296_v54 = vrot.slane %v295_v40, 1  ;;  %v340_v4 = vsel %vm283_vm2, %v318_v61, 0.0 }
  0xf0   :  { %v300_v55 = vadd.f32 %v299_v46, %v298_v42  ;;  %v334_v56 = vrot.slane %v333_v51, 4  ;;  %v225_v57 = vpop.f32.mrf.mxu0  ;;  %v324_v58 = vrot.slane %v323_v45, 1  ;;  %v331_v59 = vrot.slane %v330_v50, 1  ;;  %v280_v62 = vpop.f32.mrf.mxu1  ;;  %v355_v42 = vld [vmem:[#allocation2] sm:$0x1] }
  0xf1   :  { %v307_v60 = vadd.f32 %v306_v52, %v305_v47  ;;  %v290_v2 = vadd.f32 %v289_v49, %v288_v37  ;;  %v297_v6 = vadd.f32 %v296_v54, %v295_v40  ;;  %v341_v9 = vrot.slane %v340_v4, 4  ;;  %v359_v47 = vld [vmem:[#allocation4] sm:$0x1] }
  0xf2   :  { %v301_v63 = vrot.slane %v300_v55, 2  ;;  %v335_v0 = vadd.f32 %v334_v56, %v333_v51  ;;  %v447_v1 = vpop.f32.mrf.mxu0  ;;  %v455_v5 = vpop.f32.mrf.mxu1  ;;  %v325_v10 = vadd.f32 %v324_v58, %v323_v45  ;;  %v332_v11 = vadd.f32 %v331_v59, %v330_v50 }
  0xf3   :  { %v308_v3 = vrot.slane %v307_v60, 2  ;;  %v342_v17 = vadd.f32 %v341_v9, %v340_v4  ;;  %v312_v19 = vadd.f32 %v297_v6, %v290_v2  ;;  %v363_v40 = vlaneseq }
  0xf4   :  { %v302_v7 = vadd.f32 %v301_v63, %v300_v55  ;;  %v336_v8 = vrot.slane %v335_v0, 2  ;;  %v347_v23 = vadd.f32 %v332_v11, %v325_v10 }
  0xf5   :  { %v309_v12 = vadd.f32 %v308_v3, %v307_v60  ;;  %v343_v22 = vrot.slane %v342_v17, 2  ;;  %v364_v41 = vshrl.u32 %v363_v40, 7 }
  0xf6   :  { %v303_v14 = vrot.slane %v302_v7, 1  ;;  %v337_v15 = vadd.f32 %v336_v8, %v335_v0 }
  0xf7   :  { %v310_v18 = vrot.slane %v309_v12, 1  ;;  %v344_v27 = vadd.f32 %v343_v22, %v342_v17  ;;  %v365_v43 = vsub.s32 0, %v364_v41 }
  0xf8   :  { %v304_v20 = vadd.f32 %v303_v14, %v302_v7  ;;  %v338_v21 = vrot.slane %v337_v15, 1 }
  0xf9   :  { %v311_v26 = vadd.f32 %v310_v18, %v309_v12  ;;  %v345_v30 = vrot.slane %v344_v27, 1 }
  0xfa   :  { %v313_v24 = vadd.f32 %v312_v19, %v304_v20  ;;  %v339_v25 = vadd.f32 %v338_v21, %v337_v15 }
  0xfb   :  { %v346_v31 = vadd.f32 %v345_v30, %v344_v27 }
  0xfc   :  { %v348_v28 = vadd.f32 %v347_v23, %v339_v25  ;;  %v314_v29 = vadd.f32 %v313_v24, %v311_v26 }
  0xfe   :  { %v350_v32 = vmul.f32 0.125, %v314_v29  ;;  %v349_v33 = vadd.f32 %v348_v28, %v346_v31 }
 0x100   :  { %v352_v34 = vmul.f32 %v350_v32, %v350_v32  ;;  %v351_v35 = vmul.f32 0.125, %v349_v33 }
 0x102   :  { %v353_v36 = vsub.f32 %v351_v35, %v352_v34 }
 0x104   :  { %v354_v37 = vmax.f32 %v353_v36, 0.0 }
 0x106   :  { %v356_v38 = vadd.f32 1e-05, %v354_v37 }
 0x108   :  { %468 = vrsqrt.f32 %v356_v38 }
 0x115   :  { %v469_v45 = vpop.eup %468 }
 0x116   :  { %v358_v46 = vmul.f32 %v469_v45, %v355_v42 }
 0x118   :  { %v360_v48 = vmul.f32 %v358_v46, %v350_v32  ;;  %v366_v49 = vrot.slane %v358_v46, %v365_v43 }
 0x11a   :  { %v361_v50 = vsub.f32 %v359_v47, %v360_v48  ;;  %v368_v51 = vmul.f32 %v366_v49, %v593_v13  ;;  %v369_v52 = vmul.f32 %v366_v49, %v599_v16  ;;  %v370_v53 = vmul.f32 %v366_v49, %v607_v39 }
 0x11b   :  { %v371_v54 = vmul.f32 %v366_v49, %v613_v44 }
 0x11c   :  { %v376_v55 = vrot.slane %v361_v50, %v365_v43 }
 0x11e   :  { %v378_v56 = vadd.f32 %v376_v55, %v368_v51  ;;  %v379_v57 = vadd.f32 %v376_v55, %v369_v52  ;;  %v380_v58 = vadd.f32 %v376_v55, %v370_v53  ;;  %v381_v59 = vadd.f32 %v376_v55, %v371_v54 }
 0x120   :  { %v382_v60 = vmax.f32 %v378_v56, 0.0  ;;  %v383_v61 = vmax.f32 %v379_v57, 0.0  ;;  %v384_v62 = vmax.f32 %v380_v58, 0.0  ;;  %v385_v63 = vmax.f32 %v381_v59, 0.0 }
 0x122   :  { %v386_v0 = vpack.c.bf16 %v382_v60, %v382_v60  ;;  %v387_v1 = vpack.c.bf16 %v383_v61, %v383_v61  ;;  %v388_v2 = vpack.c.bf16 %v384_v62, %v384_v62  ;;  %v389_v3 = vpack.c.bf16 %v385_v63, %v385_v63 }
 0x124   :  { %390 = vst [vmem:[%s641_s4] sm:$0x1] %v386_v0  ;;  %391 = vst [vmem:[%s641_s4 + $0x1] sm:$0x1] %v387_v1 }
 0x125   :  { %392 = vst [vmem:[%s641_s4 + $0x2] sm:$0x1] %v388_v2  ;;  %393 = vst [vmem:[%s641_s4 + $0x3] sm:$0x1] %v389_v3 }
 0x126   :  { %398 = vsyncpa [#allocation3], 1 }
 0x127   :  { %399 = vsyncpa [#allocation5], 1 }

// kernel: generator_forward.6
= control target key start
LH: loop header
LB: loop body
LE: loop exit
PB: predicated region body
PF: predicated region fallthrough
CT: control target
= control target key end

     0   :  { %s2475_s1 = inlined_call_operand.vmem [shape: bf16[4,512,128], index: 1, kind: input, shape index: {}]   ;;  %s2476_s0 = inlined_call_operand.vmem [shape: bf16[4,8,512], index: 0, kind: input, shape index: {}]   ;;  %s2477_s2 = inlined_call_operand.vmem [shape: f32[1,1,128], index: 2, kind: input, shape index: {}]   ;;  %s2478_s3 = inlined_call_operand.vmem [shape: f32[1,1,128], index: 3, kind: input, shape index: {}]   ;;  %s2479_s4 = inlined_call_operand.vmem [shape: bf16[4,8,128], index: 4, kind: output, shape index: {}]  }
   0x1   :  { %v1863_v0 = vld [vmem:[%s2475_s1 + $0x78] sm:$0xff]   ;;  %v1867_v4 = vld [vmem:[%s2475_s1 + $0x70] sm:$0xff]   ;;  %v1871_v8 = vld [vmem:[%s2475_s1 + $0x68] sm:$0xff]  }
   0x2   :  { %v1864_v1 = vld [vmem:[%s2475_s1 + $0xf8] sm:$0xff]   ;;  %1687 = vmatprep.subr.bf16.mxu0 %v1863_v0  ;;  %v1868_v5 = vld [vmem:[%s2475_s1 + $0xf0] sm:$0xff]   ;;  %v1872_v9 = vld [vmem:[%s2475_s1 + $0xe8] sm:$0xff]  }
   0x3   :  { %v1865_v2 = vld [vmem:[%s2475_s1 + $0x38] sm:$0xff]   ;;  %1709 = vmatprep.subr.bf16.mxu1 %v1864_v1  ;;  %v1869_v6 = vld [vmem:[%s2475_s1 + $0x30] sm:$0xff]   ;;  %v1873_v10 = vld [vmem:[%s2475_s1 + $0x28] sm:$0xff]  }
   0x4   :  { %v1866_v3 = vld [vmem:[%s2475_s1 + $0xb8] sm:$0xff]   ;;  %1688 = vmatpush3.bf16.msra.mxu0 %v1865_v2  ;;  %v1870_v7 = vld [vmem:[%s2475_s1 + $0xb0] sm:$0xff]   ;;  %v1874_v11 = vld [vmem:[%s2475_s1 + $0xa8] sm:$0xff]  }
   0x5   :  { %1710 = vmatpush3.bf16.msra.mxu1 %v1866_v3  ;;  %1689 = vmatprep.subr.bf16.mxu0 %v1867_v4  ;;  %v1875_v12 = vld [vmem:[%s2475_s1 + $0x60] sm:$0xff]   ;;  %v1879_v16 = vld [vmem:[%s2475_s1 + $0x58] sm:$0xff]   ;;  %v1883_v20 = vld [vmem:[%s2475_s1 + $0x50] sm:$0xff]  }
   0x6   :  { %1711 = vmatprep.subr.bf16.mxu1 %v1868_v5  ;;  %v1876_v13 = vld [vmem:[%s2475_s1 + $0xe0] sm:$0xff]   ;;  %v1880_v17 = vld [vmem:[%s2475_s1 + $0xd8] sm:$0xff]   ;;  %v1884_v21 = vld [vmem:[%s2475_s1 + $0xd0] sm:$0xff]  }
   0x7   :  { %v1877_v14 = vld [vmem:[%s2475_s1 + $0x20] sm:$0xff]   ;;  %v1881_v18 = vld [vmem:[%s2475_s1 + $0x18] sm:$0xff]   ;;  %v1885_v22 = vld [vmem:[%s2475_s1 + $0x10] sm:$0xff]  }
   0x8   :  { %1690 = vmatpush3.bf16.msra.mxu0 %v1869_v6  ;;  %v1878_v15 = vld [vmem:[%s2475_s1 + $0xa0] sm:$0xff]   ;;  %v1882_v19 = vld [vmem:[%s2475_s1 + $0x98] sm:$0xff]   ;;  %v1886_v23 = vld [vmem:[%s2475_s1 + $0x90] sm:$0xff]  }
   0x9   :  { %1712 = vmatpush3.bf16.msra.mxu1 %v1870_v7  ;;  %1691 = vmatprep.subr.bf16.mxu0 %v1871_v8  ;;  %v1887_v24 = vld [vmem:[%s2475_s1 + $0x48] sm:$0xff]   ;;  %v1891_v28 = vld [vmem:[%s2475_s1 + $0x40] sm:$0xff]   ;;  %v1899_v38 = vld [vmem:[%s2475_s1 + $0x178] sm:$0xff]  }
   0xa   :  { %1713 = vmatprep.subr.bf16.mxu1 %v1872_v9  ;;  %v1888_v25 = vld [vmem:[%s2475_s1 + $0xc8] sm:$0xff]   ;;  %v1892_v29 = vld [vmem:[%s2475_s1 + $0xc0] sm:$0xff]   ;;  %v1900_v39 = vld [vmem:[%s2475_s1 + $0x1f8] sm:$0xff]  }
   0xb   :  { %v1889_v26 = vld [vmem:[%s2475_s1 + $0x8] sm:$0xff]   ;;  %v1893_v30 = vld [vmem:[%s2475_s1] sm:$0xff]   ;;  %v1901_v40 = vld [vmem:[%s2475_s1 + $0x138] sm:$0xff]  }
   0xc   :  { %1692 = vmatpush3.bf16.msra.mxu0 %v1873_v10  ;;  %v1890_v27 = vld [vmem:[%s2475_s1 + $0x88] sm:$0xff]   ;;  %v1894_v31 = vld [vmem:[%s2475_s1 + $0x80] sm:$0xff]   ;;  %v1902_v41 = vld [vmem:[%s2475_s1 + $0x1b8] sm:$0xff]  }
   0xd   :  { %1714 = vmatpush3.bf16.msra.mxu1 %v1874_v11  ;;  %1693 = vmatprep.subr.bf16.mxu0 %v1875_v12  ;;  %v18_v32 = vld [vmem:[%s2476_s0] sm:$0xff]  ;;  %v19_v33 = vld [vmem:[%s2476_s0 + $0x8] sm:$0xff]  ;;  %v1903_v42 = vld [vmem:[%s2475_s1 + $0x170] sm:$0xff]  }
   0xe   :  { %1715 = vmatprep.subr.bf16.mxu1 %v1876_v13  ;;  %v1532_v34 = vcombine.low %v18_v32, %v18_v32  ;;  %v1533_v35 = vcombine.high %v18_v32, %v18_v32  ;;  %v1534_v36 = vcombine.low %v19_v33, %v19_v33  ;;  %v1535_v37 = vcombine.high %v19_v33, %v19_v33  ;;  %v1904_v43 = vld [vmem:[%s2475_s1 + $0x1f0] sm:$0xff]   ;;  %v1907_v46 = vld [vmem:[%s2475_s1 + $0x168] sm:$0xff]   ;;  %v1911_v50 = vld [vmem:[%s2475_s1 + $0x160] sm:$0xff]  }
   0xf   :  { %v1905_v44 = vld [vmem:[%s2475_s1 + $0x130] sm:$0xff]   ;;  %v1908_v47 = vld [vmem:[%s2475_s1 + $0x1e8] sm:$0xff]   ;;  %v1912_v51 = vld [vmem:[%s2475_s1 + $0x1e0] sm:$0xff]  }
  0x10   :  { %1694 = vmatpush3.bf16.msra.mxu0 %v1877_v14  ;;  %520 = vmatprep.mubr.bf16.mxu0 %v1533_v35  ;;  %v1906_v45 = vld [vmem:[%s2475_s1 + $0x1b0] sm:$0xff]   ;;  %v1909_v48 = vld [vmem:[%s2475_s1 + $0x128] sm:$0xff]   ;;  %v1913_v52 = vld [vmem:[%s2475_s1 + $0x120] sm:$0xff]  }
  0x11   :  { %1716 = vmatpush3.bf16.msra.mxu1 %v1878_v15  ;;  %1695 = vmatprep.subr.bf16.mxu0 %v1879_v16  ;;  %v1910_v49 = vld [vmem:[%s2475_s1 + $0x1a8] sm:$0xff]   ;;  %v1914_v53 = vld [vmem:[%s2475_s1 + $0x1a0] sm:$0xff]   ;;  %v1915_v54 = vld [vmem:[%s2475_s1 + $0x158] sm:$0xff]  }
  0x12   :  { %1717 = vmatprep.subr.bf16.mxu1 %v1880_v17  ;;  %560 = vmatprep.mubr.bf16.mxu1 %v1535_v37  ;;  %v1916_v55 = vld [vmem:[%s2475_s1 + $0x1d8] sm:$0xff]   ;;  %v1919_v58 = vld [vmem:[%s2475_s1 + $0x150] sm:$0xff]   ;;  %v1923_v62 = vld [vmem:[%s2475_s1 + $0x148] sm:$0xff]  }
  0x13   :  { %v1917_v56 = vld [vmem:[%s2475_s1 + $0x118] sm:$0xff]   ;;  %v1920_v59 = vld [vmem:[%s2475_s1 + $0x1d0] sm:$0xff]   ;;  %v1924_v63 = vld [vmem:[%s2475_s1 + $0x1c8] sm:$0xff]  }
  0x14   :  { %1696 = vmatpush3.bf16.msra.mxu0 %v1881_v18  ;;  %v1918_v57 = vld [vmem:[%s2475_s1 + $0x198] sm:$0xff]   ;;  %v1921_v60 = vld [vmem:[%s2475_s1 + $0x110] sm:$0xff]   ;;  %v1925_v0 = vld [vmem:[%s2475_s1 + $0x108] sm:$0xff]  }
  0x15   :  { %1718 = vmatpush3.bf16.msra.mxu1 %v1882_v19  ;;  %1697 = vmatprep.subr.bf16.mxu0 %v1883_v20  ;;  %v1922_v61 = vld [vmem:[%s2475_s1 + $0x190] sm:$0xff]   ;;  %v1926_v1 = vld [vmem:[%s2475_s1 + $0x188] sm:$0xff]   ;;  %v1927_v2 = vld [vmem:[%s2475_s1 + $0x140] sm:$0xff]  }
  0x16   :  { %1719 = vmatprep.subr.bf16.mxu1 %v1884_v21  ;;  %v1928_v3 = vld [vmem:[%s2475_s1 + $0x1c0] sm:$0xff]   ;;  %v20_v6 = vld [vmem:[%s2476_s0 + $0x10] sm:$0xff]  ;;  %v21_v9 = vld [vmem:[%s2476_s0 + $0x18] sm:$0xff] }
  0x17   :  { %v1929_v4 = vld [vmem:[%s2475_s1 + $0x100] sm:$0xff]   ;;  %v1568_v7 = vcombine.low %v20_v6, %v20_v6  ;;  %v1569_v8 = vcombine.high %v20_v6, %v20_v6  ;;  %v1570_v10 = vcombine.low %v21_v9, %v21_v9  ;;  %v1571_v11 = vcombine.high %v21_v9, %v21_v9  ;;  %v1935_v12 = vld [vmem:[%s2475_s1 + $0x278] sm:$0xff]   ;;  %v1939_v16 = vld [vmem:[%s2475_s1 + $0x270] sm:$0xff]  }
  0x18   :  { %1698 = vmatpush3.bf16.msra.mxu0 %v1885_v22  ;;  %v1930_v5 = vld [vmem:[%s2475_s1 + $0x180] sm:$0xff]   ;;  %v1936_v13 = vld [vmem:[%s2475_s1 + $0x2f8] sm:$0xff]   ;;  %v1940_v17 = vld [vmem:[%s2475_s1 + $0x2f0] sm:$0xff]  }
  0x19   :  { %1720 = vmatpush3.bf16.msra.mxu1 %v1886_v23  ;;  %1699 = vmatprep.subr.bf16.mxu0 %v1887_v24  ;;  %v1937_v14 = vld [vmem:[%s2475_s1 + $0x238] sm:$0xff]   ;;  %v1941_v18 = vld [vmem:[%s2475_s1 + $0x230] sm:$0xff]   ;;  %v1943_v20 = vld [vmem:[%s2475_s1 + $0x268] sm:$0xff]  }
  0x1a   :  { %1721 = vmatprep.subr.bf16.mxu1 %v1888_v25  ;;  %v1938_v15 = vld [vmem:[%s2475_s1 + $0x2b8] sm:$0xff]   ;;  %v1942_v19 = vld [vmem:[%s2475_s1 + $0x2b0] sm:$0xff]   ;;  %v1944_v21 = vld [vmem:[%s2475_s1 + $0x2e8] sm:$0xff]  }
  0x1b   :  { %v1945_v22 = vld [vmem:[%s2475_s1 + $0x228] sm:$0xff]   ;;  %v1947_v24 = vld [vmem:[%s2475_s1 + $0x260] sm:$0xff]   ;;  %v1955_v32 = vld [vmem:[%s2475_s1 + $0x250] sm:$0xff]  }
  0x1c   :  { %1700 = vmatpush3.bf16.msra.mxu0 %v1889_v26  ;;  %v1946_v23 = vld [vmem:[%s2475_s1 + $0x2a8] sm:$0xff]   ;;  %v1948_v25 = vld [vmem:[%s2475_s1 + $0x2e0] sm:$0xff]   ;;  %v1956_v33 = vld [vmem:[%s2475_s1 + $0x2d0] sm:$0xff]  }
  0x1d   :  { %1722 = vmatpush3.bf16.msra.mxu1 %v1890_v27  ;;  %1701 = vmatprep.subr.bf16.mxu0 %v1891_v28  ;;  %v1949_v26 = vld [vmem:[%s2475_s1 + $0x220] sm:$0xff]   ;;  %v1951_v28 = vld [vmem:[%s2475_s1 + $0x258] sm:$0xff]   ;;  %v1958_v35 = vld [vmem:[%s2475_s1 + $0x290] sm:$0xff]  }
  0x1e   :  { %1723 = vmatprep.subr.bf16.mxu1 %v1892_v29  ;;  %v1950_v27 = vld [vmem:[%s2475_s1 + $0x2a0] sm:$0xff]   ;;  %v1952_v29 = vld [vmem:[%s2475_s1 + $0x2d8] sm:$0xff]   ;;  %v1960_v37 = vld [vmem:[%s2475_s1 + $0x2c8] sm:$0xff]  }
  0x1f   :  { %v1991_v6 = vld [vmem:[%s2475_s1 + $0x350] sm:$0xff]  }
  0x20   :  { %1702 = vmatpush3.bf16.msra.mxu0 %v1893_v30  ;;  %v1953_v30 = vld [vmem:[%s2475_s1 + $0x218] sm:$0xff]   ;;  %v1994_v9 = vld [vmem:[%s2475_s1 + $0x390] sm:$0xff]  }
  0x21   :  { %1724 = vmatpush3.bf16.msra.mxu1 %v1894_v31  ;;  %1731 = vmatprep.subr.bf16.mxu0 %v1899_v38  ;;  %v1954_v31 = vld [vmem:[%s2475_s1 + $0x298] sm:$0xff]   ;;  %v1961_v38 = vld [vmem:[%s2475_s1 + $0x208] sm:$0xff]  }
  0x22   :  { %1753 = vmatprep.subr.bf16.mxu1 %v1900_v39  ;;  %v1962_v39 = vld [vmem:[%s2475_s1 + $0x288] sm:$0xff]  }
  0x23   :  { %521 = vmatmul.mubr.bf16.vlgmr.msra.gmra.mxu0 %v1532_v34  ;;  %v1957_v34 = vld [vmem:[%s2475_s1 + $0x210] sm:$0xff]  }
  0x24   :  { %561 = vmatmul.mubr.bf16.vlgmr.msra.gmra.mxu1 %v1534_v36  ;;  %1732 = vmatpush3.bf16.msra.mxu0 %v1901_v40  ;;  %v1959_v36 = vld [vmem:[%s2475_s1 + $0x248] sm:$0xff]   ;;  %v1963_v40 = vld [vmem:[%s2475_s1 + $0x240] sm:$0xff]  }
  0x25   :  { %1754 = vmatpush3.bf16.msra.mxu1 %v1902_v41  ;;  %1733 = vmatprep.subr.bf16.mxu0 %v1903_v42  ;;  %v1964_v41 = vld [vmem:[%s2475_s1 + $0x2c0] sm:$0xff]  }
  0x26   :  { %1755 = vmatprep.subr.bf16.mxu1 %v1904_v43  ;;  %806 = vmatprep.mubr.bf16.mxu0 %v1569_v8  ;;  %v1965_v42 = vld [vmem:[%s2475_s1 + $0x200] sm:$0xff]   ;;  %v1993_v8 = vld [vmem:[%s2475_s1 + $0x310] sm:$0xff]  }
  0x27   :  { %846 = vmatprep.mubr.bf16.mxu1 %v1571_v11  ;;  %v1966_v43 = vld [vmem:[%s2475_s1 + $0x280] sm:$0xff]   ;;  %v1996_v11 = vld [vmem:[%s2475_s1 + $0x3c8] sm:$0xff]  }
  0x28   :  { %1734 = vmatpush3.bf16.msra.mxu0 %v1905_v44  ;;  %v22_v44 = vld [vmem:[%s2476_s0 + $0x20] sm:$0xff] }
  0x29   :  { %1756 = vmatpush3.bf16.msra.mxu1 %v1906_v45  ;;  %1735 = vmatprep.subr.bf16.mxu0 %v1907_v46  ;;  %v23_v45 = vld [vmem:[%s2476_s0 + $0x28] sm:$0xff]  ;;  %v1604_v46 = vcombine.low %v22_v44, %v22_v44 }
  0x2a   :  { %1757 = vmatprep.subr.bf16.mxu1 %v1908_v47  ;;  %v1605_v47 = vcombine.high %v22_v44, %v22_v44 }
  0x2c   :  { %1736 = vmatpush3.bf16.msra.mxu0 %v1909_v48  ;;  %v1606_v48 = vcombine.low %v23_v45, %v23_v45 }
  0x2d   :  { %1758 = vmatpush3.bf16.msra.mxu1 %v1910_v49  ;;  %1737 = vmatprep.subr.bf16.mxu0 %v1911_v50  ;;  %v1607_v49 = vcombine.high %v23_v45, %v23_v45  ;;  %v1971_v50 = vld [vmem:[%s2475_s1 + $0x378] sm:$0xff]  }
  0x2e   :  { %1759 = vmatprep.subr.bf16.mxu1 %v1912_v51  ;;  %v1972_v51 = vld [vmem:[%s2475_s1 + $0x3f8] sm:$0xff]  }
  0x30   :  { %1738 = vmatpush3.bf16.msra.mxu0 %v1913_v52  ;;  %v1973_v52 = vld [vmem:[%s2475_s1 + $0x338] sm:$0xff]  }
  0x31   :  { %1760 = vmatpush3.bf16.msra.mxu1 %v1914_v53  ;;  %1739 = vmatprep.subr.bf16.mxu0 %v1915_v54  ;;  %v1974_v53 = vld [vmem:[%s2475_s1 + $0x3b8] sm:$0xff]   ;;  %v1975_v54 = vld [vmem:[%s2475_s1 + $0x370] sm:$0xff]  }
  0x32   :  { %1761 = vmatprep.subr.bf16.mxu1 %v1916_v55  ;;  %v1976_v55 = vld [vmem:[%s2475_s1 + $0x3f0] sm:$0xff]  }
  0x34   :  { %1740 = vmatpush3.bf16.msra.mxu0 %v1917_v56  ;;  %v1977_v56 = vld [vmem:[%s2475_s1 + $0x330] sm:$0xff]  }
  0x35   :  { %1762 = vmatpush3.bf16.msra.mxu1 %v1918_v57  ;;  %1741 = vmatprep.subr.bf16.mxu0 %v1919_v58  ;;  %v1978_v57 = vld [vmem:[%s2475_s1 + $0x3b0] sm:$0xff]   ;;  %v1979_v58 = vld [vmem:[%s2475_s1 + $0x368] sm:$0xff]  }
  0x36   :  { %1763 = vmatprep.subr.bf16.mxu1 %v1920_v59  ;;  %v1980_v59 = vld [vmem:[%s2475_s1 + $0x3e8] sm:$0xff]  }
  0x38   :  { %1742 = vmatpush3.bf16.msra.mxu0 %v1921_v60  ;;  %v1981_v60 = vld [vmem:[%s2475_s1 + $0x328] sm:$0xff]  }
  0x39   :  { %1764 = vmatpush3.bf16.msra.mxu1 %v1922_v61  ;;  %1743 = vmatprep.subr.bf16.mxu0 %v1923_v62  ;;  %v1982_v61 = vld [vmem:[%s2475_s1 + $0x3a8] sm:$0xff]   ;;  %v1983_v62 = vld [vmem:[%s2475_s1 + $0x360] sm:$0xff]  }
  0x3a   :  { %1765 = vmatprep.subr.bf16.mxu1 %v1924_v63  ;;  %v1984_v63 = vld [vmem:[%s2475_s1 + $0x3e0] sm:$0xff]  }
  0x3c   :  { %1744 = vmatpush3.bf16.msra.mxu0 %v1925_v0  ;;  %v1985_v0 = vld [vmem:[%s2475_s1 + $0x320] sm:$0xff]  }
  0x3d   :  { %1766 = vmatpush3.bf16.msra.mxu1 %v1926_v1  ;;  %1745 = vmatprep.subr.bf16.mxu0 %v1927_v2  ;;  %v1986_v1 = vld [vmem:[%s2475_s1 + $0x3a0] sm:$0xff]   ;;  %v1987_v2 = vld [vmem:[%s2475_s1 + $0x358] sm:$0xff]  }
  0x3e   :  { %1767 = vmatprep.subr.bf16.mxu1 %v1928_v3  ;;  %v1988_v3 = vld [vmem:[%s2475_s1 + $0x3d8] sm:$0xff]  }
  0x40   :  { %1746 = vmatpush3.bf16.msra.mxu0 %v1929_v4  ;;  %v1989_v4 = vld [vmem:[%s2475_s1 + $0x318] sm:$0xff]  }
  0x41   :  { %1768 = vmatpush3.bf16.msra.mxu1 %v1930_v5  ;;  %1775 = vmatprep.subr.bf16.mxu0 %v1935_v12  ;;  %v1990_v5 = vld [vmem:[%s2475_s1 + $0x398] sm:$0xff]   ;;  %v1997_v12 = vld [vmem:[%s2475_s1 + $0x308] sm:$0xff]  }
  0x42   :  { %1797 = vmatprep.subr.bf16.mxu1 %v1936_v13  ;;  %v1998_v13 = vld [vmem:[%s2475_s1 + $0x388] sm:$0xff]  }
  0x43   :  { %807 = vmatmul.mubr.bf16.vlgmr.msra.gmra.mxu0 %v1568_v7  ;;  %v1992_v7 = vld [vmem:[%s2475_s1 + $0x3d0] sm:$0xff]  }
  0x44   :  { %847 = vmatmul.mubr.bf16.vlgmr.msra.gmra.mxu1 %v1570_v10  ;;  %1776 = vmatpush3.bf16.msra.mxu0 %v1937_v14  ;;  %v1995_v10 = vld [vmem:[%s2475_s1 + $0x348] sm:$0xff]   ;;  %v1999_v14 = vld [vmem:[%s2475_s1 + $0x340] sm:$0xff]  }
  0x45   :  { %1798 = vmatpush3.bf16.msra.mxu1 %v1938_v15  ;;  %1777 = vmatprep.subr.bf16.mxu0 %v1939_v16  ;;  %v2000_v15 = vld [vmem:[%s2475_s1 + $0x3c0] sm:$0xff]  }
  0x46   :  { %1799 = vmatprep.subr.bf16.mxu1 %v1940_v17  ;;  %1092 = vmatprep.mubr.bf16.mxu0 %v1605_v47  ;;  %v2001_v16 = vld [vmem:[%s2475_s1 + $0x300] sm:$0xff]  }
  0x47   :  { %1132 = vmatprep.mubr.bf16.mxu1 %v1607_v49  ;;  %v2002_v17 = vld [vmem:[%s2475_s1 + $0x380] sm:$0xff]  }
  0x48   :  { %1778 = vmatpush3.bf16.msra.mxu0 %v1941_v18  ;;  %v24_v18 = vld [vmem:[%s2476_s0 + $0x30] sm:$0xff] }
  0x49   :  { %1800 = vmatpush3.bf16.msra.mxu1 %v1942_v19  ;;  %1779 = vmatprep.subr.bf16.mxu0 %v1943_v20  ;;  %v25_v19 = vld [vmem:[%s2476_s0 + $0x38] sm:$0xff]  ;;  %v1640_v20 = vcombine.low %v24_v18, %v24_v18 }
  0x4a   :  { %1801 = vmatprep.subr.bf16.mxu1 %v1944_v21  ;;  %v1641_v21 = vcombine.high %v24_v18, %v24_v18 }
  0x4c   :  { %1780 = vmatpush3.bf16.msra.mxu0 %v1945_v22  ;;  %v1642_v22 = vcombine.low %v25_v19, %v25_v19 }
  0x4d   :  { %1802 = vmatpush3.bf16.msra.mxu1 %v1946_v23  ;;  %1781 = vmatprep.subr.bf16.mxu0 %v1947_v24  ;;  %v1643_v23 = vcombine.high %v25_v19, %v25_v19 }
  0x4e   :  { %1803 = vmatprep.subr.bf16.mxu1 %v1948_v25 }
  0x50   :  { %1782 = vmatpush3.bf16.msra.mxu0 %v1949_v26 }
  0x51   :  { %1804 = vmatpush3.bf16.msra.mxu1 %v1950_v27  ;;  %1783 = vmatprep.subr.bf16.mxu0 %v1951_v28 }
  0x52   :  { %1805 = vmatprep.subr.bf16.mxu1 %v1952_v29 }
  0x54   :  { %1784 = vmatpush3.bf16.msra.mxu0 %v1953_v30 }
  0x55   :  { %1806 = vmatpush3.bf16.msra.mxu1 %v1954_v31  ;;  %1785 = vmatprep.subr.bf16.mxu0 %v1955_v32 }
  0x56   :  { %1807 = vmatprep.subr.bf16.mxu1 %v1956_v33 }
  0x58   :  { %1786 = vmatpush3.bf16.msra.mxu0 %v1957_v34 }
  0x59   :  { %1808 = vmatpush3.bf16.msra.mxu1 %v1958_v35  ;;  %1787 = vmatprep.subr.bf16.mxu0 %v1959_v36 }
  0x5a   :  { %1809 = vmatprep.subr.bf16.mxu1 %v1960_v37 }
  0x5c   :  { %1788 = vmatpush3.bf16.msra.mxu0 %v1961_v38 }
  0x5d   :  { %1810 = vmatpush3.bf16.msra.mxu1 %v1962_v39  ;;  %1789 = vmatprep.subr.bf16.mxu0 %v1963_v40 }
  0x5e   :  { %1811 = vmatprep.subr.bf16.mxu1 %v1964_v41 }
  0x60   :  { %1790 = vmatpush3.bf16.msra.mxu0 %v1965_v42 }
  0x61   :  { %1812 = vmatpush3.bf16.msra.mxu1 %v1966_v43  ;;  %1819 = vmatprep.subr.bf16.mxu0 %v1971_v50 }
  0x62   :  { %1841 = vmatprep.subr.bf16.mxu1 %v1972_v51 }
  0x63   :  { %1093 = vmatmul.mubr.bf16.vlgmr.msra.gmra.mxu0 %v1604_v46 }
  0x64   :  { %1133 = vmatmul.mubr.bf16.vlgmr.msra.gmra.mxu1 %v1606_v48  ;;  %1820 = vmatpush3.bf16.msra.mxu0 %v1973_v52 }
  0x65   :  { %1842 = vmatpush3.bf16.msra.mxu1 %v1974_v53  ;;  %1821 = vmatprep.subr.bf16.mxu0 %v1975_v54 }
  0x66   :  { %1843 = vmatprep.subr.bf16.mxu1 %v1976_v55  ;;  %1378 = vmatprep.mubr.bf16.mxu0 %v1641_v21 }
  0x67   :  { %1418 = vmatprep.mubr.bf16.mxu1 %v1643_v23 }
  0x68   :  { %1822 = vmatpush3.bf16.msra.mxu0 %v1977_v56 }
  0x69   :  { %1844 = vmatpush3.bf16.msra.mxu1 %v1978_v57  ;;  %1823 = vmatprep.subr.bf16.mxu0 %v1979_v58 }
  0x6a   :  { %1845 = vmatprep.subr.bf16.mxu1 %v1980_v59 }
  0x6c   :  { %1824 = vmatpush3.bf16.msra.mxu0 %v1981_v60 }
  0x6d   :  { %1846 = vmatpush3.bf16.msra.mxu1 %v1982_v61  ;;  %1825 = vmatprep.subr.bf16.mxu0 %v1983_v62 }
  0x6e   :  { %1847 = vmatprep.subr.bf16.mxu1 %v1984_v63 }
  0x70   :  { %1826 = vmatpush3.bf16.msra.mxu0 %v1985_v0 }
  0x71   :  { %1848 = vmatpush3.bf16.msra.mxu1 %v1986_v1  ;;  %1827 = vmatprep.subr.bf16.mxu0 %v1987_v2 }
  0x72   :  { %1849 = vmatprep.subr.bf16.mxu1 %v1988_v3 }
  0x74   :  { %1828 = vmatpush3.bf16.msra.mxu0 %v1989_v4 }
  0x75   :  { %1850 = vmatpush3.bf16.msra.mxu1 %v1990_v5  ;;  %1829 = vmatprep.subr.bf16.mxu0 %v1991_v6 }
  0x76   :  { %1851 = vmatprep.subr.bf16.mxu1 %v1992_v7 }
  0x78   :  { %1830 = vmatpush3.bf16.msra.mxu0 %v1993_v8 }
  0x79   :  { %1852 = vmatpush3.bf16.msra.mxu1 %v1994_v9  ;;  %1831 = vmatprep.subr.bf16.mxu0 %v1995_v10 }
  0x7a   :  { %1853 = vmatprep.subr.bf16.mxu1 %v1996_v11 }
  0x7c   :  { %1832 = vmatpush3.bf16.msra.mxu0 %v1997_v12 }
  0x7d   :  { %1854 = vmatpush3.bf16.msra.mxu1 %v1998_v13  ;;  %1833 = vmatprep.subr.bf16.mxu0 %v1999_v14 }
  0x7e   :  { %1855 = vmatprep.subr.bf16.mxu1 %v2000_v15 }
  0x80   :  { %1834 = vmatpush3.bf16.msra.mxu0 %v2001_v16 }
  0x81   :  { %1856 = vmatpush3.bf16.msra.mxu1 %v2002_v17 }
  0x83   :  { %1379 = vmatmul.mubr.bf16.vlgmr.msra.gmra.mxu0 %v1640_v20 }
  0x84   :  { %1419 = vmatmul.mubr.bf16.vlgmr.msra.gmra.mxu1 %v1642_v22 }
  0xe3   :  { %v1703_v24 = vpop.f32.mrf.mxu0 }
  0xe4   :  { %v1725_v25 = vpop.f32.mrf.mxu1 }
  0xe5   :  { %v1704_v26 = vpop.f32.mrf.mxu0 }
  0xe6   :  { %v1726_v27 = vpop.f32.mrf.mxu1  ;;  %v1705_v28 = vadd.f32 %v1704_v26, %v1703_v24 }
  0xe7   :  { %v1727_v29 = vadd.f32 %v1726_v27, %v1725_v25  ;;  %v1706_v30 = vpop.f32.mrf.mxu0 }
  0xe8   :  { %v1728_v31 = vpop.f32.mrf.mxu1 }
  0xe9   :  { %v2442_v32 = vadd.f32 %v1727_v29, %v1705_v28  ;;  %v1707_v33 = vpop.f32.mrf.mxu0 }
  0xea   :  { %v1729_v34 = vpop.f32.mrf.mxu1 }
  0xeb   :  { %v1453_v35 = vmul.f32 %v2442_v32, %v2442_v32  ;;  %v1426_v36 = vrot.slane %v2442_v32, 4 }
  0xed   :  { %v1457_v37 = vrot.slane %v1453_v35, 4  ;;  %v1427_v40 = vadd.f32 %v1426_v36, %v2442_v32 }
  0xef   :  { %v1458_v43 = vadd.f32 %v1457_v37, %v1453_v35  ;;  %v1428_v48 = vrot.slane %v1427_v40, 2 }
  0xf1   :  { %v1459_v52 = vrot.slane %v1458_v43, 2  ;;  %v1429_v55 = vadd.f32 %v1428_v48, %v1427_v40 }
  0xf3   :  { %v1460_v58 = vadd.f32 %v1459_v52, %v1458_v43  ;;  %v1430_v61 = vrot.slane %v1429_v55, 1 }
  0xf5   :  { %v1461_v0 = vrot.slane %v1460_v58, 1  ;;  %v1431_v3 = vadd.f32 %v1430_v61, %v1429_v55 }
  0xf7   :  { %v1462_v6 = vadd.f32 %v1461_v0, %v1460_v58 }
 0x103   :  { %v1747_v38 = vpop.f32.mrf.mxu0 }
 0x104   :  { %v1769_v39 = vpop.f32.mrf.mxu1 }
 0x105   :  { %v1748_v41 = vpop.f32.mrf.mxu0 }
 0x106   :  { %v1770_v42 = vpop.f32.mrf.mxu1  ;;  %v1749_v44 = vadd.f32 %v1748_v41, %v1747_v38 }
 0x107   :  { %v1771_v45 = vadd.f32 %v1770_v42, %v1769_v39  ;;  %v1750_v46 = vpop.f32.mrf.mxu0 }
 0x108   :  { %v1772_v47 = vpop.f32.mrf.mxu1 }
 0x109   :  { %v2448_v49 = vadd.f32 %v1771_v45, %v1749_v44  ;;  %v1751_v50 = vpop.f32.mrf.mxu0 }
 0x10a   :  { %v1773_v51 = vpop.f32.mrf.mxu1 }
 0x10b   :  { %v1432_v53 = vrot.slane %v2448_v49, 4  ;;  %v1454_v54 = vmul.f32 %v2448_v49, %v2448_v49 }
 0x10d   :  { %v1433_v56 = vadd.f32 %v1432_v53, %v2448_v49  ;;  %v1463_v57 = vrot.slane %v1454_v54, 4 }
 0x10f   :  { %v1434_v59 = vrot.slane %v1433_v56, 2  ;;  %v1464_v60 = vadd.f32 %v1463_v57, %v1454_v54 }
 0x111   :  { %v1435_v62 = vadd.f32 %v1434_v59, %v1433_v56  ;;  %v1465_v63 = vrot.slane %v1464_v60, 2 }
 0x113   :  { %v1436_v1 = vrot.slane %v1435_v62, 1  ;;  %v1466_v2 = vadd.f32 %v1465_v63, %v1464_v60 }
 0x115   :  { %v1437_v4 = vadd.f32 %v1436_v1, %v1435_v62  ;;  %v1467_v5 = vrot.slane %v1466_v2, 1 }
 0x117   :  { %v1450_v7 = vadd.f32 %v1437_v4, %v1431_v3  ;;  %v1468_v8 = vadd.f32 %v1467_v5, %v1466_v2 }
 0x119   :  { %v1481_v9 = vadd.f32 %v1468_v8, %v1462_v6  ;;  %v1497_v6 = vlaneseq }
 0x11b   :  { %v1498_v8 = vshrl.u32 %v1497_v6, 7 }
 0x123   :  { %v1791_v10 = vpop.f32.mrf.mxu0 }
 0x124   :  { %v1813_v11 = vpop.f32.mrf.mxu1 }
 0x125   :  { %v1792_v12 = vpop.f32.mrf.mxu0 }
 0x126   :  { %v1814_v13 = vpop.f32.mrf.mxu1  ;;  %v1793_v18 = vadd.f32 %v1792_v12, %v1791_v10  ;;  %v1489_v10 = vld [vmem:[%s2477_s2] sm:$0x1] }
 0x127   :  { %v1794_v14 = vpop.f32.mrf.mxu0  ;;  %v1815_v19 = vadd.f32 %v1814_v13, %v1813_v11 }
 0x128   :  { %v1816_v15 = vpop.f32.mrf.mxu1 }
 0x129   :  { %v1795_v16 = vpop.f32.mrf.mxu0  ;;  %v2454_v20 = vadd.f32 %v1815_v19, %v1793_v18 }
 0x12a   :  { %v1817_v17 = vpop.f32.mrf.mxu1 }
 0x12b   :  { %v1455_v21 = vmul.f32 %v2454_v20, %v2454_v20  ;;  %v1438_v22 = vrot.slane %v2454_v20, 4 }
 0x12d   :  { %v1469_v23 = vrot.slane %v1455_v21, 4  ;;  %v1439_v24 = vadd.f32 %v1438_v22, %v2454_v20 }
 0x12f   :  { %v1470_v25 = vadd.f32 %v1469_v23, %v1455_v21  ;;  %v1440_v28 = vrot.slane %v1439_v24, 2 }
 0x131   :  { %v1471_v33 = vrot.slane %v1470_v25, 2  ;;  %v1441_v37 = vadd.f32 %v1440_v28, %v1439_v24 }
 0x133   :  { %v1472_v41 = vadd.f32 %v1471_v33, %v1470_v25  ;;  %v1442_v44 = vrot.slane %v1441_v37, 1 }
 0x135   :  { %v1473_v47 = vrot.slane %v1472_v41, 1  ;;  %v1443_v51 = vadd.f32 %v1442_v44, %v1441_v37 }
 0x137   :  { %v1474_v54 = vadd.f32 %v1473_v47, %v1472_v41  ;;  %v1451_v57 = vadd.f32 %v1450_v7, %v1443_v51  ;;  %v1499_v7 = vsub.s32 0, %v1498_v8 }
 0x139   :  { %v1482_v60 = vadd.f32 %v1481_v9, %v1474_v54  ;;  %v1493_v9 = vld [vmem:[%s2478_s3] sm:$0x1] }
 0x143   :  { %v1835_v26 = vpop.f32.mrf.mxu0 }
 0x144   :  { %v1857_v27 = vpop.f32.mrf.mxu1 }
 0x145   :  { %v1836_v29 = vpop.f32.mrf.mxu0 }
 0x146   :  { %v1837_v30 = vadd.f32 %v1836_v29, %v1835_v26  ;;  %v1858_v31 = vpop.f32.mrf.mxu1 }
 0x147   :  { %v1859_v34 = vadd.f32 %v1858_v31, %v1857_v27  ;;  %v1838_v35 = vpop.f32.mrf.mxu0 }
 0x148   :  { %v1860_v36 = vpop.f32.mrf.mxu1 }
 0x149   :  { %v1421_v38 = vadd.f32 %v1859_v34, %v1837_v30  ;;  %v1839_v39 = vpop.f32.mrf.mxu0 }
 0x14a   :  { %v1861_v40 = vpop.f32.mrf.mxu1 }
 0x14b   :  { %v1444_v42 = vrot.slane %v1421_v38, 4  ;;  %v1456_v43 = vmul.f32 %v1421_v38, %v1421_v38 }
 0x14d   :  { %v1445_v45 = vadd.f32 %v1444_v42, %v1421_v38  ;;  %v1475_v46 = vrot.slane %v1456_v43, 4 }
 0x14f   :  { %v1446_v48 = vrot.slane %v1445_v45, 2  ;;  %v1476_v50 = vadd.f32 %v1475_v46, %v1456_v43 }
 0x151   :  { %v1447_v52 = vadd.f32 %v1446_v48, %v1445_v45  ;;  %v1477_v53 = vrot.slane %v1476_v50, 2 }
 0x153   :  { %v1448_v55 = vrot.slane %v1447_v52, 1  ;;  %v1478_v56 = vadd.f32 %v1477_v53, %v1476_v50 }
 0x155   :  { %v1449_v58 = vadd.f32 %v1448_v55, %v1447_v52  ;;  %v1479_v59 = vrot.slane %v1478_v56, 1 }
 0x157   :  { %v1452_v61 = vadd.f32 %v1451_v57, %v1449_v58  ;;  %v1480_v62 = vadd.f32 %v1479_v59, %v1478_v56 }
 0x159   :  { %v1483_v63 = vadd.f32 %v1482_v60, %v1480_v62  ;;  %v1484_v0 = vmul.f32 0.03125, %v1452_v61 }
 0x15b   :  { %v1485_v1 = vmul.f32 0.03125, %v1483_v63  ;;  %v1486_v2 = vmul.f32 %v1484_v0, %v1484_v0 }
 0x15d   :  { %v1487_v3 = vsub.f32 %v1485_v1, %v1486_v2 }
 0x15f   :  { %v1488_v4 = vmax.f32 %v1487_v3, 0.0 }
 0x161   :  { %v1490_v5 = vadd.f32 1e-05, %v1488_v4 }
 0x163   :  { %2007 = vrsqrt.f32 %v1490_v5 }
 0x170   :  { %v2008_v11 = vpop.eup %2007 }
 0x171   :  { %v1492_v12 = vmul.f32 %v2008_v11, %v1489_v10 }
 0x173   :  { %v1494_v13 = vmul.f32 %v1492_v12, %v1484_v0  ;;  %v1500_v14 = vrot.slane %v1492_v12, %v1499_v7 }
 0x175   :  { %v1495_v15 = vsub.f32 %v1493_v9, %v1494_v13  ;;  %v1502_v16 = vmul.f32 %v1500_v14, %v2442_v32  ;;  %v1503_v17 = vmul.f32 %v1500_v14, %v2448_v49  ;;  %v1504_v18 = vmul.f32 %v1500_v14, %v2454_v20 }
 0x176   :  { %v1505_v19 = vmul.f32 %v1500_v14, %v1421_v38 }
 0x177   :  { %v1510_v21 = vrot.slane %v1495_v15, %v1499_v7 }
 0x179   :  { %v1512_v22 = vadd.f32 %v1510_v21, %v1502_v16  ;;  %v1513_v23 = vadd.f32 %v1510_v21, %v1503_v17  ;;  %v1514_v24 = vadd.f32 %v1510_v21, %v1504_v18  ;;  %v1515_v25 = vadd.f32 %v1510_v21, %v1505_v19 }
 0x17b   :  { %v1516_v26 = vmax.f32 %v1512_v22, 0.0  ;;  %v1517_v27 = vmax.f32 %v1513_v23, 0.0  ;;  %v1518_v28 = vmax.f32 %v1514_v24, 0.0  ;;  %v1519_v29 = vmax.f32 %v1515_v25, 0.0 }
 0x17d   :  { %v1679_v30 = vpack.c.bf16 %v1517_v27, %v1516_v26  ;;  %v1684_v31 = vpack.c.bf16 %v1519_v29, %v1518_v28 }
 0x17f   :  { %1680 = vst [vmem:[%s2479_s4] sm:$0xff] %v1679_v30   ;;  %1686 = vst [vmem:[%s2479_s4 + $0x8] sm:$0xff] %v1684_v31  }

// kernel: generator_forward.7
= control target key start
LH: loop header
LB: loop body
LE: loop exit
PB: predicated region body
PF: predicated region fallthrough
CT: control target
= control target key end

     0   :  { %s1824_s1 = inlined_call_operand.vmem [shape: bf16[4,256,128], index: 1, kind: input, shape index: {}]   ;;  %s1825_s0 = inlined_call_operand.vmem [shape: bf16[4,32,256], index: 0, kind: input, shape index: {}]   ;;  %s1826_s2 = inlined_call_operand.vmem [shape: f32[1,1,128], index: 2, kind: input, shape index: {}]   ;;  %s1827_s3 = inlined_call_operand.vmem [shape: f32[1,1,128], index: 3, kind: input, shape index: {}]   ;;  %s1828_s4 = inlined_call_operand.vmem [shape: bf16[4,32,128], index: 4, kind: output, shape index: {}]  }
   0x1   :  { %v1343_v0 = vld [vmem:[%s1824_s1 + $0x78] sm:$0xff]   ;;  %v1347_v4 = vld [vmem:[%s1824_s1 + $0x70] sm:$0xff]   ;;  %v1351_v8 = vld [vmem:[%s1824_s1 + $0x68] sm:$0xff]  }
   0x2   :  { %v1344_v1 = vld [vmem:[%s1824_s1 + $0xf8] sm:$0xff]   ;;  %1231 = vmatprep.subr.bf16.mxu0 %v1343_v0  ;;  %v1348_v5 = vld [vmem:[%s1824_s1 + $0xf0] sm:$0xff]   ;;  %v1352_v9 = vld [vmem:[%s1824_s1 + $0xe8] sm:$0xff]  }
   0x3   :  { %v1345_v2 = vld [vmem:[%s1824_s1 + $0x38] sm:$0xff]   ;;  %1259 = vmatprep.subr.bf16.mxu1 %v1344_v1  ;;  %v1349_v6 = vld [vmem:[%s1824_s1 + $0x30] sm:$0xff]   ;;  %v1353_v10 = vld [vmem:[%s1824_s1 + $0x28] sm:$0xff]  }
   0x4   :  { %v1346_v3 = vld [vmem:[%s1824_s1 + $0xb8] sm:$0xff]   ;;  %1232 = vmatpush3.bf16.msra.mxu0 %v1345_v2  ;;  %v1350_v7 = vld [vmem:[%s1824_s1 + $0xb0] sm:$0xff]   ;;  %v1354_v11 = vld [vmem:[%s1824_s1 + $0xa8] sm:$0xff]  }
   0x5   :  { %1260 = vmatpush3.bf16.msra.mxu1 %v1346_v3  ;;  %1233 = vmatprep.subr.bf16.mxu0 %v1347_v4  ;;  %v1355_v12 = vld [vmem:[%s1824_s1 + $0x60] sm:$0xff]   ;;  %v1359_v16 = vld [vmem:[%s1824_s1 + $0x58] sm:$0xff]   ;;  %v1363_v20 = vld [vmem:[%s1824_s1 + $0x50] sm:$0xff]  }
   0x6   :  { %1261 = vmatprep.subr.bf16.mxu1 %v1348_v5  ;;  %v1356_v13 = vld [vmem:[%s1824_s1 + $0xe0] sm:$0xff]   ;;  %v1360_v17 = vld [vmem:[%s1824_s1 + $0xd8] sm:$0xff]   ;;  %v1364_v21 = vld [vmem:[%s1824_s1 + $0xd0] sm:$0xff]  }
   0x7   :  { %v1357_v14 = vld [vmem:[%s1824_s1 + $0x20] sm:$0xff]   ;;  %v1361_v18 = vld [vmem:[%s1824_s1 + $0x18] sm:$0xff]   ;;  %v1365_v22 = vld [vmem:[%s1824_s1 + $0x10] sm:$0xff]  }
   0x8   :  { %1234 = vmatpush3.bf16.msra.mxu0 %v1349_v6  ;;  %v1358_v15 = vld [vmem:[%s1824_s1 + $0xa0] sm:$0xff]   ;;  %v1362_v19 = vld [vmem:[%s1824_s1 + $0x98] sm:$0xff]   ;;  %v1366_v23 = vld [vmem:[%s1824_s1 + $0x90] sm:$0xff]  }
   0x9   :  { %1262 = vmatpush3.bf16.msra.mxu1 %v1350_v7  ;;  %1235 = vmatprep.subr.bf16.mxu0 %v1351_v8  ;;  %v1367_v24 = vld [vmem:[%s1824_s1 + $0x48] sm:$0xff]   ;;  %v1371_v28 = vld [vmem:[%s1824_s1 + $0x40] sm:$0xff]   ;;  %v1381_v36 = vld [vmem:[%s1824_s1 + $0x178] sm:$0xff]  }
   0xa   :  { %1263 = vmatprep.subr.bf16.mxu1 %v1352_v9  ;;  %v1368_v25 = vld [vmem:[%s1824_s1 + $0xc8] sm:$0xff]   ;;  %v1372_v29 = vld [vmem:[%s1824_s1 + $0xc0] sm:$0xff]   ;;  %v1382_v37 = vld [vmem:[%s1824_s1 + $0x1f8] sm:$0xff]  }
   0xb   :  { %v1369_v26 = vld [vmem:[%s1824_s1 + $0x8] sm:$0xff]   ;;  %v1373_v30 = vld [vmem:[%s1824_s1] sm:$0xff]   ;;  %v1383_v38 = vld [vmem:[%s1824_s1 + $0x138] sm:$0xff]  }
   0xc   :  { %1236 = vmatpush3.bf16.msra.mxu0 %v1353_v10  ;;  %v1370_v27 = vld [vmem:[%s1824_s1 + $0x88] sm:$0xff]   ;;  %v1374_v31 = vld [vmem:[%s1824_s1 + $0x80] sm:$0xff]   ;;  %v1384_v39 = vld [vmem:[%s1824_s1 + $0x1b8] sm:$0xff]  }
   0xd   :  { %1264 = vmatpush3.bf16.msra.mxu1 %v1354_v11  ;;  %1237 = vmatprep.subr.bf16.mxu0 %v1355_v12  ;;  %v1375_v32 = vld [vmem:[%s1825_s0] ss:$8 sps:$4 sm:$0xff]   ;;  %v1377_v33 = vld [vmem:[%s1825_s0 + $0x4] ss:$8 sps:$4 sm:$0xff]   ;;  %v1385_v40 = vld [vmem:[%s1824_s1 + $0x170] sm:$0xff]  }
   0xe   :  { %1265 = vmatprep.subr.bf16.mxu1 %v1356_v13  ;;  %v1378_v34 = vld [vmem:[%s1825_s0 + $0x20] ss:$8 sps:$4 sm:$0xff]   ;;  %v1380_v35 = vld [vmem:[%s1825_s0 + $0x24] ss:$8 sps:$4 sm:$0xff]   ;;  %310 = vmatprep.mubr.bf16.mxu0 %v1377_v33  ;;  %v1386_v41 = vld [vmem:[%s1824_s1 + $0x1f0] sm:$0xff]  }
   0xf   :  { %475 = vmatprep.mubr.bf16.mxu1 %v1380_v35  ;;  %v1387_v42 = vld [vmem:[%s1824_s1 + $0x130] sm:$0xff]   ;;  %v1395_v48 = vld [vmem:[%s1824_s1 + $0x168] sm:$0xff]   ;;  %v1399_v52 = vld [vmem:[%s1824_s1 + $0x160] sm:$0xff]  }
  0x10   :  { %1238 = vmatpush3.bf16.msra.mxu0 %v1357_v14  ;;  %v1388_v43 = vld [vmem:[%s1824_s1 + $0x1b0] sm:$0xff]   ;;  %v1396_v49 = vld [vmem:[%s1824_s1 + $0x1e8] sm:$0xff]   ;;  %v1400_v53 = vld [vmem:[%s1824_s1 + $0x1e0] sm:$0xff]  }
  0x11   :  { %1266 = vmatpush3.bf16.msra.mxu1 %v1358_v15  ;;  %1239 = vmatprep.subr.bf16.mxu0 %v1359_v16  ;;  %v1389_v44 = vld [vmem:[%s1825_s0 + $0x14] ss:$8 sps:$4 sm:$0xff]   ;;  %v1393_v46 = vld [vmem:[%s1825_s0 + $0x10] ss:$8 sps:$4 sm:$0xff]   ;;  %v1397_v50 = vld [vmem:[%s1824_s1 + $0x128] sm:$0xff]  }
  0x12   :  { %1267 = vmatprep.subr.bf16.mxu1 %v1360_v17  ;;  %v1391_v45 = vld [vmem:[%s1825_s0 + $0x34] ss:$8 sps:$4 sm:$0xff]   ;;  %v1394_v47 = vld [vmem:[%s1825_s0 + $0x30] ss:$8 sps:$4 sm:$0xff]   ;;  %v1398_v51 = vld [vmem:[%s1824_s1 + $0x1a8] sm:$0xff]  }
  0x13   :  { %v1401_v54 = vld [vmem:[%s1824_s1 + $0x120] sm:$0xff]   ;;  %v1403_v56 = vld [vmem:[%s1824_s1 + $0x158] sm:$0xff]   ;;  %v1407_v60 = vld [vmem:[%s1824_s1 + $0x150] sm:$0xff]  }
  0x14   :  { %1240 = vmatpush3.bf16.msra.mxu0 %v1361_v18  ;;  %v1402_v55 = vld [vmem:[%s1824_s1 + $0x1a0] sm:$0xff]   ;;  %v1404_v57 = vld [vmem:[%s1824_s1 + $0x1d8] sm:$0xff]   ;;  %v1408_v61 = vld [vmem:[%s1824_s1 + $0x1d0] sm:$0xff]  }
  0x15   :  { %1268 = vmatpush3.bf16.msra.mxu1 %v1362_v19  ;;  %1241 = vmatprep.subr.bf16.mxu0 %v1363_v20  ;;  %v1405_v58 = vld [vmem:[%s1824_s1 + $0x118] sm:$0xff]   ;;  %v1409_v62 = vld [vmem:[%s1824_s1 + $0x110] sm:$0xff]   ;;  %v1411_v0 = vld [vmem:[%s1824_s1 + $0x148] sm:$0xff]  }
  0x16   :  { %1269 = vmatprep.subr.bf16.mxu1 %v1364_v21  ;;  %v1406_v59 = vld [vmem:[%s1824_s1 + $0x198] sm:$0xff]   ;;  %v1410_v63 = vld [vmem:[%s1824_s1 + $0x190] sm:$0xff]   ;;  %v1412_v1 = vld [vmem:[%s1824_s1 + $0x1c8] sm:$0xff]  }
  0x17   :  { %v1413_v2 = vld [vmem:[%s1824_s1 + $0x108] sm:$0xff]   ;;  %v1415_v4 = vld [vmem:[%s1824_s1 + $0x140] sm:$0xff]   ;;  %v1425_v12 = vld [vmem:[%s1825_s0 + $0x54] ss:$8 sps:$4 sm:$0xff]  }
  0x18   :  { %1242 = vmatpush3.bf16.msra.mxu0 %v1365_v22  ;;  %v1414_v3 = vld [vmem:[%s1824_s1 + $0x188] sm:$0xff]   ;;  %v1416_v5 = vld [vmem:[%s1824_s1 + $0x1c0] sm:$0xff]   ;;  %v1427_v13 = vld [vmem:[%s1825_s0 + $0x74] ss:$8 sps:$4 sm:$0xff]  }
  0x19   :  { %1270 = vmatpush3.bf16.msra.mxu1 %v1366_v23  ;;  %1243 = vmatprep.subr.bf16.mxu0 %v1367_v24  ;;  %v1417_v6 = vld [vmem:[%s1824_s1 + $0x100] sm:$0xff]   ;;  %v1429_v14 = vld [vmem:[%s1825_s0 + $0x50] ss:$8 sps:$4 sm:$0xff]  }
  0x1a   :  { %1271 = vmatprep.subr.bf16.mxu1 %v1368_v25  ;;  %v1418_v7 = vld [vmem:[%s1824_s1 + $0x180] sm:$0xff]   ;;  %v1430_v15 = vld [vmem:[%s1825_s0 + $0x70] ss:$8 sps:$4 sm:$0xff]  }
  0x1b   :  { %v1419_v8 = vld [vmem:[%s1825_s0 + $0x40] ss:$8 sps:$4 sm:$0xff]   ;;  %v1421_v9 = vld [vmem:[%s1825_s0 + $0x44] ss:$8 sps:$4 sm:$0xff]  }
  0x1c   :  { %1244 = vmatpush3.bf16.msra.mxu0 %v1369_v26  ;;  %v1422_v10 = vld [vmem:[%s1825_s0 + $0x60] ss:$8 sps:$4 sm:$0xff]   ;;  %v1424_v11 = vld [vmem:[%s1825_s0 + $0x64] ss:$8 sps:$4 sm:$0xff]  }
  0x1d   :  { %1272 = vmatpush3.bf16.msra.mxu1 %v1370_v27  ;;  %1245 = vmatprep.subr.bf16.mxu0 %v1371_v28 }
  0x1e   :  { %1273 = vmatprep.subr.bf16.mxu1 %v1372_v29 }
  0x20   :  { %1246 = vmatpush3.bf16.msra.mxu0 %v1373_v30 }
  0x21   :  { %1274 = vmatpush3.bf16.msra.mxu1 %v1374_v31  ;;  %1287 = vmatprep.subr.bf16.mxu0 %v1381_v36 }
  0x22   :  { %1315 = vmatprep.subr.bf16.mxu1 %v1382_v37 }
  0x23   :  { %311 = vmatmul.mubr.bf16.vlgmr.msra.gmra.mxu0 %v1375_v32 }
  0x24   :  { %476 = vmatmul.mubr.bf16.vlgmr.msra.gmra.mxu1 %v1378_v34  ;;  %1288 = vmatpush3.bf16.msra.mxu0 %v1383_v38 }
  0x25   :  { %1316 = vmatpush3.bf16.msra.mxu1 %v1384_v39  ;;  %1289 = vmatprep.subr.bf16.mxu0 %v1385_v40 }
  0x26   :  { %1317 = vmatprep.subr.bf16.mxu1 %v1386_v41  ;;  %318 = vmatprep.mubr.bf16.mxu0 %v1389_v44 }
  0x27   :  { %483 = vmatprep.mubr.bf16.mxu1 %v1391_v45 }
  0x28   :  { %1290 = vmatpush3.bf16.msra.mxu0 %v1387_v42 }
  0x29   :  { %1318 = vmatpush3.bf16.msra.mxu1 %v1388_v43  ;;  %1291 = vmatprep.subr.bf16.mxu0 %v1395_v48 }
  0x2a   :  { %1319 = vmatprep.subr.bf16.mxu1 %v1396_v49 }
  0x2b   :  { %319 = vmatmul.mubr.bf16.gmra.mxu0 %v1393_v46 }
  0x2c   :  { %484 = vmatmul.mubr.bf16.gmra.mxu1 %v1394_v47  ;;  %1292 = vmatpush3.bf16.msra.mxu0 %v1397_v50 }
  0x2d   :  { %1320 = vmatpush3.bf16.msra.mxu1 %v1398_v51  ;;  %1293 = vmatprep.subr.bf16.mxu0 %v1399_v52 }
  0x2e   :  { %1321 = vmatprep.subr.bf16.mxu1 %v1400_v53  ;;  %640 = vmatprep.mubr.bf16.mxu0 %v1421_v9 }
  0x2f   :  { %805 = vmatprep.mubr.bf16.mxu1 %v1424_v11 }
  0x30   :  { %1294 = vmatpush3.bf16.msra.mxu0 %v1401_v54 }
  0x31   :  { %1322 = vmatpush3.bf16.msra.mxu1 %v1402_v55  ;;  %1295 = vmatprep.subr.bf16.mxu0 %v1403_v56 }
  0x32   :  { %1323 = vmatprep.subr.bf16.mxu1 %v1404_v57 }
  0x34   :  { %1296 = vmatpush3.bf16.msra.mxu0 %v1405_v58 }
  0x35   :  { %1324 = vmatpush3.bf16.msra.mxu1 %v1406_v59  ;;  %1297 = vmatprep.subr.bf16.mxu0 %v1407_v60 }
  0x36   :  { %1325 = vmatprep.subr.bf16.mxu1 %v1408_v61 }
  0x38   :  { %1298 = vmatpush3.bf16.msra.mxu0 %v1409_v62 }
  0x39   :  { %1326 = vmatpush3.bf16.msra.mxu1 %v1410_v63  ;;  %1299 = vmatprep.subr.bf16.mxu0 %v1411_v0 }
  0x3a   :  { %1327 = vmatprep.subr.bf16.mxu1 %v1412_v1 }
  0x3c   :  { %1300 = vmatpush3.bf16.msra.mxu0 %v1413_v2 }
  0x3d   :  { %1328 = vmatpush3.bf16.msra.mxu1 %v1414_v3  ;;  %1301 = vmatprep.subr.bf16.mxu0 %v1415_v4 }
  0x3e   :  { %1329 = vmatprep.subr.bf16.mxu1 %v1416_v5 }
  0x40   :  { %1302 = vmatpush3.bf16.msra.mxu0 %v1417_v6 }
  0x41   :  { %1330 = vmatpush3.bf16.msra.mxu1 %v1418_v7 }
  0x43   :  { %641 = vmatmul.mubr.bf16.vlgmr.msra.gmra.mxu0 %v1419_v8 }
  0x44   :  { %806 = vmatmul.mubr.bf16.vlgmr.msra.gmra.mxu1 %v1422_v10  ;;  %648 = vmatprep.mubr.bf16.mxu0 %v1425_v12 }
  0x45   :  { %813 = vmatprep.mubr.bf16.mxu1 %v1427_v13 }
  0x4b   :  { %649 = vmatmul.mubr.bf16.gmra.mxu0 %v1429_v14 }
  0x4c   :  { %814 = vmatmul.mubr.bf16.gmra.mxu1 %v1430_v15 }
  0xe3   :  { %v1247_v16 = vpop.f32.mrf.mxu0 }
  0xe4   :  { %v1275_v17 = vpop.f32.mrf.mxu1 }
  0xe5   :  { %v1248_v18 = vpop.f32.mrf.mxu0 }
  0xe6   :  { %v1276_v19 = vpop.f32.mrf.mxu1  ;;  %v1702_v33 = vadd.f32 %v1248_v18, %v1247_v16 }
  0xe7   :  { %v1250_v20 = vpop.f32.mrf.mxu0  ;;  %v1706_v36 = vadd.f32 %v1276_v19, %v1275_v17 }
  0xe8   :  { %v1278_v21 = vpop.f32.mrf.mxu1  ;;  %v861_v42 = vmul.f32 %v1702_v33, %v1702_v33 }
  0xe9   :  { %v1251_v22 = vpop.f32.mrf.mxu0  ;;  %v865_v45 = vmul.f32 %v1706_v36, %v1706_v36 }
  0xea   :  { %v1279_v23 = vpop.f32.mrf.mxu1  ;;  %v1698_v30 = vadd.f32 %v1251_v22, %v1250_v20 }
  0xeb   :  { %v1253_v24 = vpop.f32.mrf.mxu0  ;;  %v1700_v31 = vadd.f32 %v1279_v23, %v1278_v21 }
  0xec   :  { %v1281_v25 = vpop.f32.mrf.mxu1  ;;  %v862_v38 = vmul.f32 %v1698_v30, %v1698_v30  ;;  %v822_v43 = vadd.f32 %v1698_v30, %v1702_v33 }
  0xed   :  { %v1254_v26 = vpop.f32.mrf.mxu0  ;;  %v866_v40 = vmul.f32 %v1700_v31, %v1700_v31  ;;  %v831_v46 = vadd.f32 %v1700_v31, %v1706_v36 }
  0xee   :  { %v1282_v27 = vpop.f32.mrf.mxu1  ;;  %v1704_v34 = vadd.f32 %v1254_v26, %v1253_v24  ;;  %v877_v48 = vadd.f32 %v862_v38, %v861_v42 }
  0xef   :  { %v1256_v28 = vpop.f32.mrf.mxu0  ;;  %v1708_v37 = vadd.f32 %v1282_v27, %v1281_v25  ;;  %v886_v51 = vadd.f32 %v866_v40, %v865_v45 }
  0xf0   :  { %v1284_v29 = vpop.f32.mrf.mxu1  ;;  %v863_v44 = vmul.f32 %v1704_v34, %v1704_v34  ;;  %v823_v49 = vadd.f32 %v1704_v34, %v822_v43 }
  0xf1   :  { %v1257_v32 = vpop.f32.mrf.mxu0  ;;  %v867_v47 = vmul.f32 %v1708_v37, %v1708_v37  ;;  %v832_v52 = vadd.f32 %v1708_v37, %v831_v46 }
  0xf2   :  { %v1285_v35 = vpop.f32.mrf.mxu1  ;;  %v1712_v39 = vadd.f32 %v1257_v32, %v1256_v28  ;;  %v878_v54 = vadd.f32 %v877_v48, %v863_v44 }
  0xf3   :  { %v1716_v41 = vadd.f32 %v1285_v35, %v1284_v29  ;;  %v887_v57 = vadd.f32 %v886_v51, %v867_v47 }
  0xf4   :  { %v864_v50 = vmul.f32 %v1712_v39, %v1712_v39  ;;  %v824_v55 = vadd.f32 %v1712_v39, %v823_v49 }
  0xf5   :  { %v868_v53 = vmul.f32 %v1716_v41, %v1716_v41  ;;  %v833_v58 = vadd.f32 %v1716_v41, %v832_v52 }
  0xf6   :  { %v879_v60 = vadd.f32 %v878_v54, %v864_v50  ;;  %v825_v0 = vrot.slane %v824_v55, 4 }
  0xf7   :  { %v888_v62 = vadd.f32 %v887_v57, %v868_v53  ;;  %v834_v2 = vrot.slane %v833_v58, 4 }
  0xf8   :  { %v880_v4 = vrot.slane %v879_v60, 4  ;;  %v826_v9 = vadd.f32 %v825_v0, %v824_v55 }
  0xf9   :  { %v889_v6 = vrot.slane %v888_v62, 4  ;;  %v835_v12 = vadd.f32 %v834_v2, %v833_v58 }
  0xfa   :  { %v881_v15 = vadd.f32 %v880_v4, %v879_v60  ;;  %v827_v22 = vrot.slane %v826_v9, 2 }
  0xfb   :  { %v890_v18 = vadd.f32 %v889_v6, %v888_v62  ;;  %v836_v26 = vrot.slane %v835_v12, 2 }
  0xfc   :  { %v882_v35 = vrot.slane %v881_v15, 2  ;;  %v828_v49 = vadd.f32 %v827_v22, %v826_v9 }
  0xfd   :  { %v891_v44 = vrot.slane %v890_v18, 2  ;;  %v837_v53 = vadd.f32 %v836_v26, %v835_v12 }
  0xfe   :  { %v883_v60 = vadd.f32 %v882_v35, %v881_v15  ;;  %v829_v2 = vrot.slane %v828_v49, 1 }
 0x100   :  { %v884_v9 = vrot.slane %v883_v60, 1 }
 0x102   :  { %v885_v26 = vadd.f32 %v884_v9, %v883_v60  ;;  %v929_v60 = vlaneseq }
 0x103   :  { %v1303_v56 = vpop.f32.mrf.mxu0 }
 0x104   :  { %v1331_v59 = vpop.f32.mrf.mxu1 }
 0x105   :  { %v1304_v61 = vpop.f32.mrf.mxu0 }
 0x106   :  { %v1332_v63 = vpop.f32.mrf.mxu1  ;;  %v1742_v13 = vadd.f32 %v1304_v61, %v1303_v56  ;;  %v892_v61 = vadd.f32 %v891_v44, %v890_v18 }
 0x107   :  { %v1306_v1 = vpop.f32.mrf.mxu0  ;;  %v1744_v16 = vadd.f32 %v1332_v63, %v1331_v59 }
 0x108   :  { %v1334_v3 = vpop.f32.mrf.mxu1  ;;  %v869_v27 = vmul.f32 %v1742_v13, %v1742_v13 }
 0x109   :  { %v1307_v5 = vpop.f32.mrf.mxu0  ;;  %v873_v38 = vmul.f32 %v1744_v16, %v1744_v16 }
 0x10a   :  { %v1738_v7 = vadd.f32 %v1307_v5, %v1306_v1  ;;  %v1335_v8 = vpop.f32.mrf.mxu1 }
 0x10b   :  { %v1740_v10 = vadd.f32 %v1335_v8, %v1334_v3  ;;  %v1309_v11 = vpop.f32.mrf.mxu0  ;;  %v838_v3 = vrot.slane %v837_v53, 1 }
 0x10c   :  { %v1337_v14 = vpop.f32.mrf.mxu1  ;;  %v870_v19 = vmul.f32 %v1738_v7, %v1738_v7  ;;  %v840_v28 = vadd.f32 %v1738_v7, %v1742_v13 }
 0x10d   :  { %v1310_v17 = vpop.f32.mrf.mxu0  ;;  %v874_v23 = vmul.f32 %v1740_v10, %v1740_v10  ;;  %v849_v40 = vadd.f32 %v1740_v10, %v1744_v16  ;;  %v839_v22 = vadd.f32 %v838_v3, %v837_v53 }
 0x10e   :  { %v1748_v20 = vadd.f32 %v1310_v17, %v1309_v11  ;;  %v1338_v21 = vpop.f32.mrf.mxu1  ;;  %v895_v45 = vadd.f32 %v870_v19, %v869_v27  ;;  %v893_v11 = vrot.slane %v892_v61, 1 }
 0x10f   :  { %v1752_v24 = vadd.f32 %v1338_v21, %v1337_v14  ;;  %v1312_v25 = vpop.f32.mrf.mxu0  ;;  %v904_v50 = vadd.f32 %v874_v23, %v873_v38  ;;  %v830_v21 = vadd.f32 %v829_v2, %v828_v49  ;;  %v925_v2 = vld [vmem:[%s1827_s3] sm:$0x1] }
 0x110   :  { %v871_v29 = vmul.f32 %v1748_v20, %v1748_v20  ;;  %v1340_v32 = vpop.f32.mrf.mxu1  ;;  %v841_v46 = vadd.f32 %v1748_v20, %v840_v28  ;;  %v894_v27 = vadd.f32 %v893_v11, %v892_v61  ;;  %v930_v61 = vshrl.u32 %v929_v60, 7 }
 0x111   :  { %v875_v42 = vmul.f32 %v1752_v24, %v1752_v24  ;;  %v1313_v43 = vpop.f32.mrf.mxu0  ;;  %v850_v51 = vadd.f32 %v1752_v24, %v849_v40  ;;  %v858_v38 = vadd.f32 %v839_v22, %v830_v21 }
 0x112   :  { %v1767_v47 = vadd.f32 %v1313_v43, %v1312_v25  ;;  %v1341_v48 = vpop.f32.mrf.mxu1  ;;  %v896_v54 = vadd.f32 %v895_v45, %v871_v29  ;;  %v913_v44 = vadd.f32 %v894_v27, %v885_v26 }
 0x113   :  { %v1770_v52 = vadd.f32 %v1341_v48, %v1340_v32  ;;  %v905_v57 = vadd.f32 %v904_v50, %v875_v42 }
 0x114   :  { %v842_v55 = vadd.f32 %v1767_v47, %v841_v46  ;;  %v872_v56 = vmul.f32 %v1767_v47, %v1767_v47 }
 0x115   :  { %v851_v58 = vadd.f32 %v1770_v52, %v850_v51  ;;  %v876_v59 = vmul.f32 %v1770_v52, %v1770_v52 }
 0x116   :  { %v843_v62 = vrot.slane %v842_v55, 4  ;;  %v897_v63 = vadd.f32 %v896_v54, %v872_v56 }
 0x117   :  { %v852_v0 = vrot.slane %v851_v58, 4  ;;  %v906_v1 = vadd.f32 %v905_v57, %v876_v59 }
 0x118   :  { %v844_v4 = vadd.f32 %v843_v62, %v842_v55  ;;  %v898_v5 = vrot.slane %v897_v63, 4  ;;  %v921_v62 = vld [vmem:[%s1826_s2] sm:$0x1] }
 0x119   :  { %v853_v6 = vadd.f32 %v852_v0, %v851_v58  ;;  %v907_v8 = vrot.slane %v906_v1, 4 }
 0x11a   :  { %v845_v12 = vrot.slane %v844_v4, 2  ;;  %v899_v14 = vadd.f32 %v898_v5, %v897_v63  ;;  %v931_v63 = vsub.s32 0, %v930_v61 }
 0x11b   :  { %v854_v17 = vrot.slane %v853_v6, 2  ;;  %v908_v19 = vadd.f32 %v907_v8, %v906_v1 }
 0x11c   :  { %v846_v15 = vadd.f32 %v845_v12, %v844_v4  ;;  %v900_v18 = vrot.slane %v899_v14, 2 }
 0x11d   :  { %v855_v23 = vadd.f32 %v854_v17, %v853_v6  ;;  %v909_v25 = vrot.slane %v908_v19, 2 }
 0x11e   :  { %v847_v28 = vrot.slane %v846_v15, 1  ;;  %v901_v29 = vadd.f32 %v900_v18, %v899_v14 }
 0x11f   :  { %v856_v32 = vrot.slane %v855_v23, 1  ;;  %v910_v35 = vadd.f32 %v909_v25, %v908_v19 }
 0x120   :  { %v848_v40 = vadd.f32 %v847_v28, %v846_v15  ;;  %v902_v42 = vrot.slane %v901_v29, 1 }
 0x121   :  { %v911_v43 = vrot.slane %v910_v35, 1  ;;  %v857_v48 = vadd.f32 %v856_v32, %v855_v23 }
 0x122   :  { %v859_v45 = vadd.f32 %v858_v38, %v848_v40  ;;  %v903_v46 = vadd.f32 %v902_v42, %v901_v29 }
 0x123   :  { %v912_v51 = vadd.f32 %v911_v43, %v910_v35 }
 0x124   :  { %v914_v49 = vadd.f32 %v913_v44, %v903_v46  ;;  %v860_v50 = vadd.f32 %v859_v45, %v857_v48 }
 0x126   :  { %v915_v53 = vadd.f32 %v914_v49, %v912_v51  ;;  %v916_v54 = vmul.f32 0.0078125, %v860_v50 }
 0x128   :  { %v917_v55 = vmul.f32 0.0078125, %v915_v53  ;;  %v918_v56 = vmul.f32 %v916_v54, %v916_v54 }
 0x12a   :  { %v919_v57 = vsub.f32 %v917_v55, %v918_v56 }
 0x12c   :  { %v920_v58 = vmax.f32 %v919_v57, 0.0 }
 0x12e   :  { %v922_v59 = vadd.f32 1e-05, %v920_v58 }
 0x130   :  { %1431 = vrsqrt.f32 %v922_v59 }
 0x13d   :  { %v1432_v0 = vpop.eup %1431 }
 0x13e   :  { %v924_v1 = vmul.f32 %v1432_v0, %v921_v62 }
 0x140   :  { %v926_v3 = vmul.f32 %v924_v1, %v916_v54  ;;  %v932_v4 = vrot.slane %v924_v1, %v931_v63 }
 0x142   :  { %v927_v5 = vsub.f32 %v925_v2, %v926_v3  ;;  %v934_v6 = vmul.f32 %v1702_v33, %v932_v4  ;;  %v935_v8 = vmul.f32 %v1698_v30, %v932_v4  ;;  %v936_v9 = vmul.f32 %v1704_v34, %v932_v4 }
 0x143   :  { %v937_v11 = vmul.f32 %v1712_v39, %v932_v4  ;;  %v938_v12 = vmul.f32 %v1706_v36, %v932_v4  ;;  %v939_v14 = vmul.f32 %v1700_v31, %v932_v4  ;;  %v940_v17 = vmul.f32 %v1708_v37, %v932_v4 }
 0x144   :  { %v941_v19 = vmul.f32 %v1716_v41, %v932_v4  ;;  %v942_v21 = vmul.f32 %v1742_v13, %v932_v4  ;;  %v943_v22 = vmul.f32 %v1738_v7, %v932_v4  ;;  %v944_v33 = vmul.f32 %v1748_v20, %v932_v4 }
 0x145   :  { %v945_v30 = vmul.f32 %v1767_v47, %v932_v4  ;;  %v954_v15 = vrot.slane %v927_v5, %v931_v63  ;;  %v946_v34 = vmul.f32 %v1744_v16, %v932_v4  ;;  %v947_v39 = vmul.f32 %v1740_v10, %v932_v4 }
 0x146   :  { %v948_v36 = vmul.f32 %v1752_v24, %v932_v4  ;;  %v949_v31 = vmul.f32 %v1770_v52, %v932_v4 }
 0x147   :  { %v956_v37 = vadd.f32 %v954_v15, %v934_v6  ;;  %v957_v18 = vadd.f32 %v954_v15, %v935_v8  ;;  %v958_v41 = vadd.f32 %v954_v15, %v936_v9  ;;  %v959_v23 = vadd.f32 %v954_v15, %v937_v11 }
 0x148   :  { %v960_v13 = vadd.f32 %v954_v15, %v938_v12  ;;  %v961_v25 = vadd.f32 %v954_v15, %v939_v14  ;;  %v962_v7 = vadd.f32 %v954_v15, %v940_v17  ;;  %v963_v26 = vadd.f32 %v954_v15, %v941_v19 }
 0x149   :  { %v964_v20 = vadd.f32 %v954_v15, %v942_v21  ;;  %v965_v27 = vadd.f32 %v954_v15, %v943_v22  ;;  %v966_v47 = vadd.f32 %v954_v15, %v944_v33  ;;  %v967_v28 = vadd.f32 %v954_v15, %v945_v30 }
 0x14a   :  { %v968_v29 = vadd.f32 %v954_v15, %v946_v34  ;;  %v969_v16 = vadd.f32 %v954_v15, %v947_v39  ;;  %v970_v32 = vadd.f32 %v954_v15, %v948_v36  ;;  %v971_v10 = vadd.f32 %v954_v15, %v949_v31 }
 0x14b   :  { %v972_v35 = vmax.f32 %v956_v37, 0.0  ;;  %v973_v24 = vmax.f32 %v957_v18, 0.0  ;;  %v974_v38 = vmax.f32 %v958_v41, 0.0  ;;  %v975_v52 = vmax.f32 %v959_v23, 0.0 }
 0x14c   :  { %v976_v40 = vmax.f32 %v960_v13, 0.0  ;;  %v977_v42 = vmax.f32 %v961_v25, 0.0  ;;  %v978_v43 = vmax.f32 %v962_v7, 0.0  ;;  %v979_v44 = vmax.f32 %v963_v26, 0.0 }
 0x14d   :  { %v980_v45 = vmax.f32 %v964_v20, 0.0  ;;  %v981_v46 = vmax.f32 %v965_v27, 0.0  ;;  %v982_v48 = vmax.f32 %v966_v47, 0.0  ;;  %v983_v49 = vmax.f32 %v967_v28, 0.0 }
 0x14e   :  { %v984_v50 = vmax.f32 %v968_v29, 0.0  ;;  %v985_v51 = vmax.f32 %v969_v16, 0.0  ;;  %v986_v53 = vmax.f32 %v970_v32, 0.0  ;;  %v987_v54 = vmax.f32 %v971_v10, 0.0 }
 0x14f   :  { %v1187_v55 = vpack.c.bf16 %v973_v24, %v972_v35  ;;  %v1192_v56 = vpack.c.bf16 %v975_v52, %v974_v38  ;;  %v1197_v57 = vpack.c.bf16 %v977_v42, %v976_v40  ;;  %v1202_v58 = vpack.c.bf16 %v979_v44, %v978_v43 }
 0x150   :  { %v1207_v59 = vpack.c.bf16 %v981_v46, %v980_v45  ;;  %v1212_v60 = vpack.c.bf16 %v983_v49, %v982_v48  ;;  %v1217_v61 = vpack.c.bf16 %v985_v51, %v984_v50  ;;  %v1222_v62 = vpack.c.bf16 %v987_v54, %v986_v53 }
 0x151   :  { %1188 = vst [vmem:[%s1828_s4] sm:$0xff] %v1187_v55   ;;  %1224 = vst [vmem:[%s1828_s4 + $0x8] sm:$0xff] %v1192_v56  }
 0x152   :  { %1225 = vst [vmem:[%s1828_s4 + $0x10] sm:$0xff] %v1197_v57   ;;  %1226 = vst [vmem:[%s1828_s4 + $0x18] sm:$0xff] %v1202_v58  }
 0x153   :  { %1227 = vst [vmem:[%s1828_s4 + $0x20] sm:$0xff] %v1207_v59   ;;  %1228 = vst [vmem:[%s1828_s4 + $0x28] sm:$0xff] %v1212_v60  }
 0x154   :  { %1229 = vst [vmem:[%s1828_s4 + $0x30] sm:$0xff] %v1217_v61   ;;  %1230 = vst [vmem:[%s1828_s4 + $0x38] sm:$0xff] %v1222_v62  }

// kernel: generator_forward.8
= control target key start
LH: loop header
LB: loop body
LE: loop exit
PB: predicated region body
PF: predicated region fallthrough
CT: control target
= control target key end

     0   :  { %s3579_s1 = inlined_call_operand.vmem [shape: bf16[4,128,128], index: 1, kind: input, shape index: {}]   ;;  %s3580_s0 = inlined_call_operand.vmem [shape: bf16[4,128,128], index: 0, kind: input, shape index: {}]   ;;  %s3581_s2 = inlined_call_operand.vmem [shape: f32[1,1,128], index: 2, kind: input, shape index: {}]   ;;  %s3582_s3 = inlined_call_operand.vmem [shape: f32[1,1,128], index: 3, kind: input, shape index: {}]   ;;  %s3583_s4 = inlined_call_operand.vmem [shape: bf16[4,128,128], index: 4, kind: output, shape index: {}]  }
   0x1   :  { %v2271_v0 = vld [vmem:[%s3579_s1 + $0x38] sm:$0xff]   ;;  %v2273_v2 = vld [vmem:[%s3579_s1 + $0x30] sm:$0xff]   ;;  %v2275_v4 = vld [vmem:[%s3579_s1 + $0x28] sm:$0xff]  }
   0x2   :  { %v2272_v1 = vld [vmem:[%s3579_s1 + $0x78] sm:$0xff]   ;;  %2143 = vmatprep.subr.bf16.mxu0 %v2271_v0  ;;  %v2274_v3 = vld [vmem:[%s3579_s1 + $0x70] sm:$0xff]   ;;  %v2276_v5 = vld [vmem:[%s3579_s1 + $0x68] sm:$0xff]  }
   0x3   :  { %2175 = vmatprep.subr.bf16.mxu1 %v2272_v1  ;;  %2144 = vmatpush3.bf16.msra.mxu0 %v2271_v0  ;;  %v2277_v6 = vld [vmem:[%s3579_s1 + $0x20] sm:$0xff]   ;;  %v2279_v8 = vld [vmem:[%s3579_s1 + $0x18] sm:$0xff]   ;;  %v2281_v10 = vld [vmem:[%s3579_s1 + $0x10] sm:$0xff]  }
   0x4   :  { %2176 = vmatpush3.bf16.msra.mxu1 %v2272_v1  ;;  %2145 = vmatprep.subr.bf16.mxu0 %v2273_v2  ;;  %v2278_v7 = vld [vmem:[%s3579_s1 + $0x60] sm:$0xff]   ;;  %v2280_v9 = vld [vmem:[%s3579_s1 + $0x58] sm:$0xff]   ;;  %v2282_v11 = vld [vmem:[%s3579_s1 + $0x50] sm:$0xff]  }
   0x5   :  { %2177 = vmatprep.subr.bf16.mxu1 %v2274_v3  ;;  %v2287_v12 = vld [vmem:[%s3580_s0] sm:$0xff]   ;;  %v2283_v14 = vld [vmem:[%s3579_s1 + $0x8] sm:$0xff]   ;;  %v2291_v19 = vld [vmem:[%s3579_s1 + $0xb8] sm:$0xff]  }
   0x6   :  { %v2288_v13 = vld [vmem:[%s3580_s0 + $0x40] sm:$0xff]   ;;  %2159 = vmatprep.mubr.bf16.mxu0 %v2287_v12  ;;  %v2284_v15 = vld [vmem:[%s3579_s1 + $0x48] sm:$0xff]   ;;  %v2292_v20 = vld [vmem:[%s3579_s1 + $0xf8] sm:$0xff]  }
   0x7   :  { %2146 = vmatpush3.bf16.msra.mxu0 %v2273_v2  ;;  %2191 = vmatprep.mubr.bf16.mxu1 %v2288_v13  ;;  %v2285_v16 = vld [vmem:[%s3579_s1] sm:$0xff]   ;;  %v2289_v18 = vld [vmem:[%s3580_s0 + $0x8] sm:$0xff]   ;;  %v2293_v22 = vld [vmem:[%s3579_s1 + $0xb0] sm:$0xff]  }
   0x8   :  { %2178 = vmatpush3.bf16.msra.mxu1 %v2274_v3  ;;  %2147 = vmatprep.subr.bf16.mxu0 %v2275_v4  ;;  %v2286_v17 = vld [vmem:[%s3579_s1 + $0x40] sm:$0xff]   ;;  %v2290_v21 = vld [vmem:[%s3580_s0 + $0x48] sm:$0xff]   ;;  %v2294_v23 = vld [vmem:[%s3579_s1 + $0xf0] sm:$0xff]  }
   0x9   :  { %2179 = vmatprep.subr.bf16.mxu1 %v2276_v5  ;;  %v2295_v24 = vld [vmem:[%s3580_s0 + $0x10] sm:$0xff]   ;;  %v2297_v26 = vld [vmem:[%s3580_s0 + $0x18] sm:$0xff]   ;;  %v2299_v27 = vld [vmem:[%s3579_s1 + $0xa8] sm:$0xff]  }
   0xa   :  { %v2296_v25 = vld [vmem:[%s3580_s0 + $0x50] sm:$0xff]   ;;  %v2300_v28 = vld [vmem:[%s3579_s1 + $0xe8] sm:$0xff]   ;;  %v2298_v29 = vld [vmem:[%s3580_s0 + $0x58] sm:$0xff]  }
   0xb   :  { %2148 = vmatpush3.bf16.msra.mxu0 %v2275_v4  ;;  %v2301_v30 = vld [vmem:[%s3579_s1 + $0xa0] sm:$0xff]   ;;  %v2305_v34 = vld [vmem:[%s3580_s0 + $0x28] sm:$0xff]   ;;  %v2307_v35 = vld [vmem:[%s3579_s1 + $0x98] sm:$0xff]  }
   0xc   :  { %2180 = vmatpush3.bf16.msra.mxu1 %v2276_v5  ;;  %2149 = vmatprep.subr.bf16.mxu0 %v2277_v6  ;;  %v2302_v31 = vld [vmem:[%s3579_s1 + $0xe0] sm:$0xff]   ;;  %v2308_v36 = vld [vmem:[%s3579_s1 + $0xd8] sm:$0xff]   ;;  %v2306_v37 = vld [vmem:[%s3580_s0 + $0x68] sm:$0xff]  }
   0xd   :  { %2181 = vmatprep.subr.bf16.mxu1 %v2278_v7  ;;  %v2303_v32 = vld [vmem:[%s3580_s0 + $0x20] sm:$0xff]   ;;  %v2309_v38 = vld [vmem:[%s3579_s1 + $0x90] sm:$0xff]   ;;  %v2313_v42 = vld [vmem:[%s3580_s0 + $0x38] sm:$0xff]  }
   0xe   :  { %v2304_v33 = vld [vmem:[%s3580_s0 + $0x60] sm:$0xff]   ;;  %v2310_v39 = vld [vmem:[%s3579_s1 + $0xd0] sm:$0xff]   ;;  %v2315_v43 = vld [vmem:[%s3579_s1 + $0x88] sm:$0xff]  }
   0xf   :  { %2150 = vmatpush3.bf16.msra.mxu0 %v2277_v6  ;;  %v2311_v40 = vld [vmem:[%s3580_s0 + $0x30] sm:$0xff]   ;;  %v2316_v44 = vld [vmem:[%s3579_s1 + $0xc8] sm:$0xff]   ;;  %v2314_v45 = vld [vmem:[%s3580_s0 + $0x78] sm:$0xff]  }
  0x10   :  { %2182 = vmatpush3.bf16.msra.mxu1 %v2278_v7  ;;  %2151 = vmatprep.subr.bf16.mxu0 %v2279_v8  ;;  %v2312_v41 = vld [vmem:[%s3580_s0 + $0x70] sm:$0xff]   ;;  %v2317_v46 = vld [vmem:[%s3579_s1 + $0x80] sm:$0xff]   ;;  %v2321_v50 = vld [vmem:[%s3580_s0 + $0x88] sm:$0xff]  }
  0x11   :  { %2183 = vmatprep.subr.bf16.mxu1 %v2280_v9  ;;  %v2318_v47 = vld [vmem:[%s3579_s1 + $0xc0] sm:$0xff]   ;;  %v2322_v51 = vld [vmem:[%s3580_s0 + $0xc8] sm:$0xff]   ;;  %v2323_v52 = vld [vmem:[%s3580_s0 + $0x90] sm:$0xff]  }
  0x12   :  { %v2319_v48 = vld [vmem:[%s3580_s0 + $0x80] sm:$0xff]   ;;  %v2324_v53 = vld [vmem:[%s3580_s0 + $0xd0] sm:$0xff]   ;;  %v2325_v54 = vld [vmem:[%s3580_s0 + $0x98] sm:$0xff]  }
  0x13   :  { %2152 = vmatpush3.bf16.msra.mxu0 %v2279_v8  ;;  %v2320_v49 = vld [vmem:[%s3580_s0 + $0xc0] sm:$0xff]   ;;  %v2326_v55 = vld [vmem:[%s3580_s0 + $0xd8] sm:$0xff]   ;;  %v2329_v58 = vld [vmem:[%s3580_s0 + $0xa8] sm:$0xff]  }
  0x14   :  { %2184 = vmatpush3.bf16.msra.mxu1 %v2280_v9  ;;  %2153 = vmatprep.subr.bf16.mxu0 %v2281_v10  ;;  %v2327_v56 = vld [vmem:[%s3580_s0 + $0xa0] sm:$0xff]   ;;  %v2330_v59 = vld [vmem:[%s3580_s0 + $0xe8] sm:$0xff]   ;;  %v2331_v60 = vld [vmem:[%s3580_s0 + $0xb0] sm:$0xff]  }
  0x15   :  { %2185 = vmatprep.subr.bf16.mxu1 %v2282_v11  ;;  %v2328_v57 = vld [vmem:[%s3580_s0 + $0xe0] sm:$0xff]   ;;  %v2332_v61 = vld [vmem:[%s3580_s0 + $0xf0] sm:$0xff]   ;;  %v2333_v62 = vld [vmem:[%s3580_s0 + $0xb8] sm:$0xff]  }
  0x16   :  { %v2334_v63 = vld [vmem:[%s3580_s0 + $0xf8] sm:$0xff]  }
  0x17   :  { %2154 = vmatpush3.bf16.msra.mxu0 %v2281_v10 }
  0x18   :  { %2186 = vmatpush3.bf16.msra.mxu1 %v2282_v11  ;;  %2155 = vmatprep.subr.bf16.mxu0 %v2283_v14 }
  0x19   :  { %2187 = vmatprep.subr.bf16.mxu1 %v2284_v15 }
  0x1b   :  { %2156 = vmatpush3.bf16.msra.mxu0 %v2283_v14 }
  0x1c   :  { %2188 = vmatpush3.bf16.msra.mxu1 %v2284_v15  ;;  %2157 = vmatprep.subr.bf16.mxu0 %v2285_v16 }
  0x1d   :  { %2189 = vmatprep.subr.bf16.mxu1 %v2286_v17 }
  0x1f   :  { %2158 = vmatpush3.bf16.msra.mxu0 %v2285_v16 }
  0x20   :  { %2190 = vmatpush3.bf16.msra.mxu1 %v2286_v17  ;;  %2207 = vmatprep.subr.bf16.mxu0 %v2291_v19 }
  0x21   :  { %2239 = vmatprep.subr.bf16.mxu1 %v2292_v20 }
  0x22   :  { %2160 = vmatmul.mubr.bf16.vlgmr.msra.gmra.mxu0 %v2289_v18 }
  0x23   :  { %2192 = vmatmul.mubr.bf16.vlgmr.msra.gmra.mxu1 %v2290_v21  ;;  %2208 = vmatpush3.bf16.msra.mxu0 %v2291_v19 }
  0x24   :  { %2240 = vmatpush3.bf16.msra.mxu1 %v2292_v20  ;;  %2209 = vmatprep.subr.bf16.mxu0 %v2293_v22 }
  0x25   :  { %2241 = vmatprep.subr.bf16.mxu1 %v2294_v23  ;;  %2163 = vmatprep.mubr.bf16.mxu0 %v2295_v24 }
  0x26   :  { %2195 = vmatprep.mubr.bf16.mxu1 %v2296_v25 }
  0x27   :  { %2210 = vmatpush3.bf16.msra.mxu0 %v2293_v22 }
  0x28   :  { %2242 = vmatpush3.bf16.msra.mxu1 %v2294_v23  ;;  %2211 = vmatprep.subr.bf16.mxu0 %v2299_v27 }
  0x29   :  { %2243 = vmatprep.subr.bf16.mxu1 %v2300_v28 }
  0x2a   :  { %2164 = vmatmul.mubr.bf16.gmra.mxu0 %v2297_v26 }
  0x2b   :  { %2196 = vmatmul.mubr.bf16.gmra.mxu1 %v2298_v29  ;;  %2212 = vmatpush3.bf16.msra.mxu0 %v2299_v27 }
  0x2c   :  { %2244 = vmatpush3.bf16.msra.mxu1 %v2300_v28  ;;  %2213 = vmatprep.subr.bf16.mxu0 %v2301_v30 }
  0x2d   :  { %2245 = vmatprep.subr.bf16.mxu1 %v2302_v31  ;;  %2167 = vmatprep.mubr.bf16.mxu0 %v2303_v32 }
  0x2e   :  { %2199 = vmatprep.mubr.bf16.mxu1 %v2304_v33 }
  0x2f   :  { %2214 = vmatpush3.bf16.msra.mxu0 %v2301_v30 }
  0x30   :  { %2246 = vmatpush3.bf16.msra.mxu1 %v2302_v31  ;;  %2215 = vmatprep.subr.bf16.mxu0 %v2307_v35 }
  0x31   :  { %2247 = vmatprep.subr.bf16.mxu1 %v2308_v36 }
  0x32   :  { %2168 = vmatmul.mubr.bf16.gmra.mxu0 %v2305_v34 }
  0x33   :  { %2200 = vmatmul.mubr.bf16.gmra.mxu1 %v2306_v37  ;;  %2216 = vmatpush3.bf16.msra.mxu0 %v2307_v35 }
  0x34   :  { %2248 = vmatpush3.bf16.msra.mxu1 %v2308_v36  ;;  %2217 = vmatprep.subr.bf16.mxu0 %v2309_v38 }
  0x35   :  { %2249 = vmatprep.subr.bf16.mxu1 %v2310_v39  ;;  %2171 = vmatprep.mubr.bf16.mxu0 %v2311_v40 }
  0x36   :  { %2203 = vmatprep.mubr.bf16.mxu1 %v2312_v41 }
  0x37   :  { %2218 = vmatpush3.bf16.msra.mxu0 %v2309_v38 }
  0x38   :  { %2250 = vmatpush3.bf16.msra.mxu1 %v2310_v39  ;;  %2219 = vmatprep.subr.bf16.mxu0 %v2315_v43 }
  0x39   :  { %2251 = vmatprep.subr.bf16.mxu1 %v2316_v44 }
  0x3a   :  { %2172 = vmatmul.mubr.bf16.gmra.mxu0 %v2313_v42 }
  0x3b   :  { %2204 = vmatmul.mubr.bf16.gmra.mxu1 %v2314_v45  ;;  %2220 = vmatpush3.bf16.msra.mxu0 %v2315_v43 }
  0x3c   :  { %2252 = vmatpush3.bf16.msra.mxu1 %v2316_v44  ;;  %2221 = vmatprep.subr.bf16.mxu0 %v2317_v46 }
  0x3d   :  { %2253 = vmatprep.subr.bf16.mxu1 %v2318_v47  ;;  %2223 = vmatprep.mubr.bf16.mxu0 %v2319_v48 }
  0x3e   :  { %2255 = vmatprep.mubr.bf16.mxu1 %v2320_v49 }
  0x3f   :  { %2222 = vmatpush3.bf16.msra.mxu0 %v2317_v46 }
  0x40   :  { %2254 = vmatpush3.bf16.msra.mxu1 %v2318_v47 }
  0x42   :  { %2224 = vmatmul.mubr.bf16.vlgmr.msra.gmra.mxu0 %v2321_v50 }
  0x43   :  { %2256 = vmatmul.mubr.bf16.vlgmr.msra.gmra.mxu1 %v2322_v51  ;;  %2227 = vmatprep.mubr.bf16.mxu0 %v2323_v52 }
  0x44   :  { %2259 = vmatprep.mubr.bf16.mxu1 %v2324_v53 }
  0x4a   :  { %2228 = vmatmul.mubr.bf16.gmra.mxu0 %v2325_v54 }
  0x4b   :  { %2260 = vmatmul.mubr.bf16.gmra.mxu1 %v2326_v55  ;;  %2231 = vmatprep.mubr.bf16.mxu0 %v2327_v56 }
  0x4c   :  { %2263 = vmatprep.mubr.bf16.mxu1 %v2328_v57 }
  0x52   :  { %2232 = vmatmul.mubr.bf16.gmra.mxu0 %v2329_v58 }
  0x53   :  { %2264 = vmatmul.mubr.bf16.gmra.mxu1 %v2330_v59  ;;  %2235 = vmatprep.mubr.bf16.mxu0 %v2331_v60 }
  0x54   :  { %2267 = vmatprep.mubr.bf16.mxu1 %v2332_v61 }
  0x5a   :  { %2236 = vmatmul.mubr.bf16.gmra.mxu0 %v2333_v62 }
  0x5b   :  { %2268 = vmatmul.mubr.bf16.gmra.mxu1 %v2334_v63 }
  0xe2   :  { %v2554_v0 = vpop.f32.mrf.mxu0 }
  0xe3   :  { %v2556_v1 = vpop.f32.mrf.mxu1  ;;  %v1007_v15 = vmul.f32 %v2554_v0, %v2554_v0 }
  0xe4   :  { %v2558_v2 = vpop.f32.mrf.mxu0  ;;  %v1023_v19 = vmul.f32 %v2556_v1, %v2556_v1 }
  0xe5   :  { %v2560_v3 = vpop.f32.mrf.mxu1  ;;  %v1005_v7 = vmul.f32 %v2558_v2, %v2558_v2 }
  0xe6   :  { %v2562_v4 = vpop.f32.mrf.mxu0  ;;  %v1021_v11 = vmul.f32 %v2560_v3, %v2560_v3 }
  0xe7   :  { %v2564_v5 = vpop.f32.mrf.mxu1  ;;  %v1008_v23 = vmul.f32 %v2562_v4, %v2562_v4 }
  0xe8   :  { %v2566_v6 = vpop.f32.mrf.mxu0  ;;  %v1024_v27 = vmul.f32 %v2564_v5, %v2564_v5 }
  0xe9   :  { %v918_v8 = vadd.f32 %v2566_v6, %v2558_v2  ;;  %v1006_v9 = vmul.f32 %v2566_v6, %v2566_v6  ;;  %v2574_v10 = vpop.f32.mrf.mxu1 }
  0xea   :  { %v939_v12 = vadd.f32 %v2574_v10, %v2560_v3  ;;  %v1022_v13 = vmul.f32 %v2574_v10, %v2574_v10  ;;  %v2582_v14 = vpop.f32.mrf.mxu0 }
  0xeb   :  { %v919_v16 = vadd.f32 %v2554_v0, %v918_v8  ;;  %v1069_v17 = vadd.f32 %v1006_v9, %v1005_v7  ;;  %v2587_v18 = vpop.f32.mrf.mxu1  ;;  %v1011_v47 = vmul.f32 %v2582_v14, %v2582_v14 }
  0xec   :  { %v940_v20 = vadd.f32 %v2556_v1, %v939_v12  ;;  %v1090_v21 = vadd.f32 %v1022_v13, %v1021_v11  ;;  %v2592_v22 = vpop.f32.mrf.mxu0  ;;  %v1027_v51 = vmul.f32 %v2587_v18, %v2587_v18 }
  0xed   :  { %v1070_v24 = vadd.f32 %v1069_v17, %v1007_v15  ;;  %v920_v25 = vadd.f32 %v2562_v4, %v919_v16  ;;  %v2597_v26 = vpop.f32.mrf.mxu1  ;;  %v1009_v32 = vmul.f32 %v2592_v22, %v2592_v22 }
  0xee   :  { %v1091_v28 = vadd.f32 %v1090_v21, %v1023_v19  ;;  %v941_v29 = vadd.f32 %v2564_v5, %v940_v20  ;;  %v2602_v30 = vpop.f32.mrf.mxu0  ;;  %v1025_v36 = vmul.f32 %v2597_v26, %v2597_v26 }
  0xef   :  { %v921_v31 = vadd.f32 %v920_v25, %v2592_v22  ;;  %v1071_v33 = vadd.f32 %v1070_v24, %v1008_v23  ;;  %v2607_v34 = vpop.f32.mrf.mxu1  ;;  %v1012_v55 = vmul.f32 %v2602_v30, %v2602_v30 }
  0xf0   :  { %v942_v35 = vadd.f32 %v941_v29, %v2597_v26  ;;  %v1092_v37 = vadd.f32 %v1091_v28, %v1024_v27  ;;  %v2612_v38 = vpop.f32.mrf.mxu0  ;;  %v1028_v59 = vmul.f32 %v2607_v34, %v2607_v34 }
  0xf1   :  { %v1072_v39 = vadd.f32 %v1071_v33, %v1009_v32  ;;  %v922_v40 = vadd.f32 %v921_v31, %v2612_v38  ;;  %v1010_v41 = vmul.f32 %v2612_v38, %v2612_v38  ;;  %v2617_v42 = vpop.f32.mrf.mxu1 }
  0xf2   :  { %v1093_v43 = vadd.f32 %v1092_v37, %v1025_v36  ;;  %v943_v44 = vadd.f32 %v942_v35, %v2617_v42  ;;  %v1026_v45 = vmul.f32 %v2617_v42, %v2617_v42  ;;  %v2622_v46 = vpop.f32.mrf.mxu0 }
  0xf3   :  { %v923_v48 = vadd.f32 %v2582_v14, %v922_v40  ;;  %v1073_v49 = vadd.f32 %v1072_v39, %v1010_v41  ;;  %v2627_v50 = vpop.f32.mrf.mxu1  ;;  %v1015_v33 = vmul.f32 %v2622_v46, %v2622_v46 }
  0xf4   :  { %v944_v52 = vadd.f32 %v2587_v18, %v943_v44  ;;  %v1094_v53 = vadd.f32 %v1093_v43, %v1026_v45  ;;  %v2632_v54 = vpop.f32.mrf.mxu0  ;;  %v1031_v45 = vmul.f32 %v2627_v50, %v2627_v50 }
  0xf5   :  { %v1074_v56 = vadd.f32 %v1073_v49, %v1011_v47  ;;  %v924_v57 = vadd.f32 %v2602_v30, %v923_v48  ;;  %v2637_v58 = vpop.f32.mrf.mxu1  ;;  %v1013_v7 = vmul.f32 %v2632_v54, %v2632_v54 }
  0xf6   :  { %v1095_v60 = vadd.f32 %v1094_v53, %v1027_v51  ;;  %v945_v61 = vadd.f32 %v2607_v34, %v944_v52  ;;  %v2642_v62 = vpop.f32.mrf.mxu0  ;;  %v1029_v20 = vmul.f32 %v2637_v58, %v2637_v58 }
  0xf7   :  { %v925_v63 = vadd.f32 %v924_v57, %v2632_v54  ;;  %v1075_v8 = vadd.f32 %v1074_v56, %v1012_v55  ;;  %v2647_v9 = vpop.f32.mrf.mxu1  ;;  %v1016_v47 = vmul.f32 %v2642_v62, %v2642_v62 }
  0xf8   :  { %v946_v11 = vadd.f32 %v945_v61, %v2637_v58  ;;  %v1096_v12 = vadd.f32 %v1095_v60, %v1028_v59  ;;  %v2650_v13 = vpop.f32.mrf.mxu0  ;;  %v1032_v59 = vmul.f32 %v2647_v9, %v2647_v9 }
  0xf9   :  { %v1076_v15 = vadd.f32 %v1075_v8, %v1013_v7  ;;  %v926_v16 = vadd.f32 %v925_v63, %v2650_v13  ;;  %v1014_v17 = vmul.f32 %v2650_v13, %v2650_v13  ;;  %v2655_v19 = vpop.f32.mrf.mxu1 }
  0xfa   :  { %v2659_v21 = vpop.f32.mrf.mxu0  ;;  %v947_v23 = vadd.f32 %v946_v11, %v2655_v19  ;;  %v1097_v25 = vadd.f32 %v1096_v12, %v1029_v20  ;;  %v1030_v28 = vmul.f32 %v2655_v19, %v2655_v19 }
  0xfb   :  { %v2662_v24 = vpop.f32.mrf.mxu1  ;;  %v1077_v27 = vadd.f32 %v1076_v15, %v1014_v17  ;;  %v927_v31 = vadd.f32 %v2622_v46, %v926_v16 }
  0xfc   :  { %3625 = vst [vmem:[#allocation2_spill] sm:$0xff] %v2662_v24  ;;  %v2666_v29 = vpop.f32.mrf.mxu0  ;;  %v948_v36 = vadd.f32 %v2627_v50, %v947_v23  ;;  %v1098_v40 = vadd.f32 %v1097_v25, %v1030_v28 }
  0xfd   :  { %v2669_v32 = vpop.f32.mrf.mxu1  ;;  %v1078_v39 = vadd.f32 %v1077_v27, %v1015_v33  ;;  %v928_v43 = vadd.f32 %v2642_v62, %v927_v31  ;;  %v1017_v60 = vmul.f32 %v2666_v29, %v2666_v29 }
  0xfe   :  { %v2673_v35 = vpop.f32.mrf.mxu0  ;;  %v949_v49 = vadd.f32 %v2647_v9, %v948_v36  ;;  %v1099_v52 = vadd.f32 %v1098_v40, %v1031_v45  ;;  %v1033_v11 = vmul.f32 %v2669_v32, %v2669_v32 }
  0xff   :  { %v2676_v37 = vpop.f32.mrf.mxu1  ;;  %v1079_v53 = vadd.f32 %v1078_v39, %v1016_v47  ;;  %v929_v56 = vadd.f32 %v928_v43, %v2666_v29 }
 0x100   :  { %3626 = vst [vmem:[#allocation3_spill] sm:$0xff] %v2676_v37  ;;  %v2678_v41 = vpop.f32.mrf.mxu0  ;;  %v950_v63 = vadd.f32 %v949_v49, %v2669_v32  ;;  %v1100_v12 = vadd.f32 %v1099_v52, %v1032_v59 }
 0x101   :  { %v2681_v44 = vpop.f32.mrf.mxu1  ;;  %v1080_v8 = vadd.f32 %v1079_v53, %v1017_v60  ;;  %v930_v16 = vadd.f32 %v929_v56, %v2678_v41  ;;  %v1018_v27 = vmul.f32 %v2678_v41, %v2678_v41 }
 0x102   :  { %3627 = vst [vmem:[#allocation4_spill] sm:$0xff] %v2681_v44  ;;  %v2687_v48 = vpop.f32.mrf.mxu0  ;;  %v951_v39 = vadd.f32 %v950_v63, %v2681_v44  ;;  %v1101_v49 = vadd.f32 %v1100_v12, %v1033_v11  ;;  %v1034_v52 = vmul.f32 %v2681_v44, %v2681_v44 }
 0x103   :  { %3628 = vst [vmem:[#allocation5_spill] sm:$0xff] %v2687_v48  ;;  %v2690_v51 = vpop.f32.mrf.mxu1  ;;  %v1039_v40 = vmul.f32 %v2687_v48, %v2687_v48  ;;  %v931_v60 = vadd.f32 %v2659_v21, %v930_v16 }
 0x104   :  { %3629 = vst [vmem:[#allocation6_spill] sm:$0xff] %v2690_v51  ;;  %v2692_v55 = vpop.f32.mrf.mxu0  ;;  %v1055_v63 = vmul.f32 %v2690_v51, %v2690_v51 }
 0x105   :  { %3630 = vst [vmem:[#allocation7_spill] sm:$0xff] %v2692_v55  ;;  %v2695_v57 = vpop.f32.mrf.mxu1  ;;  %v1037_v17 = vmul.f32 %v2692_v55, %v2692_v55 }
 0x106   :  { %3631 = vst [vmem:[#allocation8_spill] sm:$0xff] %v2695_v57  ;;  %v2701_v61 = vpop.f32.mrf.mxu0  ;;  %v1053_v28 = vmul.f32 %v2695_v57, %v2695_v57 }
 0x107   :  { %3632 = vst [vmem:[#allocation9_spill] sm:$0xff] %v2701_v61  ;;  %v2704_v7 = vpop.f32.mrf.mxu1  ;;  %v1040_v11 = vmul.f32 %v2701_v61, %v2701_v61 }
 0x108   :  { %3633 = vst [vmem:[#allocation10_spill] sm:$0xff] %v2704_v7  ;;  %v2708_v15 = vpop.f32.mrf.mxu0 }
 0x109   :  { %3634 = vst [vmem:[#allocation11_spill] sm:$0xff] %v2708_v15  ;;  %v960_v20 = vadd.f32 %v2708_v15, %v2692_v55  ;;  %v1038_v23 = vmul.f32 %v2708_v15, %v2708_v15  ;;  %v2717_v25 = vpop.f32.mrf.mxu1 }
 0x10a   :  { %3635 = vst [vmem:[#allocation12_spill] sm:$0xff] %v2717_v25  ;;  %v981_v31 = vadd.f32 %v2717_v25, %v2695_v57  ;;  %v1054_v33 = vmul.f32 %v2717_v25, %v2717_v25  ;;  %v2727_v36 = vpop.f32.mrf.mxu0 }
 0x10b   :  { %3636 = vst [vmem:[#allocation13_spill] sm:$0xff] %v2727_v36  ;;  %v961_v43 = vadd.f32 %v2687_v48, %v960_v20  ;;  %v1111_v45 = vadd.f32 %v1038_v23, %v1037_v17  ;;  %v2733_v47 = vpop.f32.mrf.mxu1  ;;  %v1081_v17 = vadd.f32 %v1080_v8, %v1018_v27  ;;  %v1019_v20 = vmul.f32 %v2659_v21, %v2659_v21 }
 0x10c   :  { %3637 = vst [vmem:[#allocation14_spill] sm:$0xff] %v2733_v47  ;;  %v982_v53 = vadd.f32 %v2690_v51, %v981_v31  ;;  %v1132_v56 = vadd.f32 %v1054_v33, %v1053_v28  ;;  %v2738_v59 = vpop.f32.mrf.mxu0  ;;  %v952_v23 = vadd.f32 %v2662_v24, %v951_v39  ;;  %v1102_v33 = vadd.f32 %v1101_v49, %v1034_v52 }
 0x10d   :  { %3638 = vst [vmem:[#allocation15_spill] sm:$0xff] %v2738_v59  ;;  %v1112_v25 = vadd.f32 %v1111_v45, %v1039_v40  ;;  %v2743_v57 = vpop.f32.mrf.mxu1  ;;  %v962_v16 = vadd.f32 %v2701_v61, %v961_v43  ;;  %v1041_v40 = vmul.f32 %v2738_v59, %v2738_v59  ;;  %v932_v51 = vadd.f32 %v2673_v35, %v931_v60 }
 0x10e   :  { %3639 = vst [vmem:[#allocation16_spill] sm:$0xff] %v2743_v57  ;;  %v2747_v12 = vpop.f32.mrf.mxu0  ;;  %v1133_v28 = vadd.f32 %v1132_v56, %v1055_v63  ;;  %v983_v27 = vadd.f32 %v2704_v7, %v982_v53  ;;  %v1056_v48 = vmul.f32 %v2704_v7, %v2704_v7  ;;  %v1035_v43 = vmul.f32 %v2662_v24, %v2662_v24 }
 0x10f   :  { %3640 = vst [vmem:[#allocation17_spill] sm:$0xff] %v2747_v12  ;;  %v2753_v31 = vpop.f32.mrf.mxu1  ;;  %v1113_v8 = vadd.f32 %v1112_v25, %v1040_v11  ;;  %v963_v39 = vadd.f32 %v962_v16, %v2738_v59  ;;  %v1082_v49 = vadd.f32 %v1081_v17, %v1019_v20  ;;  %v1020_v53 = vmul.f32 %v2673_v35, %v2673_v35 }
 0x110   :  { %3641 = vst [vmem:[#allocation18_spill] sm:$0xff] %v2753_v31  ;;  %v2758_v45 = vpop.f32.mrf.mxu0  ;;  %v984_v25 = vadd.f32 %v983_v27, %v2743_v57  ;;  %v953_v60 = vadd.f32 %v2676_v37, %v952_v23  ;;  %v1057_v11 = vmul.f32 %v2743_v57, %v2743_v57  ;;  %v1134_v16 = vadd.f32 %v1133_v28, %v1056_v48 }
 0x111   :  { %3642 = vst [vmem:[#allocation19_spill] sm:$0xff] %v2758_v45  ;;  %v2764_v56 = vpop.f32.mrf.mxu1  ;;  %v1114_v52 = vadd.f32 %v1113_v8, %v1041_v40  ;;  %v1036_v59 = vmul.f32 %v2676_v37, %v2676_v37  ;;  %v1103_v17 = vadd.f32 %v1102_v33, %v1035_v43  ;;  %v964_v20 = vadd.f32 %v963_v39, %v2758_v45 }
 0x112   :  { %3643 = vst [vmem:[#allocation20_spill] sm:$0xff] %v2764_v56  ;;  %v2769_v63 = vpop.f32.mrf.mxu0  ;;  %v1042_v40 = vmul.f32 %v2758_v45, %v2758_v45  ;;  %v933_v27 = vrot.slane %v932_v51, 4  ;;  %v1135_v61 = vadd.f32 %v1134_v16, %v1057_v11  ;;  %v985_v23 = vadd.f32 %v984_v25, %v2764_v56 }
 0x113   :  { %3644 = vst [vmem:[#allocation21_spill] sm:$0xff] %v2769_v63  ;;  %v2776_v7 = vpop.f32.mrf.mxu1  ;;  %v1058_v48 = vmul.f32 %v2764_v56, %v2764_v56  ;;  %v1083_v57 = vadd.f32 %v1082_v49, %v1020_v53  ;;  %v1043_v33 = vmul.f32 %v2727_v36, %v2727_v36  ;;  %v965_v39 = vadd.f32 %v2727_v36, %v964_v20 }
 0x114   :  { %3645 = vst [vmem:[#allocation22_spill] sm:$0xff] %v2776_v7  ;;  %v2783_v8 = vpop.f32.mrf.mxu0  ;;  %v1115_v43 = vadd.f32 %v1114_v52, %v1042_v40  ;;  %v954_v45 = vrot.slane %v953_v60, 4  ;;  %v1059_v11 = vmul.f32 %v2733_v47, %v2733_v47  ;;  %v986_v25 = vadd.f32 %v2733_v47, %v985_v23 }
 0x115   :  { %3646 = vst [vmem:[#allocation23_spill] sm:$0xff] %v2783_v8  ;;  %v2788_v28 = vpop.f32.mrf.mxu1  ;;  %v1136_v16 = vadd.f32 %v1135_v61, %v1058_v48  ;;  %v1104_v56 = vadd.f32 %v1103_v17, %v1036_v59  ;;  %v1044_v49 = vmul.f32 %v2747_v12, %v2747_v12  ;;  %v966_v37 = vadd.f32 %v2747_v12, %v965_v39 }
 0x116   :  { %3647 = vst [vmem:[#allocation24_spill] sm:$0xff] %v2788_v28  ;;  %v2793_v15 = vpop.f32.mrf.mxu0  ;;  %v1116_v53 = vadd.f32 %v1115_v43, %v1043_v33  ;;  %v934_v52 = vadd.f32 %v933_v27, %v932_v51  ;;  %v1060_v40 = vmul.f32 %v2753_v31, %v2753_v31  ;;  %v987_v24 = vadd.f32 %v2753_v31, %v986_v25 }
 0x117   :  { %3648 = vst [vmem:[#allocation25_spill] sm:$0xff] %v2793_v15  ;;  %v2798_v55 = vpop.f32.mrf.mxu1  ;;  %v1137_v36 = vadd.f32 %v1136_v16, %v1059_v11  ;;  %v967_v61 = vadd.f32 %v966_v37, %v2783_v8  ;;  %v1045_v59 = vmul.f32 %v2783_v8, %v2783_v8  ;;  %v1061_v27 = vmul.f32 %v2788_v28, %v2788_v28 }
 0x118   :  { %3649 = vst [vmem:[#allocation26_spill] sm:$0xff] %v2798_v55  ;;  %v2803_v20 = vpop.f32.mrf.mxu0  ;;  %v1117_v17 = vadd.f32 %v1116_v53, %v1044_v49  ;;  %v988_v51 = vadd.f32 %v987_v24, %v2788_v28  ;;  %v1084_v37 = vrot.slane %v1083_v57, 4  ;;  %v1105_v53 = vrot.slane %v1104_v56, 4 }
 0x119   :  { %3650 = vst [vmem:[#allocation27_spill] sm:$0xff] %v2803_v20  ;;  %v2808_v23 = vpop.f32.mrf.mxu1  ;;  %v1046_v48 = vmul.f32 %v2803_v20, %v2803_v20  ;;  %v1138_v39 = vadd.f32 %v1137_v36, %v1060_v40  ;;  %v968_v16 = vadd.f32 %v967_v61, %v2803_v20  ;;  %v955_v8 = vadd.f32 %v954_v45, %v953_v60 }
 0x11a   :  { %3651 = vst [vmem:[#allocation28_spill] sm:$0xff] %v2808_v23  ;;  %v2815_v33 = vpop.f32.mrf.mxu0  ;;  %v1062_v43 = vmul.f32 %v2808_v23, %v2808_v23  ;;  %v1118_v25 = vadd.f32 %v1117_v17, %v1045_v59  ;;  %v989_v47 = vadd.f32 %v988_v51, %v2808_v23  ;;  %v1047_v36 = vmul.f32 %v2769_v63, %v2769_v63 }
 0x11b   :  { %3652 = vst [vmem:[#allocation29_spill] sm:$0xff] %v2815_v33  ;;  %v2822_v11 = vpop.f32.mrf.mxu1  ;;  %v1139_v31 = vadd.f32 %v1138_v39, %v1061_v27  ;;  %v969_v40 = vadd.f32 %v2769_v63, %v968_v16  ;;  %v935_v59 = vrot.slane %v934_v52, 2  ;;  %v1063_v61 = vmul.f32 %v2776_v7, %v2776_v7 }
 0x11c   :  { %3653 = vst [vmem:[#allocation30_spill] sm:$0xff] %v2822_v11  ;;  %v2825_v49 = vpop.f32.mrf.mxu0  ;;  %v1119_v28 = vadd.f32 %v1118_v25, %v1046_v48  ;;  %v990_v17 = vadd.f32 %v2776_v7, %v989_v47  ;;  %v1085_v51 = vadd.f32 %v1084_v37, %v1083_v57  ;;  %v1048_v45 = vmul.f32 %v2793_v15, %v2793_v15 }
 0x11d   :  { %3654 = vst [vmem:[#allocation31_spill] sm:$0xff] %v2825_v49  ;;  %v2828_v24 = vpop.f32.mrf.mxu1  ;;  %v1140_v27 = vadd.f32 %v1139_v31, %v1062_v43  ;;  %v970_v23 = vadd.f32 %v2793_v15, %v969_v40  ;;  %v1106_v48 = vadd.f32 %v1105_v53, %v1104_v56  ;;  %v1064_v25 = vmul.f32 %v2798_v55, %v2798_v55 }
 0x11e   :  { %3655 = vst [vmem:[#allocation32_spill] sm:$0xff] %v2828_v24  ;;  %v2833_v12 = vpop.f32.mrf.mxu0  ;;  %v1120_v60 = vadd.f32 %v1119_v28, %v1047_v36  ;;  %v991_v20 = vadd.f32 %v2798_v55, %v990_v17  ;;  %v1049_v57 = vmul.f32 %v2825_v49, %v2825_v49  ;;  %v1065_v56 = vmul.f32 %v2828_v24, %v2828_v24 }
 0x11f   :  { %3656 = vst [vmem:[#allocation33_spill] sm:$0xff] %v2833_v12  ;;  %v2838_v39 = vpop.f32.mrf.mxu1  ;;  %v1141_v63 = vadd.f32 %v1140_v27, %v1063_v61  ;;  %v971_v31 = vadd.f32 %v970_v23, %v2825_v49  ;;  %v956_v40 = vrot.slane %v955_v8, 2  ;;  %v1086_v17 = vrot.slane %v1085_v51, 2 }
 0x120   :  { %3657 = vst [vmem:[#allocation34_spill] sm:$0xff] %v2838_v39  ;;  %v2843_v16 = vpop.f32.mrf.mxu0  ;;  %v1121_v43 = vadd.f32 %v1120_v60, %v1048_v45  ;;  %v992_v37 = vadd.f32 %v991_v20, %v2828_v24  ;;  %v1107_v60 = vrot.slane %v1106_v48, 2  ;;  %v1051_v55 = vmul.f32 %v2815_v33, %v2815_v33 }
 0x121   :  { %3658 = vst [vmem:[#allocation35_spill] sm:$0xff] %v2843_v16  ;;  %v2848_v47 = vpop.f32.mrf.mxu1  ;;  %v1050_v28 = vmul.f32 %v2843_v16, %v2843_v16  ;;  %v1142_v53 = vadd.f32 %v1141_v63, %v1064_v25  ;;  %v972_v23 = vadd.f32 %v971_v31, %v2843_v16  ;;  %v936_v24 = vadd.f32 %v935_v59, %v934_v52 }
 0x122   :  { %3659 = vst [vmem:[#allocation36_spill] sm:$0xff] %v2848_v47  ;;  %v1066_v36 = vmul.f32 %v2848_v47, %v2848_v47  ;;  %v1122_v61 = vadd.f32 %v1121_v43, %v1049_v57  ;;  %v993_v45 = vadd.f32 %v992_v37, %v2848_v47  ;;  %v1067_v63 = vmul.f32 %v2822_v11, %v2822_v11 }
 0x123   :  { %v1143_v27 = vadd.f32 %v1142_v53, %v1065_v56  ;;  %v973_v20 = vadd.f32 %v2815_v33, %v972_v23  ;;  %v957_v43 = vadd.f32 %v956_v40, %v955_v8  ;;  %v1052_v31 = vmul.f32 %v2833_v12, %v2833_v12 }
 0x124   :  { %v1123_v7 = vadd.f32 %v1122_v61, %v1050_v28  ;;  %v994_v25 = vadd.f32 %v2822_v11, %v993_v45  ;;  %v1068_v53 = vmul.f32 %v2838_v39, %v2838_v39  ;;  %v1087_v52 = vadd.f32 %v1086_v17, %v1085_v51 }
 0x125   :  { %v1144_v57 = vadd.f32 %v1143_v27, %v1066_v36  ;;  %v974_v37 = vadd.f32 %v2833_v12, %v973_v20  ;;  %v1108_v59 = vadd.f32 %v1107_v60, %v1106_v48  ;;  %v937_v36 = vrot.slane %v936_v24, 1 }
 0x126   :  { %v1124_v56 = vadd.f32 %v1123_v7, %v1051_v55  ;;  %v995_v23 = vadd.f32 %v2838_v39, %v994_v25  ;;  %v958_v8 = vrot.slane %v957_v43, 1  ;;  %v1088_v20 = vrot.slane %v1087_v52, 1 }
 0x127   :  { %v1145_v28 = vadd.f32 %v1144_v57, %v1067_v63  ;;  %v975_v61 = vrot.slane %v974_v37, 4  ;;  %v1109_v55 = vrot.slane %v1108_v59, 1  ;;  %v938_v25 = vadd.f32 %v937_v36, %v936_v24 }
 0x128   :  { %v1125_v47 = vadd.f32 %v1124_v56, %v1052_v31  ;;  %v996_v33 = vrot.slane %v995_v23, 4  ;;  %v959_v63 = vadd.f32 %v958_v8, %v957_v43  ;;  %v1089_v57 = vadd.f32 %v1088_v20, %v1087_v52  ;;  %v1161_v20 = vld [vmem:[%s3581_s2] sm:$0x1] }
 0x129   :  { %v1146_v45 = vadd.f32 %v1145_v28, %v1068_v53  ;;  %v976_v40 = vadd.f32 %v975_v61, %v974_v37  ;;  %v1110_v31 = vadd.f32 %v1109_v55, %v1108_v59 }
 0x12a   :  { %v1126_v27 = vrot.slane %v1125_v47, 4  ;;  %v997_v11 = vadd.f32 %v996_v33, %v995_v23  ;;  %v1002_v33 = vadd.f32 %v959_v63, %v938_v25 }
 0x12b   :  { %v1147_v16 = vrot.slane %v1146_v45, 4  ;;  %v977_v7 = vrot.slane %v976_v40, 2  ;;  %v1153_v44 = vadd.f32 %v1110_v31, %v1089_v57 }
 0x12c   :  { %v1127_v12 = vadd.f32 %v1126_v27, %v1125_v47  ;;  %v998_v49 = vrot.slane %v997_v11, 2 }
 0x12d   :  { %v1148_v15 = vadd.f32 %v1147_v16, %v1146_v45  ;;  %v978_v51 = vadd.f32 %v977_v7, %v976_v40 }
 0x12e   :  { %v1128_v48 = vrot.slane %v1127_v12, 2  ;;  %v999_v17 = vadd.f32 %v998_v49, %v997_v11 }
 0x12f   :  { %v1149_v60 = vrot.slane %v1148_v15, 2  ;;  %v979_v56 = vrot.slane %v978_v51, 1 }
 0x130   :  { %v1129_v53 = vadd.f32 %v1128_v48, %v1127_v12  ;;  %v1000_v37 = vrot.slane %v999_v17, 1 }
 0x131   :  { %v1150_v28 = vadd.f32 %v1149_v60, %v1148_v15  ;;  %v980_v23 = vadd.f32 %v979_v56, %v978_v51  ;;  %v1169_v15 = vlaneseq  ;;  %v3660_v56 = vld [vmem:[#allocation4_spill] sm:$0xff] }
 0x132   :  { %v1130_v61 = vrot.slane %v1129_v53, 1  ;;  %v1001_v16 = vadd.f32 %v1000_v37, %v999_v17  ;;  %v3662_v37 = vld [vmem:[#allocation3_spill] sm:$0xff] }
 0x133   :  { %v1151_v39 = vrot.slane %v1150_v28, 1  ;;  %v1003_v47 = vadd.f32 %v1002_v33, %v980_v23  ;;  %v2874_v40 = vshrl.u32 %v1169_v15, 7  ;;  %v3664_v33 = vld [vmem:[#allocation11_spill] sm:$0xff]  ;;  %v3665_v23 = vld [vmem:[#allocation5_spill] sm:$0xff] }
 0x134   :  { %v1131_v27 = vadd.f32 %v1130_v61, %v1129_v53  ;;  %v3661_v53 = vld [vmem:[#allocation2_spill] sm:$0xff] }
 0x135   :  { %v1004_v43 = vadd.f32 %v1003_v47, %v1001_v16  ;;  %v1152_v45 = vadd.f32 %v1151_v39, %v1150_v28  ;;  %v3619_v55 = vsub.s32 0, %v2874_v40  ;;  %v2883_v39 = vld [vmem:[%s3582_s3] sm:$0x1]  ;;  %v3663_v28 = vld [vmem:[#allocation7_spill] sm:$0xff]  ;;  %v3666_v47 = vld [vmem:[#allocation9_spill] sm:$0xff] }
 0x136   :  { %v1154_v24 = vadd.f32 %v1153_v44, %v1131_v27  ;;  %v3667_v16 = vld [vmem:[#allocation15_spill] sm:$0xff] }
 0x137   :  { %v1156_v11 = vmul.f32 0.001953125, %v1004_v43  ;;  %v3668_v43 = vld [vmem:[#allocation19_spill] sm:$0xff] }
 0x138   :  { %v1155_v36 = vadd.f32 %v1154_v24, %v1152_v45 }
 0x139   :  { %v1158_v52 = vmul.f32 %v1156_v11, %v1156_v11 }
 0x13a   :  { %v1157_v49 = vmul.f32 0.001953125, %v1155_v36  ;;  %v3669_v36 = vld [vmem:[#allocation13_spill] sm:$0xff] }
 0x13c   :  { %v1159_v59 = vsub.f32 %v1157_v49, %v1158_v52  ;;  %v3670_v49 = vld [vmem:[#allocation17_spill] sm:$0xff] }
 0x13e   :  { %v1160_v8 = vmax.f32 %v1159_v59, 0.0  ;;  %v3671_v59 = vld [vmem:[#allocation23_spill] sm:$0xff] }
 0x140   :  { %v1162_v12 = vadd.f32 1e-05, %v1160_v8 }
 0x142   :  { %2335 = vrsqrt.f32 %v1162_v12  ;;  %v3672_v12 = vld [vmem:[#allocation27_spill] sm:$0xff] }
 0x14f   :  { %v2336_v44 = vpop.eup %2335 }
 0x150   :  { %v1164_v7 = vmul.f32 %v2336_v44, %v1161_v20  ;;  %v3673_v20 = vld [vmem:[#allocation21_spill] sm:$0xff] }
 0x152   :  { %v2885_v25 = vmul.f32 %v1164_v7, %v1156_v11  ;;  %v2889_v63 = vrot.slane %v1164_v7, %v3619_v55  ;;  %v3674_v7 = vld [vmem:[#allocation25_spill] sm:$0xff]  ;;  %v3691_v55 = vld [vmem:[#allocation18_spill] sm:$0xff] }
 0x154   :  { %v1167_v51 = vsub.f32 %v2883_v39, %v2885_v25  ;;  %v2895_v48 = vmul.f32 %v2889_v63, %v2558_v2  ;;  %v2899_v17 = vmul.f32 %v2889_v63, %v2566_v6  ;;  %v2903_v60 = vmul.f32 %v2554_v0, %v2889_v63  ;;  %v3675_v25 = vld [vmem:[#allocation31_spill] sm:$0xff] }
 0x155   :  { %v2907_v57 = vmul.f32 %v2562_v4, %v2889_v63  ;;  %v2911_v31 = vmul.f32 %v2889_v63, %v2592_v22  ;;  %v2915_v2 = vmul.f32 %v2889_v63, %v2612_v38  ;;  %v2919_v6 = vmul.f32 %v2582_v14, %v2889_v63 }
 0x156   :  { %v2923_v0 = vmul.f32 %v2602_v30, %v2889_v63  ;;  %v2927_v4 = vmul.f32 %v2889_v63, %v2632_v54  ;;  %v2931_v22 = vmul.f32 %v2889_v63, %v2650_v13  ;;  %v2935_v38 = vmul.f32 %v2622_v46, %v2889_v63 }
 0x157   :  { %v2939_v14 = vmul.f32 %v2642_v62, %v2889_v63  ;;  %v2943_v30 = vmul.f32 %v2889_v63, %v2666_v29  ;;  %v2947_v54 = vmul.f32 %v2889_v63, %v2678_v41  ;;  %v2951_v13 = vmul.f32 %v2659_v21, %v2889_v63 }
 0x158   :  { %v2955_v46 = vmul.f32 %v2673_v35, %v2889_v63  ;;  %v2959_v62 = vmul.f32 %v2889_v63, %v2560_v3  ;;  %v2963_v29 = vmul.f32 %v2889_v63, %v2574_v10  ;;  %v2967_v41 = vmul.f32 %v2556_v1, %v2889_v63 }
 0x159   :  { %v2971_v21 = vmul.f32 %v2564_v5, %v2889_v63  ;;  %v2975_v35 = vmul.f32 %v2889_v63, %v2597_v26  ;;  %v2979_v3 = vmul.f32 %v2889_v63, %v2617_v42  ;;  %v2983_v10 = vmul.f32 %v2587_v18, %v2889_v63 }
 0x15a   :  { %v2987_v1 = vmul.f32 %v2607_v34, %v2889_v63  ;;  %v2991_v5 = vmul.f32 %v2889_v63, %v2637_v58  ;;  %v2995_v26 = vmul.f32 %v2889_v63, %v2655_v19  ;;  %v2999_v42 = vmul.f32 %v2627_v50, %v2889_v63 }
 0x15b   :  { %v3003_v18 = vmul.f32 %v2647_v9, %v2889_v63  ;;  %v3007_v34 = vmul.f32 %v2889_v63, %v2669_v32  ;;  %v3011_v58 = vmul.f32 %v2889_v63, %v3660_v56  ;;  %v3015_v19 = vmul.f32 %v3661_v53, %v2889_v63  ;;  %v3676_v53 = vld [vmem:[#allocation35_spill] sm:$0xff] }
 0x15c   :  { %v3019_v50 = vmul.f32 %v3662_v37, %v2889_v63  ;;  %v3023_v9 = vmul.f32 %v2889_v63, %v3663_v28  ;;  %v3027_v32 = vmul.f32 %v2889_v63, %v3664_v33  ;;  %v3031_v61 = vmul.f32 %v3665_v23, %v2889_v63  ;;  %v3677_v28 = vld [vmem:[#allocation29_spill] sm:$0xff] }
 0x15d   :  { %v3035_v27 = vmul.f32 %v3666_v47, %v2889_v63  ;;  %v3039_v24 = vmul.f32 %v2889_v63, %v3667_v16  ;;  %v3043_v45 = vmul.f32 %v2889_v63, %v3668_v43  ;;  %v3047_v11 = vmul.f32 %v3669_v36, %v2889_v63  ;;  %v3678_v23 = vld [vmem:[#allocation33_spill] sm:$0xff]  ;;  %v3679_v16 = vld [vmem:[#allocation8_spill] sm:$0xff] }
 0x15e   :  { %v3051_v52 = vmul.f32 %v3670_v49, %v2889_v63  ;;  %v3055_v8 = vmul.f32 %v2889_v63, %v3671_v59  ;;  %v3059_v15 = vmul.f32 %v2889_v63, %v3672_v12  ;;  %v3063_v44 = vmul.f32 %v3673_v20, %v2889_v63  ;;  %v3680_v36 = vld [vmem:[#allocation12_spill] sm:$0xff]  ;;  %v3681_v59 = vld [vmem:[#allocation6_spill] sm:$0xff] }
 0x15f   :  { %v3067_v39 = vmul.f32 %v3674_v7, %v2889_v63  ;;  %v3071_v56 = vmul.f32 %v2889_v63, %v3675_v25  ;;  %v3075_v37 = vmul.f32 %v2889_v63, %v3676_v53  ;;  %v3079_v33 = vmul.f32 %v3677_v28, %v2889_v63  ;;  %v3683_v20 = vld [vmem:[#allocation10_spill] sm:$0xff]  ;;  %v3685_v25 = vld [vmem:[#allocation16_spill] sm:$0xff] }
 0x160   :  { %v3083_v47 = vmul.f32 %v3678_v23, %v2889_v63  ;;  %v3087_v43 = vmul.f32 %v2889_v63, %v3679_v16  ;;  %v3091_v49 = vmul.f32 %v2889_v63, %v3680_v36  ;;  %v3095_v12 = vmul.f32 %v3681_v59, %v2889_v63  ;;  %v3687_v28 = vld [vmem:[#allocation20_spill] sm:$0xff]  ;;  %v3689_v16 = vld [vmem:[#allocation14_spill] sm:$0xff] }
 0x161   :  { %v3099_v7 = vmul.f32 %v3683_v20, %v2889_v63  ;;  %v3103_v53 = vmul.f32 %v2889_v63, %v3685_v25  ;;  %v3107_v23 = vmul.f32 %v2889_v63, %v3687_v28  ;;  %v3111_v36 = vmul.f32 %v3689_v16, %v2889_v63 }
 0x162   :  { %3682 = vst [vmem:[#allocation4_spill] sm:$0xff] %v3095_v12  ;;  %v3115_v59 = vmul.f32 %v3691_v55, %v2889_v63  ;;  %v3693_v12 = vld [vmem:[#allocation24_spill] sm:$0xff] }
 0x163   :  { %3684 = vst [vmem:[#allocation2_spill] sm:$0xff] %v3099_v7  ;;  %3686 = vst [vmem:[#allocation3_spill] sm:$0xff] %v3103_v53  ;;  %v3119_v20 = vmul.f32 %v2889_v63, %v3693_v12  ;;  %v3695_v7 = vld [vmem:[#allocation28_spill] sm:$0xff]  ;;  %v3697_v53 = vld [vmem:[#allocation22_spill] sm:$0xff] }
 0x164   :  { %3688 = vst [vmem:[#allocation7_spill] sm:$0xff] %v3107_v23  ;;  %3690 = vst [vmem:[#allocation11_spill] sm:$0xff] %v3111_v36  ;;  %v3123_v25 = vmul.f32 %v2889_v63, %v3695_v7  ;;  %v3127_v28 = vmul.f32 %v3697_v53, %v2889_v63  ;;  %v3699_v23 = vld [vmem:[#allocation26_spill] sm:$0xff]  ;;  %v3700_v36 = vsub.s32 0, %v2874_v40 }
 0x165   :  { %3692 = vst [vmem:[#allocation5_spill] sm:$0xff] %v3115_v59  ;;  %3694 = vst [vmem:[#allocation9_spill] sm:$0xff] %v3119_v20  ;;  %v3131_v16 = vmul.f32 %v3699_v23, %v2889_v63  ;;  %v3701_v59 = vld [vmem:[#allocation32_spill] sm:$0xff] }
 0x166   :  { %3696 = vst [vmem:[#allocation15_spill] sm:$0xff] %v3123_v25  ;;  %3698 = vst [vmem:[#allocation19_spill] sm:$0xff] %v3127_v28  ;;  %v3135_v55 = vrot.slane %v1167_v51, %v3700_v36  ;;  %v3139_v12 = vmul.f32 %v2889_v63, %v3701_v59  ;;  %v3702_v20 = vld [vmem:[#allocation36_spill] sm:$0xff]  ;;  %v3703_v25 = vld [vmem:[#allocation30_spill] sm:$0xff] }
 0x167   :  { %v3143_v7 = vmul.f32 %v2889_v63, %v3702_v20  ;;  %v3147_v53 = vmul.f32 %v3703_v25, %v2889_v63  ;;  %v3704_v28 = vld [vmem:[#allocation34_spill] sm:$0xff] }
 0x168   :  { %v3151_v23 = vmul.f32 %v3704_v28, %v2889_v63  ;;  %v3155_v40 = vadd.f32 %v3135_v55, %v2895_v48  ;;  %v3159_v51 = vadd.f32 %v3135_v55, %v2899_v17  ;;  %v3163_v36 = vadd.f32 %v3135_v55, %v2903_v60 }
 0x169   :  { %v3167_v59 = vadd.f32 %v3135_v55, %v2907_v57  ;;  %v3171_v63 = vadd.f32 %v3135_v55, %v2911_v31  ;;  %v3175_v48 = vadd.f32 %v3135_v55, %v2915_v2  ;;  %v3179_v17 = vadd.f32 %v3135_v55, %v2919_v6  ;;  %v3713_v20 = vld [vmem:[#allocation4_spill] sm:$0xff] }
 0x16a   :  { %3705 = vst [vmem:[#allocation13_spill] sm:$0xff] %v3155_v40  ;;  %3706 = vst [vmem:[#allocation17_spill] sm:$0xff] %v3159_v51  ;;  %v3183_v60 = vadd.f32 %v3135_v55, %v2923_v0  ;;  %v3187_v57 = vadd.f32 %v3135_v55, %v2927_v4  ;;  %v3191_v31 = vadd.f32 %v3135_v55, %v2931_v22  ;;  %v3715_v25 = vld [vmem:[#allocation2_spill] sm:$0xff]  ;;  %v3717_v28 = vld [vmem:[#allocation3_spill] sm:$0xff] }
 0x16b   :  { %3707 = vst [vmem:[#allocation23_spill] sm:$0xff] %v3163_v36  ;;  %3708 = vst [vmem:[#allocation27_spill] sm:$0xff] %v3167_v59  ;;  %v3195_v2 = vadd.f32 %v3135_v55, %v2935_v38  ;;  %v3199_v6 = vadd.f32 %v3135_v55, %v2939_v14  ;;  %v3203_v0 = vadd.f32 %v3135_v55, %v2943_v30 }
 0x16c   :  { %3709 = vst [vmem:[#allocation21_spill] sm:$0xff] %v3171_v63  ;;  %v3207_v4 = vadd.f32 %v3135_v55, %v2947_v54  ;;  %v3211_v22 = vadd.f32 %v3135_v55, %v2951_v13  ;;  %v3215_v38 = vadd.f32 %v3135_v55, %v2955_v46  ;;  %v3219_v14 = vadd.f32 %v3135_v55, %v2959_v62 }
 0x16d   :  { %v3223_v30 = vadd.f32 %v3135_v55, %v2963_v29  ;;  %v3227_v54 = vadd.f32 %v3135_v55, %v2967_v41  ;;  %v3231_v13 = vadd.f32 %v3135_v55, %v2971_v21  ;;  %v3235_v46 = vadd.f32 %v3135_v55, %v2975_v35 }
 0x16e   :  { %v3239_v62 = vadd.f32 %v3135_v55, %v2979_v3  ;;  %v3243_v29 = vadd.f32 %v3135_v55, %v2983_v10  ;;  %v3247_v41 = vadd.f32 %v3135_v55, %v2987_v1  ;;  %v3251_v21 = vadd.f32 %v3135_v55, %v2991_v5 }
 0x16f   :  { %v3255_v35 = vadd.f32 %v3135_v55, %v2995_v26  ;;  %v3259_v3 = vadd.f32 %v3135_v55, %v2999_v42  ;;  %v3263_v10 = vadd.f32 %v3135_v55, %v3003_v18  ;;  %v3267_v1 = vadd.f32 %v3135_v55, %v3007_v34 }
 0x170   :  { %v3271_v5 = vadd.f32 %v3135_v55, %v3011_v58  ;;  %v3275_v26 = vadd.f32 %v3135_v55, %v3015_v19  ;;  %v3279_v42 = vadd.f32 %v3135_v55, %v3019_v50  ;;  %v3283_v18 = vadd.f32 %v3135_v55, %v3023_v9 }
 0x171   :  { %v3287_v34 = vadd.f32 %v3135_v55, %v3027_v32  ;;  %v3291_v58 = vadd.f32 %v3135_v55, %v3031_v61  ;;  %v3295_v19 = vadd.f32 %v3135_v55, %v3035_v27  ;;  %v3299_v50 = vadd.f32 %v3135_v55, %v3039_v24 }
 0x172   :  { %v3303_v9 = vadd.f32 %v3135_v55, %v3043_v45  ;;  %v3307_v32 = vadd.f32 %v3135_v55, %v3047_v11  ;;  %v3311_v61 = vadd.f32 %v3135_v55, %v3051_v52  ;;  %v3315_v27 = vadd.f32 %v3135_v55, %v3055_v8 }
 0x173   :  { %v3319_v24 = vadd.f32 %v3135_v55, %v3059_v15  ;;  %v3323_v45 = vadd.f32 %v3135_v55, %v3063_v44  ;;  %v3327_v11 = vadd.f32 %v3135_v55, %v3067_v39  ;;  %v3331_v52 = vadd.f32 %v3135_v55, %v3071_v56 }
 0x174   :  { %v3335_v8 = vadd.f32 %v3135_v55, %v3075_v37  ;;  %v3339_v15 = vadd.f32 %v3135_v55, %v3079_v33  ;;  %v3343_v44 = vadd.f32 %v3135_v55, %v3083_v47  ;;  %v3347_v39 = vadd.f32 %v3135_v55, %v3087_v43 }
 0x175   :  { %v3351_v56 = vadd.f32 %v3135_v55, %v3091_v49  ;;  %v3355_v37 = vadd.f32 %v3135_v55, %v3713_v20  ;;  %v3359_v33 = vadd.f32 %v3135_v55, %v3715_v25  ;;  %v3363_v47 = vadd.f32 %v3135_v55, %v3717_v28 }
 0x176   :  { %3710 = vst [vmem:[#allocation25_spill] sm:$0xff] %v3343_v44  ;;  %3711 = vst [vmem:[#allocation31_spill] sm:$0xff] %v3347_v39  ;;  %v3719_v44 = vld [vmem:[#allocation7_spill] sm:$0xff] }
 0x177   :  { %3712 = vst [vmem:[#allocation35_spill] sm:$0xff] %v3351_v56  ;;  %3714 = vst [vmem:[#allocation29_spill] sm:$0xff] %v3355_v37  ;;  %v3367_v43 = vadd.f32 %v3135_v55, %v3719_v44  ;;  %v3720_v39 = vld [vmem:[#allocation11_spill] sm:$0xff]  ;;  %v3721_v56 = vld [vmem:[#allocation5_spill] sm:$0xff] }
 0x178   :  { %3716 = vst [vmem:[#allocation33_spill] sm:$0xff] %v3359_v33  ;;  %3718 = vst [vmem:[#allocation8_spill] sm:$0xff] %v3363_v47  ;;  %v3371_v49 = vadd.f32 %v3135_v55, %v3720_v39  ;;  %v3375_v20 = vadd.f32 %v3135_v55, %v3721_v56  ;;  %v3722_v37 = vld [vmem:[#allocation9_spill] sm:$0xff]  ;;  %v3723_v33 = vld [vmem:[#allocation15_spill] sm:$0xff]  ;;  %v3391_v39 = vadd.f32 %v3135_v55, %v3131_v16  ;;  %v1319_v16 = vmax.f32 %v3199_v6, 0.0 }
 0x179   :  { %v3379_v25 = vadd.f32 %v3135_v55, %v3722_v37  ;;  %v3383_v28 = vadd.f32 %v3135_v55, %v3723_v33  ;;  %v3724_v47 = vld [vmem:[#allocation19_spill] sm:$0xff]  ;;  %v3395_v56 = vadd.f32 %v3135_v55, %v3139_v12  ;;  %v3399_v37 = vadd.f32 %v3135_v55, %v3143_v7 }
 0x17a   :  { %v3387_v44 = vadd.f32 %v3135_v55, %v3724_v47  ;;  %3726 = vst [vmem:[#allocation6_spill] sm:$0xff] %v3391_v39  ;;  %v3403_v33 = vadd.f32 %v3135_v55, %v3147_v53  ;;  %v3407_v47 = vadd.f32 %v3135_v55, %v3151_v23  ;;  %v1313_v7 = vmax.f32 %v3175_v48, 0.0 }
 0x17b   :  { %3727 = vst [vmem:[#allocation10_spill] sm:$0xff] %v3395_v56  ;;  %3728 = vst [vmem:[#allocation16_spill] sm:$0xff] %v3399_v37  ;;  %v1314_v37 = vmax.f32 %v3179_v17, 0.0  ;;  %v1315_v53 = vmax.f32 %v3183_v60, 0.0  ;;  %v1317_v55 = vmax.f32 %v3191_v31, 0.0  ;;  %v1318_v23 = vmax.f32 %v3195_v2, 0.0 }
 0x17c   :  { %3725 = vst [vmem:[#allocation12_spill] sm:$0xff] %v3387_v44  ;;  %3729 = vst [vmem:[#allocation20_spill] sm:$0xff] %v3403_v33  ;;  %v1316_v33 = vmax.f32 %v3187_v57, 0.0  ;;  %v1320_v39 = vmax.f32 %v3203_v0, 0.0  ;;  %v1321_v12 = vmax.f32 %v3207_v4, 0.0  ;;  %v1322_v56 = vmax.f32 %v3211_v22, 0.0 }
 0x17d   :  { %3730 = vst [vmem:[#allocation14_spill] sm:$0xff] %v3407_v47  ;;  %v1323_v48 = vmax.f32 %v3215_v38, 0.0  ;;  %v1324_v17 = vmax.f32 %v3219_v14, 0.0  ;;  %v1325_v60 = vmax.f32 %v3223_v30, 0.0  ;;  %v1326_v57 = vmax.f32 %v3227_v54, 0.0  ;;  %v3731_v44 = vld [vmem:[#allocation25_spill] sm:$0xff] }
 0x17e   :  { %v1327_v31 = vmax.f32 %v3231_v13, 0.0  ;;  %v1328_v2 = vmax.f32 %v3235_v46, 0.0  ;;  %v1329_v6 = vmax.f32 %v3239_v62, 0.0  ;;  %v1330_v0 = vmax.f32 %v3243_v29, 0.0  ;;  %v3732_v63 = vld [vmem:[#allocation31_spill] sm:$0xff]  ;;  %v3734_v36 = vld [vmem:[#allocation29_spill] sm:$0xff] }
 0x17f   :  { %v1331_v4 = vmax.f32 %v3247_v41, 0.0  ;;  %v1332_v22 = vmax.f32 %v3251_v21, 0.0  ;;  %v1333_v38 = vmax.f32 %v3255_v35, 0.0  ;;  %v1334_v14 = vmax.f32 %v3259_v3, 0.0  ;;  %v3733_v59 = vld [vmem:[#allocation35_spill] sm:$0xff]  ;;  %v3735_v51 = vld [vmem:[#allocation33_spill] sm:$0xff] }
 0x180   :  { %v1335_v30 = vmax.f32 %v3263_v10, 0.0  ;;  %v1336_v54 = vmax.f32 %v3267_v1, 0.0  ;;  %v1337_v13 = vmax.f32 %v3271_v5, 0.0  ;;  %v1338_v46 = vmax.f32 %v3275_v26, 0.0  ;;  %v3736_v40 = vld [vmem:[#allocation8_spill] sm:$0xff] }
 0x181   :  { %v1339_v62 = vmax.f32 %v3279_v42, 0.0  ;;  %v1340_v29 = vmax.f32 %v3283_v18, 0.0  ;;  %v1341_v41 = vmax.f32 %v3287_v34, 0.0  ;;  %v1342_v21 = vmax.f32 %v3291_v58, 0.0 }
 0x182   :  { %v1343_v35 = vmax.f32 %v3295_v19, 0.0  ;;  %v1344_v3 = vmax.f32 %v3299_v50, 0.0  ;;  %v1345_v10 = vmax.f32 %v3303_v9, 0.0  ;;  %v1346_v1 = vmax.f32 %v3307_v32, 0.0 }
 0x183   :  { %v1347_v5 = vmax.f32 %v3311_v61, 0.0  ;;  %v1348_v26 = vmax.f32 %v3315_v27, 0.0  ;;  %v1349_v42 = vmax.f32 %v3319_v24, 0.0  ;;  %v1350_v18 = vmax.f32 %v3323_v45, 0.0  ;;  %v3737_v47 = vld [vmem:[#allocation12_spill] sm:$0xff] }
 0x184   :  { %v1351_v34 = vmax.f32 %v3327_v11, 0.0  ;;  %v1352_v58 = vmax.f32 %v3331_v52, 0.0  ;;  %v1353_v19 = vmax.f32 %v3335_v8, 0.0  ;;  %v1354_v50 = vmax.f32 %v3339_v15, 0.0 }
 0x185   :  { %v1355_v9 = vmax.f32 %v3731_v44, 0.0  ;;  %v1356_v32 = vmax.f32 %v3732_v63, 0.0  ;;  %v1357_v61 = vmax.f32 %v3733_v59, 0.0  ;;  %v1358_v27 = vmax.f32 %v3734_v36, 0.0  ;;  %v3738_v59 = vld [vmem:[#allocation6_spill] sm:$0xff] }
 0x186   :  { %v1359_v24 = vmax.f32 %v3735_v51, 0.0  ;;  %v1360_v45 = vmax.f32 %v3736_v40, 0.0  ;;  %v1361_v11 = vmax.f32 %v3367_v43, 0.0  ;;  %v1362_v52 = vmax.f32 %v3371_v49, 0.0  ;;  %v3739_v51 = vld [vmem:[#allocation10_spill] sm:$0xff]  ;;  %v3740_v43 = vld [vmem:[#allocation16_spill] sm:$0xff] }
 0x187   :  { %v1363_v8 = vmax.f32 %v3375_v20, 0.0  ;;  %v1364_v15 = vmax.f32 %v3379_v25, 0.0  ;;  %v1365_v44 = vmax.f32 %v3383_v28, 0.0  ;;  %v1366_v63 = vmax.f32 %v3737_v47, 0.0  ;;  %v3741_v20 = vld [vmem:[#allocation20_spill] sm:$0xff]  ;;  %v3742_v28 = vld [vmem:[#allocation14_spill] sm:$0xff] }
 0x188   :  { %v1367_v36 = vmax.f32 %v3738_v59, 0.0  ;;  %v1368_v40 = vmax.f32 %v3739_v51, 0.0  ;;  %v1369_v49 = vmax.f32 %v3740_v43, 0.0  ;;  %v1370_v25 = vmax.f32 %v3741_v20, 0.0  ;;  %v3743_v59 = vld [vmem:[#allocation13_spill] sm:$0xff] }
 0x189   :  { %v1371_v47 = vmax.f32 %v3742_v28, 0.0  ;;  %v3744_v51 = vmax.f32 %v3743_v59, 0.0  ;;  %v3745_v43 = vld [vmem:[#allocation17_spill] sm:$0xff]  ;;  %v3747_v59 = vld [vmem:[#allocation23_spill] sm:$0xff] }
 0x18a   :  { %v3746_v20 = vmax.f32 %v3745_v43, 0.0  ;;  %v3748_v43 = vmax.f32 %v3747_v59, 0.0 }
 0x18c   :  { %v1891_v28 = vpack.c.bf16 %v3746_v20, %v3744_v51  ;;  %v3749_v20 = vld [vmem:[#allocation27_spill] sm:$0xff] }
 0x18d   :  { %v3750_v51 = vmax.f32 %v3749_v20, 0.0  ;;  %v3751_v20 = vld [vmem:[#allocation21_spill] sm:$0xff] }
 0x18e   :  { %1892 = vst [vmem:[%s3583_s4] sm:$0xff] %v1891_v28  }
 0x18f   :  { %v1896_v59 = vpack.c.bf16 %v3750_v51, %v3748_v43  ;;  %v3752_v43 = vmax.f32 %v3751_v20, 0.0  ;;  %v1906_v20 = vpack.c.bf16 %v1315_v53, %v1314_v37  ;;  %v1921_v37 = vpack.c.bf16 %v1321_v12, %v1320_v39 }
 0x190   :  { %v1926_v53 = vpack.c.bf16 %v1323_v48, %v1322_v56  ;;  %v1941_v39 = vpack.c.bf16 %v1329_v6, %v1328_v2  ;;  %v1946_v56 = vpack.c.bf16 %v1331_v4, %v1330_v0  ;;  %v1951_v12 = vpack.c.bf16 %v1333_v38, %v1332_v22 }
 0x191   :  { %v1901_v51 = vpack.c.bf16 %v1313_v7, %v3752_v43  ;;  %v1911_v7 = vpack.c.bf16 %v1317_v55, %v1316_v33  ;;  %v1916_v43 = vpack.c.bf16 %v1319_v16, %v1318_v23  ;;  %2048 = vst [vmem:[%s3583_s4 + $0x8] sm:$0xff] %v1896_v59   ;;  %2050 = vst [vmem:[%s3583_s4 + $0x18] sm:$0xff] %v1906_v20  }
 0x192   :  { %v1931_v33 = vpack.c.bf16 %v1325_v60, %v1324_v17  ;;  %v1936_v16 = vpack.c.bf16 %v1327_v31, %v1326_v57  ;;  %2053 = vst [vmem:[%s3583_s4 + $0x30] sm:$0xff] %v1921_v37   ;;  %2054 = vst [vmem:[%s3583_s4 + $0x38] sm:$0xff] %v1926_v53   ;;  %v1956_v55 = vpack.c.bf16 %v1335_v30, %v1334_v14 }
 0x193   :  { %2049 = vst [vmem:[%s3583_s4 + $0x10] sm:$0xff] %v1901_v51   ;;  %2051 = vst [vmem:[%s3583_s4 + $0x20] sm:$0xff] %v1911_v7   ;;  %v1961_v23 = vpack.c.bf16 %v1337_v13, %v1336_v54  ;;  %v1966_v48 = vpack.c.bf16 %v1339_v62, %v1338_v46  ;;  %v1971_v17 = vpack.c.bf16 %v1341_v41, %v1340_v29 }
 0x194   :  { %2052 = vst [vmem:[%s3583_s4 + $0x28] sm:$0xff] %v1916_v43   ;;  %2055 = vst [vmem:[%s3583_s4 + $0x40] sm:$0xff] %v1931_v33   ;;  %v1976_v60 = vpack.c.bf16 %v1343_v35, %v1342_v21  ;;  %v1981_v57 = vpack.c.bf16 %v1345_v10, %v1344_v3  ;;  %v1986_v31 = vpack.c.bf16 %v1347_v5, %v1346_v1 }
 0x195   :  { %2056 = vst [vmem:[%s3583_s4 + $0x48] sm:$0xff] %v1936_v16   ;;  %2057 = vst [vmem:[%s3583_s4 + $0x50] sm:$0xff] %v1941_v39   ;;  %v1991_v2 = vpack.c.bf16 %v1349_v42, %v1348_v26  ;;  %v1996_v6 = vpack.c.bf16 %v1351_v34, %v1350_v18  ;;  %v2001_v0 = vpack.c.bf16 %v1353_v19, %v1352_v58 }
 0x196   :  { %2058 = vst [vmem:[%s3583_s4 + $0x58] sm:$0xff] %v1946_v56   ;;  %2059 = vst [vmem:[%s3583_s4 + $0x60] sm:$0xff] %v1951_v12   ;;  %v2006_v4 = vpack.c.bf16 %v1355_v9, %v1354_v50  ;;  %v2011_v22 = vpack.c.bf16 %v1357_v61, %v1356_v32  ;;  %v2016_v38 = vpack.c.bf16 %v1359_v24, %v1358_v27 }
 0x197   :  { %2060 = vst [vmem:[%s3583_s4 + $0x68] sm:$0xff] %v1956_v55   ;;  %2061 = vst [vmem:[%s3583_s4 + $0x70] sm:$0xff] %v1961_v23   ;;  %v2021_v14 = vpack.c.bf16 %v1361_v11, %v1360_v45  ;;  %v2026_v30 = vpack.c.bf16 %v1363_v8, %v1362_v52  ;;  %v2031_v54 = vpack.c.bf16 %v1365_v44, %v1364_v15 }
 0x198   :  { %2062 = vst [vmem:[%s3583_s4 + $0x78] sm:$0xff] %v1966_v48   ;;  %2063 = vst [vmem:[%s3583_s4 + $0x80] sm:$0xff] %v1971_v17   ;;  %v2036_v13 = vpack.c.bf16 %v1367_v36, %v1366_v63  ;;  %v2041_v46 = vpack.c.bf16 %v1369_v49, %v1368_v40  ;;  %v2046_v62 = vpack.c.bf16 %v1371_v47, %v1370_v25 }
 0x199   :  { %2064 = vst [vmem:[%s3583_s4 + $0x88] sm:$0xff] %v1976_v60   ;;  %2065 = vst [vmem:[%s3583_s4 + $0x90] sm:$0xff] %v1981_v57  }
 0x19a   :  { %2066 = vst [vmem:[%s3583_s4 + $0x98] sm:$0xff] %v1986_v31   ;;  %2067 = vst [vmem:[%s3583_s4 + $0xa0] sm:$0xff] %v1991_v2  }
 0x19b   :  { %2068 = vst [vmem:[%s3583_s4 + $0xa8] sm:$0xff] %v1996_v6   ;;  %2069 = vst [vmem:[%s3583_s4 + $0xb0] sm:$0xff] %v2001_v0  }
 0x19c   :  { %2070 = vst [vmem:[%s3583_s4 + $0xb8] sm:$0xff] %v2006_v4   ;;  %2071 = vst [vmem:[%s3583_s4 + $0xc0] sm:$0xff] %v2011_v22  }
 0x19d   :  { %2072 = vst [vmem:[%s3583_s4 + $0xc8] sm:$0xff] %v2016_v38   ;;  %2073 = vst [vmem:[%s3583_s4 + $0xd0] sm:$0xff] %v2021_v14  }
 0x19e   :  { %2074 = vst [vmem:[%s3583_s4 + $0xd8] sm:$0xff] %v2026_v30   ;;  %2075 = vst [vmem:[%s3583_s4 + $0xe0] sm:$0xff] %v2031_v54  }
 0x19f   :  { %2076 = vst [vmem:[%s3583_s4 + $0xe8] sm:$0xff] %v2036_v13   ;;  %2077 = vst [vmem:[%s3583_s4 + $0xf0] sm:$0xff] %v2041_v46  }
 0x1a0   :  { %2078 = vst [vmem:[%s3583_s4 + $0xf8] sm:$0xff] %v2046_v62  }

// kernel: generator_forward.9
= control target key start
LH: loop header
LB: loop body
LE: loop exit
PB: predicated region body
PF: predicated region fallthrough
CT: control target
= control target key end

     0   :  { %vm484_vm0 = vcmask 523264   ;;  %s6947_s1 = inlined_call_operand.vmem [shape: bf16[4,64,128], index: 1, kind: input, shape index: {}]   ;;  %s6948_s0 = inlined_call_operand.vmem [shape: bf16[4,512,64], index: 0, kind: input, shape index: {}]   ;;  %s6949_s2 = inlined_call_operand.vmem [shape: bf16[4,512,128], index: 2, kind: output, shape index: {}]  }
   0x1   :  { %v5844_v0 = vld [vmem:[%s6947_s1 + $0x18] sm:$0xff]   ;;  %v5846_v2 = vld [vmem:[%s6947_s1 + $0x10] sm:$0xff]   ;;  %v5848_v4 = vld [vmem:[%s6947_s1 + $0x8] sm:$0xff]  }
   0x2   :  { %v5845_v1 = vld [vmem:[%s6947_s1 + $0x38] sm:$0xff]   ;;  %5556 = vmatprep.subr.bf16.mxu0 %v5844_v0  ;;  %v5847_v3 = vld [vmem:[%s6947_s1 + $0x30] sm:$0xff]   ;;  %v5849_v5 = vld [vmem:[%s6947_s1 + $0x28] sm:$0xff]  }
   0x3   :  { %5628 = vmatprep.subr.bf16.mxu1 %v5845_v1  ;;  %5557 = vmatpush3.bf16.msra.mxu0 %v5844_v0  ;;  %v5850_v6 = vld [vmem:[%s6947_s1] sm:$0xff]   ;;  %v5856_v10 = vld [vmem:[%s6947_s1 + $0x58] sm:$0xff]   ;;  %v5854_v12 = vld [vmem:[%s6948_s0 + $0x8] sm:$0xff]  }
   0x4   :  { %5629 = vmatpush3.bf16.msra.mxu1 %v5845_v1  ;;  %5558 = vmatprep.subr.bf16.mxu0 %v5846_v2  ;;  %v5851_v7 = vld [vmem:[%s6947_s1 + $0x20] sm:$0xff]   ;;  %v5857_v11 = vld [vmem:[%s6947_s1 + $0x78] sm:$0xff]   ;;  %v5855_v13 = vld [vmem:[%s6948_s0 + $0x108] sm:$0xff]  }
   0x5   :  { %5630 = vmatprep.subr.bf16.mxu1 %v5847_v3  ;;  %v5852_v8 = vld [vmem:[%s6948_s0] sm:$0xff]   ;;  %v5858_v14 = vld [vmem:[%s6948_s0 + $0x10] sm:$0xff]   ;;  %v5860_v16 = vld [vmem:[%s6948_s0 + $0x18] sm:$0xff]  }
   0x6   :  { %v5853_v9 = vld [vmem:[%s6948_s0 + $0x100] sm:$0xff]   ;;  %5564 = vmatprep.mubr.msk.bf16.mxu0 %vm484_vm0, %v5852_v8  ;;  %v5859_v15 = vld [vmem:[%s6948_s0 + $0x110] sm:$0xff]   ;;  %v5861_v17 = vld [vmem:[%s6948_s0 + $0x118] sm:$0xff]  }
   0x7   :  { %5559 = vmatpush3.bf16.msra.mxu0 %v5846_v2  ;;  %5636 = vmatprep.mubr.msk.bf16.mxu1 %vm484_vm0, %v5853_v9  ;;  %v5862_v18 = vld [vmem:[%s6948_s0 + $0x20] sm:$0xff]   ;;  %v5864_v20 = vld [vmem:[%s6948_s0 + $0x28] sm:$0xff]   ;;  %v5866_v22 = vld [vmem:[%s6948_s0 + $0x30] sm:$0xff]  }
   0x8   :  { %5631 = vmatpush3.bf16.msra.mxu1 %v5847_v3  ;;  %5560 = vmatprep.subr.bf16.mxu0 %v5848_v4  ;;  %v5863_v19 = vld [vmem:[%s6948_s0 + $0x120] sm:$0xff]   ;;  %v5865_v21 = vld [vmem:[%s6948_s0 + $0x128] sm:$0xff]   ;;  %v5874_v23 = vld [vmem:[%s6947_s1 + $0x50] sm:$0xff]  }
   0x9   :  { %5632 = vmatprep.subr.bf16.mxu1 %v5849_v5  ;;  %v5875_v24 = vld [vmem:[%s6947_s1 + $0x70] sm:$0xff]   ;;  %v5868_v26 = vld [vmem:[%s6948_s0 + $0x38] sm:$0xff]   ;;  %v5870_v28 = vld [vmem:[%s6948_s0 + $0x40] sm:$0xff]  }
   0xa   :  { %v5867_v25 = vld [vmem:[%s6948_s0 + $0x130] sm:$0xff]   ;;  %v5869_v27 = vld [vmem:[%s6948_s0 + $0x138] sm:$0xff]   ;;  %v5871_v29 = vld [vmem:[%s6948_s0 + $0x140] sm:$0xff]  }
   0xb   :  { %5561 = vmatpush3.bf16.msra.mxu0 %v5848_v4  ;;  %v5872_v30 = vld [vmem:[%s6948_s0 + $0x48] sm:$0xff]   ;;  %v5876_v32 = vld [vmem:[%s6948_s0 + $0x50] sm:$0xff]   ;;  %v5878_v36 = vld [vmem:[%s6948_s0 + $0x58] sm:$0xff]  }
   0xc   :  { %5633 = vmatpush3.bf16.msra.mxu1 %v5849_v5  ;;  %5562 = vmatprep.subr.bf16.mxu0 %v5850_v6  ;;  %v5873_v31 = vld [vmem:[%s6948_s0 + $0x148] sm:$0xff]   ;;  %v5877_v33 = vld [vmem:[%s6948_s0 + $0x150] sm:$0xff]   ;;  %v5879_v37 = vld [vmem:[%s6948_s0 + $0x158] sm:$0xff]  }
   0xd   :  { %5634 = vmatprep.subr.bf16.mxu1 %v5851_v7  ;;  %v5892_v34 = vld [vmem:[%s6947_s1 + $0x48] sm:$0xff]   ;;  %v5880_v38 = vld [vmem:[%s6948_s0 + $0x60] sm:$0xff]   ;;  %v5884_v42 = vld [vmem:[%s6948_s0 + $0x70] sm:$0xff]  }
   0xe   :  { %v5893_v35 = vld [vmem:[%s6947_s1 + $0x68] sm:$0xff]   ;;  %v5881_v39 = vld [vmem:[%s6948_s0 + $0x160] sm:$0xff]   ;;  %v5885_v43 = vld [vmem:[%s6948_s0 + $0x170] sm:$0xff]  }
   0xf   :  { %5563 = vmatpush3.bf16.msra.mxu0 %v5850_v6  ;;  %v5882_v40 = vld [vmem:[%s6948_s0 + $0x68] sm:$0xff]   ;;  %v5910_v44 = vld [vmem:[%s6947_s1 + $0x40] sm:$0xff]   ;;  %v5886_v46 = vld [vmem:[%s6948_s0 + $0x78] sm:$0xff]  }
  0x10   :  { %5635 = vmatpush3.bf16.msra.mxu1 %v5851_v7  ;;  %5700 = vmatprep.subr.bf16.mxu0 %v5856_v10  ;;  %v5883_v41 = vld [vmem:[%s6948_s0 + $0x168] sm:$0xff]   ;;  %v5911_v45 = vld [vmem:[%s6947_s1 + $0x60] sm:$0xff]   ;;  %v5887_v47 = vld [vmem:[%s6948_s0 + $0x178] sm:$0xff]  }
  0x11   :  { %5772 = vmatprep.subr.bf16.mxu1 %v5857_v11  ;;  %v5888_v48 = vld [vmem:[%s6948_s0 + $0x80] sm:$0xff]   ;;  %v5890_v50 = vld [vmem:[%s6948_s0 + $0x88] sm:$0xff]   ;;  %v5894_v52 = vld [vmem:[%s6948_s0 + $0x90] sm:$0xff]  }
  0x12   :  { %5565 = vmatmul.mubr.msk.bf16.vlgmr.msra.gmra.mxu0 %vm484_vm0, %v5854_v12  ;;  %v5889_v49 = vld [vmem:[%s6948_s0 + $0x180] sm:$0xff]   ;;  %v5891_v51 = vld [vmem:[%s6948_s0 + $0x188] sm:$0xff]   ;;  %v5895_v53 = vld [vmem:[%s6948_s0 + $0x190] sm:$0xff]  }
  0x13   :  { %5637 = vmatmul.mubr.msk.bf16.vlgmr.msra.gmra.mxu1 %vm484_vm0, %v5855_v13  ;;  %5701 = vmatpush3.bf16.msra.mxu0 %v5856_v10  ;;  %v5896_v54 = vld [vmem:[%s6948_s0 + $0x98] sm:$0xff]   ;;  %v5898_v56 = vld [vmem:[%s6948_s0 + $0xa0] sm:$0xff]   ;;  %v5900_v58 = vld [vmem:[%s6948_s0 + $0xa8] sm:$0xff]  }
  0x14   :  { %5773 = vmatpush3.bf16.msra.mxu1 %v5857_v11  ;;  %5568 = vmatprep.mubr.msk.bf16.mxu0 %vm484_vm0, %v5858_v14  ;;  %v5897_v55 = vld [vmem:[%s6948_s0 + $0x198] sm:$0xff]   ;;  %v5899_v57 = vld [vmem:[%s6948_s0 + $0x1a0] sm:$0xff]   ;;  %v5901_v59 = vld [vmem:[%s6948_s0 + $0x1a8] sm:$0xff]  }
  0x15   :  { %5640 = vmatprep.mubr.msk.bf16.mxu1 %vm484_vm0, %v5859_v15  ;;  %5702 = vmatprep.subr.bf16.mxu0 %v5874_v23  ;;  %v5902_v60 = vld [vmem:[%s6948_s0 + $0xb0] sm:$0xff]   ;;  %v5904_v62 = vld [vmem:[%s6948_s0 + $0xb8] sm:$0xff]   ;;  %v5906_v0 = vld [vmem:[%s6948_s0 + $0xc0] sm:$0xff]  }
  0x16   :  { %5774 = vmatprep.subr.bf16.mxu1 %v5875_v24  ;;  %v5903_v61 = vld [vmem:[%s6948_s0 + $0x1b0] sm:$0xff]   ;;  %v5905_v63 = vld [vmem:[%s6948_s0 + $0x1b8] sm:$0xff]   ;;  %v5907_v1 = vld [vmem:[%s6948_s0 + $0x1c0] sm:$0xff]  }
  0x17   :  { %5703 = vmatpush3.bf16.msra.mxu0 %v5874_v23  ;;  %v5908_v2 = vld [vmem:[%s6948_s0 + $0xc8] sm:$0xff]   ;;  %v5912_v4 = vld [vmem:[%s6948_s0 + $0xd0] sm:$0xff]   ;;  %v5914_v6 = vld [vmem:[%s6948_s0 + $0xd8] sm:$0xff]  }
  0x18   :  { %5775 = vmatpush3.bf16.msra.mxu1 %v5875_v24  ;;  %5704 = vmatprep.subr.bf16.mxu0 %v5892_v34  ;;  %v5909_v3 = vld [vmem:[%s6948_s0 + $0x1c8] sm:$0xff]   ;;  %v5913_v5 = vld [vmem:[%s6948_s0 + $0x1d0] sm:$0xff]   ;;  %v5915_v7 = vld [vmem:[%s6948_s0 + $0x1d8] sm:$0xff]  }
  0x19   :  { %5776 = vmatprep.subr.bf16.mxu1 %v5893_v35  ;;  %v5916_v8 = vld [vmem:[%s6948_s0 + $0xe0] sm:$0xff]   ;;  %v5918_v10 = vld [vmem:[%s6948_s0 + $0xe8] sm:$0xff]   ;;  %v5920_v12 = vld [vmem:[%s6948_s0 + $0xf0] sm:$0xff]  }
  0x1a   :  { %5569 = vmatmul.mubr.msk.bf16.gmra.mxu0 %vm484_vm0, %v5860_v16  ;;  %v5917_v9 = vld [vmem:[%s6948_s0 + $0x1e0] sm:$0xff]   ;;  %v5919_v11 = vld [vmem:[%s6948_s0 + $0x1e8] sm:$0xff]   ;;  %v5921_v13 = vld [vmem:[%s6948_s0 + $0x1f0] sm:$0xff]  }
  0x1b   :  { %5641 = vmatmul.mubr.msk.bf16.gmra.mxu1 %vm484_vm0, %v5861_v17  ;;  %5572 = vmatprep.mubr.msk.bf16.mxu0 %vm484_vm0, %v5862_v18  ;;  %v5922_v14 = vld [vmem:[%s6948_s0 + $0xf8] sm:$0xff]   ;;  %v5924_v16 = vld [vmem:[%s6948_s0 + $0x200] sm:$0xff]   ;;  %v5926_v18 = vld [vmem:[%s6948_s0 + $0x208] sm:$0xff]  }
  0x1c   :  { %5644 = vmatprep.mubr.msk.bf16.mxu1 %vm484_vm0, %v5863_v19  ;;  %5705 = vmatpush3.bf16.msra.mxu0 %v5892_v34  ;;  %v5923_v15 = vld [vmem:[%s6948_s0 + $0x1f8] sm:$0xff]   ;;  %v5925_v17 = vld [vmem:[%s6948_s0 + $0x300] sm:$0xff]   ;;  %v5927_v19 = vld [vmem:[%s6948_s0 + $0x308] sm:$0xff]  }
  0x1d   :  { %5777 = vmatpush3.bf16.msra.mxu1 %v5893_v35  ;;  %5706 = vmatprep.subr.bf16.mxu0 %v5910_v44  ;;  %v5931_v23 = vld [vmem:[%s6948_s0 + $0x318] sm:$0xff]   ;;  %v5932_v24 = vld [vmem:[%s6948_s0 + $0x220] sm:$0xff]   ;;  %v5942_v34 = vld [vmem:[%s6948_s0 + $0x248] sm:$0xff]  }
  0x1e   :  { %5778 = vmatprep.subr.bf16.mxu1 %v5911_v45  ;;  %v5943_v35 = vld [vmem:[%s6948_s0 + $0x348] sm:$0xff]  }
  0x20   :  { %5707 = vmatpush3.bf16.msra.mxu0 %v5910_v44  ;;  %v5952_v44 = vld [vmem:[%s6948_s0 + $0x270] sm:$0xff]  }
  0x21   :  { %5779 = vmatpush3.bf16.msra.mxu1 %v5911_v45  ;;  %v5953_v45 = vld [vmem:[%s6948_s0 + $0x370] sm:$0xff]  }
  0x22   :  { %5573 = vmatmul.mubr.msk.bf16.gmra.mxu0 %vm484_vm0, %v5864_v20  ;;  %v5928_v20 = vld [vmem:[%s6948_s0 + $0x210] sm:$0xff]  }
  0x23   :  { %5645 = vmatmul.mubr.msk.bf16.gmra.mxu1 %vm484_vm0, %v5865_v21  ;;  %5576 = vmatprep.mubr.msk.bf16.mxu0 %vm484_vm0, %v5866_v22  ;;  %v5929_v21 = vld [vmem:[%s6948_s0 + $0x310] sm:$0xff]   ;;  %v5930_v22 = vld [vmem:[%s6948_s0 + $0x218] sm:$0xff]  }
  0x24   :  { %5648 = vmatprep.mubr.msk.bf16.mxu1 %vm484_vm0, %v5867_v25  ;;  %v5933_v25 = vld [vmem:[%s6948_s0 + $0x320] sm:$0xff]  }
  0x2a   :  { %5577 = vmatmul.mubr.msk.bf16.gmra.mxu0 %vm484_vm0, %v5868_v26  ;;  %v5934_v26 = vld [vmem:[%s6948_s0 + $0x228] sm:$0xff]  }
  0x2b   :  { %5649 = vmatmul.mubr.msk.bf16.gmra.mxu1 %vm484_vm0, %v5869_v27  ;;  %5580 = vmatprep.mubr.msk.bf16.mxu0 %vm484_vm0, %v5870_v28  ;;  %v5935_v27 = vld [vmem:[%s6948_s0 + $0x328] sm:$0xff]   ;;  %v5936_v28 = vld [vmem:[%s6948_s0 + $0x230] sm:$0xff]  }
  0x2c   :  { %5652 = vmatprep.mubr.msk.bf16.mxu1 %vm484_vm0, %v5871_v29  ;;  %v5937_v29 = vld [vmem:[%s6948_s0 + $0x330] sm:$0xff]  }
  0x32   :  { %5581 = vmatmul.mubr.msk.bf16.gmra.mxu0 %vm484_vm0, %v5872_v30  ;;  %v5938_v30 = vld [vmem:[%s6948_s0 + $0x238] sm:$0xff]  }
  0x33   :  { %5653 = vmatmul.mubr.msk.bf16.gmra.mxu1 %vm484_vm0, %v5873_v31  ;;  %5584 = vmatprep.mubr.msk.bf16.mxu0 %vm484_vm0, %v5876_v32  ;;  %v5939_v31 = vld [vmem:[%s6948_s0 + $0x338] sm:$0xff]   ;;  %v5940_v32 = vld [vmem:[%s6948_s0 + $0x240] sm:$0xff]  }
  0x34   :  { %5656 = vmatprep.mubr.msk.bf16.mxu1 %vm484_vm0, %v5877_v33  ;;  %v5941_v33 = vld [vmem:[%s6948_s0 + $0x340] sm:$0xff]  }
  0x3a   :  { %5585 = vmatmul.mubr.msk.bf16.gmra.mxu0 %vm484_vm0, %v5878_v36  ;;  %v5944_v36 = vld [vmem:[%s6948_s0 + $0x250] sm:$0xff]  }
  0x3b   :  { %5657 = vmatmul.mubr.msk.bf16.gmra.mxu1 %vm484_vm0, %v5879_v37  ;;  %5588 = vmatprep.mubr.msk.bf16.mxu0 %vm484_vm0, %v5880_v38  ;;  %v5945_v37 = vld [vmem:[%s6948_s0 + $0x350] sm:$0xff]   ;;  %v5946_v38 = vld [vmem:[%s6948_s0 + $0x258] sm:$0xff]  }
  0x3c   :  { %5660 = vmatprep.mubr.msk.bf16.mxu1 %vm484_vm0, %v5881_v39  ;;  %v5947_v39 = vld [vmem:[%s6948_s0 + $0x358] sm:$0xff]  }
  0x42   :  { %5589 = vmatmul.mubr.msk.bf16.gmra.mxu0 %vm484_vm0, %v5882_v40  ;;  %v5948_v40 = vld [vmem:[%s6948_s0 + $0x260] sm:$0xff]  }
  0x43   :  { %5661 = vmatmul.mubr.msk.bf16.gmra.mxu1 %vm484_vm0, %v5883_v41  ;;  %5592 = vmatprep.mubr.msk.bf16.mxu0 %vm484_vm0, %v5884_v42  ;;  %v5949_v41 = vld [vmem:[%s6948_s0 + $0x360] sm:$0xff]   ;;  %v5950_v42 = vld [vmem:[%s6948_s0 + $0x268] sm:$0xff]  }
  0x44   :  { %5664 = vmatprep.mubr.msk.bf16.mxu1 %vm484_vm0, %v5885_v43  ;;  %v5951_v43 = vld [vmem:[%s6948_s0 + $0x368] sm:$0xff]  }
  0x4a   :  { %5593 = vmatmul.mubr.msk.bf16.gmra.mxu0 %vm484_vm0, %v5886_v46  ;;  %v5954_v46 = vld [vmem:[%s6948_s0 + $0x278] sm:$0xff]  }
  0x4b   :  { %5665 = vmatmul.mubr.msk.bf16.gmra.mxu1 %vm484_vm0, %v5887_v47  ;;  %5596 = vmatprep.mubr.msk.bf16.mxu0 %vm484_vm0, %v5888_v48  ;;  %v5955_v47 = vld [vmem:[%s6948_s0 + $0x378] sm:$0xff]   ;;  %v5956_v48 = vld [vmem:[%s6948_s0 + $0x280] sm:$0xff]  }
  0x4c   :  { %5668 = vmatprep.mubr.msk.bf16.mxu1 %vm484_vm0, %v5889_v49  ;;  %v5957_v49 = vld [vmem:[%s6948_s0 + $0x380] sm:$0xff]  }
  0x52   :  { %5597 = vmatmul.mubr.msk.bf16.gmra.mxu0 %vm484_vm0, %v5890_v50  ;;  %v5958_v50 = vld [vmem:[%s6948_s0 + $0x288] sm:$0xff]  }
  0x53   :  { %5669 = vmatmul.mubr.msk.bf16.gmra.mxu1 %vm484_vm0, %v5891_v51  ;;  %5600 = vmatprep.mubr.msk.bf16.mxu0 %vm484_vm0, %v5894_v52  ;;  %v5959_v51 = vld [vmem:[%s6948_s0 + $0x388] sm:$0xff]   ;;  %v5960_v52 = vld [vmem:[%s6948_s0 + $0x290] sm:$0xff]  }
  0x54   :  { %5672 = vmatprep.mubr.msk.bf16.mxu1 %vm484_vm0, %v5895_v53  ;;  %v5961_v53 = vld [vmem:[%s6948_s0 + $0x390] sm:$0xff]  }
  0x5a   :  { %5601 = vmatmul.mubr.msk.bf16.gmra.mxu0 %vm484_vm0, %v5896_v54 }
  0x5b   :  { %5673 = vmatmul.mubr.msk.bf16.gmra.mxu1 %vm484_vm0, %v5897_v55  ;;  %5604 = vmatprep.mubr.msk.bf16.mxu0 %vm484_vm0, %v5898_v56 }
  0x5c   :  { %5676 = vmatprep.mubr.msk.bf16.mxu1 %vm484_vm0, %v5899_v57 }
  0x62   :  { %5605 = vmatmul.mubr.msk.bf16.gmra.mxu0 %vm484_vm0, %v5900_v58 }
  0x63   :  { %5677 = vmatmul.mubr.msk.bf16.gmra.mxu1 %vm484_vm0, %v5901_v59  ;;  %5608 = vmatprep.mubr.msk.bf16.mxu0 %vm484_vm0, %v5902_v60  ;;  %v5962_v59 = vld [vmem:[%s6948_s0 + $0x298] sm:$0xff]  }
  0x64   :  { %5680 = vmatprep.mubr.msk.bf16.mxu1 %vm484_vm0, %v5903_v61 }
  0x6a   :  { %5609 = vmatmul.mubr.msk.bf16.gmra.mxu0 %vm484_vm0, %v5904_v62  ;;  %v5963_v62 = vld [vmem:[%s6948_s0 + $0x398] sm:$0xff]  }
  0x6b   :  { %5681 = vmatmul.mubr.msk.bf16.gmra.mxu1 %vm484_vm0, %v5905_v63  ;;  %5612 = vmatprep.mubr.msk.bf16.mxu0 %vm484_vm0, %v5906_v0  ;;  %v5964_v63 = vld [vmem:[%s6948_s0 + $0x2a0] sm:$0xff]  }
  0x6c   :  { %5684 = vmatprep.mubr.msk.bf16.mxu1 %vm484_vm0, %v5907_v1 }
  0x72   :  { %5613 = vmatmul.mubr.msk.bf16.gmra.mxu0 %vm484_vm0, %v5908_v2  ;;  %v5965_v2 = vld [vmem:[%s6948_s0 + $0x3a0] sm:$0xff]  }
  0x73   :  { %5685 = vmatmul.mubr.msk.bf16.gmra.mxu1 %vm484_vm0, %v5909_v3  ;;  %5616 = vmatprep.mubr.msk.bf16.mxu0 %vm484_vm0, %v5912_v4 }
  0x74   :  { %5688 = vmatprep.mubr.msk.bf16.mxu1 %vm484_vm0, %v5913_v5 }
  0x7a   :  { %5617 = vmatmul.mubr.msk.bf16.gmra.mxu0 %vm484_vm0, %v5914_v6 }
  0x7b   :  { %5689 = vmatmul.mubr.msk.bf16.gmra.mxu1 %vm484_vm0, %v5915_v7  ;;  %5620 = vmatprep.mubr.msk.bf16.mxu0 %vm484_vm0, %v5916_v8 }
  0x7c   :  { %5692 = vmatprep.mubr.msk.bf16.mxu1 %vm484_vm0, %v5917_v9 }
  0x82   :  { %5621 = vmatmul.mubr.msk.bf16.gmra.mxu0 %vm484_vm0, %v5918_v10 }
  0x83   :  { %5693 = vmatmul.mubr.msk.bf16.gmra.mxu1 %vm484_vm0, %v5919_v11  ;;  %5624 = vmatprep.mubr.msk.bf16.mxu0 %vm484_vm0, %v5920_v12  ;;  %v5966_v11 = vld [vmem:[%s6948_s0 + $0x2a8] sm:$0xff]  }
  0x84   :  { %5696 = vmatprep.mubr.msk.bf16.mxu1 %vm484_vm0, %v5921_v13 }
  0x8a   :  { %5625 = vmatmul.mubr.msk.bf16.gmra.mxu0 %vm484_vm0, %v5922_v14  ;;  %v5967_v14 = vld [vmem:[%s6948_s0 + $0x3a8] sm:$0xff]  }
  0x8b   :  { %5697 = vmatmul.mubr.msk.bf16.gmra.mxu1 %vm484_vm0, %v5923_v15  ;;  %5708 = vmatprep.mubr.msk.bf16.mxu0 %vm484_vm0, %v5924_v16  ;;  %v5968_v15 = vld [vmem:[%s6948_s0 + $0x2b0] sm:$0xff]  }
  0x8c   :  { %5780 = vmatprep.mubr.msk.bf16.mxu1 %vm484_vm0, %v5925_v17 }
  0x92   :  { %5709 = vmatmul.mubr.msk.bf16.vlgmr.msra.gmra.mxu0 %vm484_vm0, %v5926_v18  ;;  %v5969_v18 = vld [vmem:[%s6948_s0 + $0x3b0] sm:$0xff]  }
  0x93   :  { %5781 = vmatmul.mubr.msk.bf16.vlgmr.msra.gmra.mxu1 %vm484_vm0, %v5927_v19  ;;  %5712 = vmatprep.mubr.msk.bf16.mxu0 %vm484_vm0, %v5928_v20 }
  0x94   :  { %5784 = vmatprep.mubr.msk.bf16.mxu1 %vm484_vm0, %v5929_v21 }
  0x9a   :  { %5713 = vmatmul.mubr.msk.bf16.gmra.mxu0 %vm484_vm0, %v5930_v22 }
  0x9b   :  { %5785 = vmatmul.mubr.msk.bf16.gmra.mxu1 %vm484_vm0, %v5931_v23  ;;  %5716 = vmatprep.mubr.msk.bf16.mxu0 %vm484_vm0, %v5932_v24 }
  0x9c   :  { %5788 = vmatprep.mubr.msk.bf16.mxu1 %vm484_vm0, %v5933_v25 }
  0xa2   :  { %5717 = vmatmul.mubr.msk.bf16.gmra.mxu0 %vm484_vm0, %v5934_v26 }
  0xa3   :  { %5789 = vmatmul.mubr.msk.bf16.gmra.mxu1 %vm484_vm0, %v5935_v27  ;;  %5720 = vmatprep.mubr.msk.bf16.mxu0 %vm484_vm0, %v5936_v28  ;;  %v5970_v27 = vld [vmem:[%s6948_s0 + $0x2b8] sm:$0xff]  }
  0xa4   :  { %5792 = vmatprep.mubr.msk.bf16.mxu1 %vm484_vm0, %v5937_v29 }
  0xaa   :  { %5721 = vmatmul.mubr.msk.bf16.gmra.mxu0 %vm484_vm0, %v5938_v30  ;;  %v5971_v30 = vld [vmem:[%s6948_s0 + $0x3b8] sm:$0xff]  }
  0xab   :  { %5793 = vmatmul.mubr.msk.bf16.gmra.mxu1 %vm484_vm0, %v5939_v31  ;;  %5724 = vmatprep.mubr.msk.bf16.mxu0 %vm484_vm0, %v5940_v32  ;;  %v5972_v31 = vld [vmem:[%s6948_s0 + $0x2c0] sm:$0xff]  }
  0xac   :  { %5796 = vmatprep.mubr.msk.bf16.mxu1 %vm484_vm0, %v5941_v33 }
  0xb2   :  { %5725 = vmatmul.mubr.msk.bf16.gmra.mxu0 %vm484_vm0, %v5942_v34  ;;  %v5973_v34 = vld [vmem:[%s6948_s0 + $0x3c0] sm:$0xff]  }
  0xb3   :  { %5797 = vmatmul.mubr.msk.bf16.gmra.mxu1 %vm484_vm0, %v5943_v35  ;;  %5728 = vmatprep.mubr.msk.bf16.mxu0 %vm484_vm0, %v5944_v36 }
  0xb4   :  { %5800 = vmatprep.mubr.msk.bf16.mxu1 %vm484_vm0, %v5945_v37 }
  0xba   :  { %5729 = vmatmul.mubr.msk.bf16.gmra.mxu0 %vm484_vm0, %v5946_v38 }
  0xbb   :  { %5801 = vmatmul.mubr.msk.bf16.gmra.mxu1 %vm484_vm0, %v5947_v39  ;;  %5732 = vmatprep.mubr.msk.bf16.mxu0 %vm484_vm0, %v5948_v40 }
  0xbc   :  { %5804 = vmatprep.mubr.msk.bf16.mxu1 %vm484_vm0, %v5949_v41 }
  0xc2   :  { %5733 = vmatmul.mubr.msk.bf16.gmra.mxu0 %vm484_vm0, %v5950_v42 }
  0xc3   :  { %5805 = vmatmul.mubr.msk.bf16.gmra.mxu1 %vm484_vm0, %v5951_v43  ;;  %5736 = vmatprep.mubr.msk.bf16.mxu0 %vm484_vm0, %v5952_v44  ;;  %v5974_v43 = vld [vmem:[%s6948_s0 + $0x2c8] sm:$0xff]  }
  0xc4   :  { %5808 = vmatprep.mubr.msk.bf16.mxu1 %vm484_vm0, %v5953_v45 }
  0xca   :  { %5737 = vmatmul.mubr.msk.bf16.gmra.mxu0 %vm484_vm0, %v5954_v46  ;;  %v5975_v46 = vld [vmem:[%s6948_s0 + $0x3c8] sm:$0xff]  }
  0xcb   :  { %5809 = vmatmul.mubr.msk.bf16.gmra.mxu1 %vm484_vm0, %v5955_v47  ;;  %5740 = vmatprep.mubr.msk.bf16.mxu0 %vm484_vm0, %v5956_v48  ;;  %v5976_v47 = vld [vmem:[%s6948_s0 + $0x2d0] sm:$0xff]  }
  0xcc   :  { %5812 = vmatprep.mubr.msk.bf16.mxu1 %vm484_vm0, %v5957_v49 }
  0xd2   :  { %v5566_v54 = vpop.f32.mrf.mxu0  ;;  %5741 = vmatmul.mubr.msk.bf16.gmra.mxu0 %vm484_vm0, %v5958_v50  ;;  %v5977_v50 = vld [vmem:[%s6948_s0 + $0x3d0] sm:$0xff]  }
  0xd3   :  { %v5638_v55 = vpop.f32.mrf.mxu1  ;;  %5813 = vmatmul.mubr.msk.bf16.gmra.mxu1 %vm484_vm0, %v5959_v51  ;;  %5744 = vmatprep.mubr.msk.bf16.mxu0 %vm484_vm0, %v5960_v52 }
  0xd4   :  { %v615_v56 = vpop.f32.mrf.mxu0  ;;  %5816 = vmatprep.mubr.msk.bf16.mxu1 %vm484_vm0, %v5961_v53 }
  0xd5   :  { %v1184_v57 = vpop.f32.mrf.mxu1 }
  0xd6   :  { %v5567_v58 = vpop.f32.mrf.mxu0 }
  0xd7   :  { %v4653_v60 = vpack.c.bf16 %v5567_v58, %v5566_v54  ;;  %v5639_v61 = vpop.f32.mrf.mxu1 }
  0xd8   :  { %v4813_v0 = vpack.c.bf16 %v5639_v61, %v5638_v55  ;;  %v618_v1 = vpop.f32.mrf.mxu0 }
  0xd9   :  { %5285 = vst [vmem:[%s6949_s2 + $0x8] sm:$0xff] %v4653_v60   ;;  %v4648_v3 = vpack.c.bf16 %v618_v1, %v615_v56  ;;  %v1187_v4 = vpop.f32.mrf.mxu1 }
  0xda   :  { %5317 = vst [vmem:[%s6949_s2 + $0x108] sm:$0xff] %v4813_v0   ;;  %v4808_v5 = vpack.c.bf16 %v1187_v4, %v1184_v57  ;;  %v5570_v6 = vpop.f32.mrf.mxu0  ;;  %5745 = vmatmul.mubr.msk.bf16.gmra.mxu0 %vm484_vm0, %v5962_v59  ;;  %v5978_v59 = vld [vmem:[%s6948_s0 + $0x2d8] sm:$0xff]  }
  0xdb   :  { %4649 = vst [vmem:[%s6949_s2] sm:$0xff] %v4648_v3   ;;  %v5642_v7 = vpop.f32.mrf.mxu1  ;;  %5817 = vmatmul.mubr.msk.bf16.gmra.mxu1 %vm484_vm0, %v5963_v62  ;;  %5748 = vmatprep.mubr.msk.bf16.mxu0 %vm484_vm0, %v5964_v63  ;;  %v5979_v62 = vld [vmem:[%s6948_s0 + $0x3d8] sm:$0xff]   ;;  %v5980_v63 = vld [vmem:[%s6948_s0 + $0x2e0] sm:$0xff]  }
  0xdc   :  { %5316 = vst [vmem:[%s6949_s2 + $0x100] sm:$0xff] %v4808_v5   ;;  %v631_v8 = vpop.f32.mrf.mxu0  ;;  %5820 = vmatprep.mubr.msk.bf16.mxu1 %vm484_vm0, %v5965_v2  ;;  %v5981_v2 = vld [vmem:[%s6948_s0 + $0x3e0] sm:$0xff]  }
  0xdd   :  { %v1200_v9 = vpop.f32.mrf.mxu1 }
  0xde   :  { %v5571_v10 = vpop.f32.mrf.mxu0 }
  0xdf   :  { %v4663_v12 = vpack.c.bf16 %v5571_v10, %v5570_v6  ;;  %v5643_v13 = vpop.f32.mrf.mxu1 }
  0xe0   :  { %v4823_v16 = vpack.c.bf16 %v5643_v13, %v5642_v7  ;;  %v634_v17 = vpop.f32.mrf.mxu0 }
  0xe1   :  { %5287 = vst [vmem:[%s6949_s2 + $0x18] sm:$0xff] %v4663_v12   ;;  %v4658_v19 = vpack.c.bf16 %v634_v17, %v631_v8  ;;  %v1203_v20 = vpop.f32.mrf.mxu1 }
  0xe2   :  { %5319 = vst [vmem:[%s6949_s2 + $0x118] sm:$0xff] %v4823_v16   ;;  %v4818_v21 = vpack.c.bf16 %v1203_v20, %v1200_v9  ;;  %v5574_v22 = vpop.f32.mrf.mxu0  ;;  %5749 = vmatmul.mubr.msk.bf16.gmra.mxu0 %vm484_vm0, %v5966_v11  ;;  %v5982_v11 = vld [vmem:[%s6948_s0 + $0x2e8] sm:$0xff]  }
  0xe3   :  { %5286 = vst [vmem:[%s6949_s2 + $0x10] sm:$0xff] %v4658_v19   ;;  %v5646_v23 = vpop.f32.mrf.mxu1  ;;  %5821 = vmatmul.mubr.msk.bf16.gmra.mxu1 %vm484_vm0, %v5967_v14  ;;  %5752 = vmatprep.mubr.msk.bf16.mxu0 %vm484_vm0, %v5968_v15  ;;  %v5983_v14 = vld [vmem:[%s6948_s0 + $0x3e8] sm:$0xff]   ;;  %v5984_v15 = vld [vmem:[%s6948_s0 + $0x2f0] sm:$0xff]  }
  0xe4   :  { %5318 = vst [vmem:[%s6949_s2 + $0x110] sm:$0xff] %v4818_v21   ;;  %v647_v24 = vpop.f32.mrf.mxu0  ;;  %5824 = vmatprep.mubr.msk.bf16.mxu1 %vm484_vm0, %v5969_v18  ;;  %v5985_v18 = vld [vmem:[%s6948_s0 + $0x3f0] sm:$0xff]  }
  0xe5   :  { %v1216_v25 = vpop.f32.mrf.mxu1 }
  0xe6   :  { %v5575_v26 = vpop.f32.mrf.mxu0 }
  0xe7   :  { %v4673_v28 = vpack.c.bf16 %v5575_v26, %v5574_v22  ;;  %v5647_v29 = vpop.f32.mrf.mxu1 }
  0xe8   :  { %v4833_v32 = vpack.c.bf16 %v5647_v29, %v5646_v23  ;;  %v650_v33 = vpop.f32.mrf.mxu0 }
  0xe9   :  { %5289 = vst [vmem:[%s6949_s2 + $0x28] sm:$0xff] %v4673_v28   ;;  %v4668_v35 = vpack.c.bf16 %v650_v33, %v647_v24  ;;  %v1219_v36 = vpop.f32.mrf.mxu1 }
  0xea   :  { %5321 = vst [vmem:[%s6949_s2 + $0x128] sm:$0xff] %v4833_v32   ;;  %v4828_v37 = vpack.c.bf16 %v1219_v36, %v1216_v25  ;;  %v5578_v38 = vpop.f32.mrf.mxu0  ;;  %5753 = vmatmul.mubr.msk.bf16.gmra.mxu0 %vm484_vm0, %v5970_v27  ;;  %v5986_v27 = vld [vmem:[%s6948_s0 + $0x2f8] sm:$0xff]  }
  0xeb   :  { %5288 = vst [vmem:[%s6949_s2 + $0x20] sm:$0xff] %v4668_v35   ;;  %v5650_v39 = vpop.f32.mrf.mxu1  ;;  %5825 = vmatmul.mubr.msk.bf16.gmra.mxu1 %vm484_vm0, %v5971_v30  ;;  %5756 = vmatprep.mubr.msk.bf16.mxu0 %vm484_vm0, %v5972_v31  ;;  %v5987_v30 = vld [vmem:[%s6948_s0 + $0x3f8] sm:$0xff]  }
  0xec   :  { %5320 = vst [vmem:[%s6949_s2 + $0x120] sm:$0xff] %v4828_v37   ;;  %v663_v40 = vpop.f32.mrf.mxu0  ;;  %5828 = vmatprep.mubr.msk.bf16.mxu1 %vm484_vm0, %v5973_v34 }
  0xed   :  { %v1232_v41 = vpop.f32.mrf.mxu1 }
  0xee   :  { %v5579_v42 = vpop.f32.mrf.mxu0 }
  0xef   :  { %v4683_v44 = vpack.c.bf16 %v5579_v42, %v5578_v38  ;;  %v5651_v45 = vpop.f32.mrf.mxu1 }
  0xf0   :  { %v4843_v48 = vpack.c.bf16 %v5651_v45, %v5650_v39  ;;  %v666_v49 = vpop.f32.mrf.mxu0 }
  0xf1   :  { %5291 = vst [vmem:[%s6949_s2 + $0x38] sm:$0xff] %v4683_v44   ;;  %v4678_v51 = vpack.c.bf16 %v666_v49, %v663_v40  ;;  %v1235_v52 = vpop.f32.mrf.mxu1 }
  0xf2   :  { %5323 = vst [vmem:[%s6949_s2 + $0x138] sm:$0xff] %v4843_v48   ;;  %v4838_v53 = vpack.c.bf16 %v1235_v52, %v1232_v41  ;;  %v5582_v54 = vpop.f32.mrf.mxu0  ;;  %5757 = vmatmul.mubr.msk.bf16.gmra.mxu0 %vm484_vm0, %v5974_v43 }
  0xf3   :  { %5290 = vst [vmem:[%s6949_s2 + $0x30] sm:$0xff] %v4678_v51   ;;  %v5654_v55 = vpop.f32.mrf.mxu1  ;;  %5829 = vmatmul.mubr.msk.bf16.gmra.mxu1 %vm484_vm0, %v5975_v46  ;;  %5760 = vmatprep.mubr.msk.bf16.mxu0 %vm484_vm0, %v5976_v47 }
  0xf4   :  { %5322 = vst [vmem:[%s6949_s2 + $0x130] sm:$0xff] %v4838_v53   ;;  %v679_v56 = vpop.f32.mrf.mxu0  ;;  %5832 = vmatprep.mubr.msk.bf16.mxu1 %vm484_vm0, %v5977_v50 }
  0xf5   :  { %v1248_v57 = vpop.f32.mrf.mxu1 }
  0xf6   :  { %v5583_v58 = vpop.f32.mrf.mxu0 }
  0xf7   :  { %v4693_v60 = vpack.c.bf16 %v5583_v58, %v5582_v54  ;;  %v5655_v61 = vpop.f32.mrf.mxu1 }
  0xf8   :  { %v4853_v0 = vpack.c.bf16 %v5655_v61, %v5654_v55  ;;  %v682_v1 = vpop.f32.mrf.mxu0 }
  0xf9   :  { %5293 = vst [vmem:[%s6949_s2 + $0x48] sm:$0xff] %v4693_v60   ;;  %v4688_v3 = vpack.c.bf16 %v682_v1, %v679_v56  ;;  %v1251_v4 = vpop.f32.mrf.mxu1 }
  0xfa   :  { %5325 = vst [vmem:[%s6949_s2 + $0x148] sm:$0xff] %v4853_v0   ;;  %v4848_v5 = vpack.c.bf16 %v1251_v4, %v1248_v57  ;;  %v5586_v6 = vpop.f32.mrf.mxu0  ;;  %5761 = vmatmul.mubr.msk.bf16.gmra.mxu0 %vm484_vm0, %v5978_v59 }
  0xfb   :  { %5292 = vst [vmem:[%s6949_s2 + $0x40] sm:$0xff] %v4688_v3   ;;  %v5658_v7 = vpop.f32.mrf.mxu1  ;;  %5833 = vmatmul.mubr.msk.bf16.gmra.mxu1 %vm484_vm0, %v5979_v62  ;;  %5764 = vmatprep.mubr.msk.bf16.mxu0 %vm484_vm0, %v5980_v63 }
  0xfc   :  { %5324 = vst [vmem:[%s6949_s2 + $0x140] sm:$0xff] %v4848_v5   ;;  %v695_v8 = vpop.f32.mrf.mxu0  ;;  %5836 = vmatprep.mubr.msk.bf16.mxu1 %vm484_vm0, %v5981_v2 }
  0xfd   :  { %v1264_v9 = vpop.f32.mrf.mxu1 }
  0xfe   :  { %v5587_v10 = vpop.f32.mrf.mxu0 }
  0xff   :  { %v4703_v12 = vpack.c.bf16 %v5587_v10, %v5586_v6  ;;  %v5659_v13 = vpop.f32.mrf.mxu1 }
 0x100   :  { %v4863_v16 = vpack.c.bf16 %v5659_v13, %v5658_v7  ;;  %v698_v17 = vpop.f32.mrf.mxu0 }
 0x101   :  { %5295 = vst [vmem:[%s6949_s2 + $0x58] sm:$0xff] %v4703_v12   ;;  %v4698_v19 = vpack.c.bf16 %v698_v17, %v695_v8  ;;  %v1267_v20 = vpop.f32.mrf.mxu1 }
 0x102   :  { %5327 = vst [vmem:[%s6949_s2 + $0x158] sm:$0xff] %v4863_v16   ;;  %v4858_v21 = vpack.c.bf16 %v1267_v20, %v1264_v9  ;;  %v5590_v22 = vpop.f32.mrf.mxu0  ;;  %5765 = vmatmul.mubr.msk.bf16.gmra.mxu0 %vm484_vm0, %v5982_v11 }
 0x103   :  { %5294 = vst [vmem:[%s6949_s2 + $0x50] sm:$0xff] %v4698_v19   ;;  %v5662_v23 = vpop.f32.mrf.mxu1  ;;  %5837 = vmatmul.mubr.msk.bf16.gmra.mxu1 %vm484_vm0, %v5983_v14  ;;  %5768 = vmatprep.mubr.msk.bf16.mxu0 %vm484_vm0, %v5984_v15 }
 0x104   :  { %5326 = vst [vmem:[%s6949_s2 + $0x150] sm:$0xff] %v4858_v21   ;;  %v711_v24 = vpop.f32.mrf.mxu0  ;;  %5840 = vmatprep.mubr.msk.bf16.mxu1 %vm484_vm0, %v5985_v18 }
 0x105   :  { %v1280_v25 = vpop.f32.mrf.mxu1 }
 0x106   :  { %v5591_v26 = vpop.f32.mrf.mxu0 }
 0x107   :  { %v4713_v28 = vpack.c.bf16 %v5591_v26, %v5590_v22  ;;  %v5663_v29 = vpop.f32.mrf.mxu1 }
 0x108   :  { %v4873_v31 = vpack.c.bf16 %v5663_v29, %v5662_v23  ;;  %v714_v32 = vpop.f32.mrf.mxu0 }
 0x109   :  { %5297 = vst [vmem:[%s6949_s2 + $0x68] sm:$0xff] %v4713_v28   ;;  %v4708_v33 = vpack.c.bf16 %v714_v32, %v711_v24  ;;  %v1283_v34 = vpop.f32.mrf.mxu1 }
 0x10a   :  { %5329 = vst [vmem:[%s6949_s2 + $0x168] sm:$0xff] %v4873_v31   ;;  %v4868_v35 = vpack.c.bf16 %v1283_v34, %v1280_v25  ;;  %v5594_v36 = vpop.f32.mrf.mxu0  ;;  %5769 = vmatmul.mubr.msk.bf16.gmra.mxu0 %vm484_vm0, %v5986_v27 }
 0x10b   :  { %5296 = vst [vmem:[%s6949_s2 + $0x60] sm:$0xff] %v4708_v33   ;;  %v5666_v37 = vpop.f32.mrf.mxu1  ;;  %5841 = vmatmul.mubr.msk.bf16.gmra.mxu1 %vm484_vm0, %v5987_v30 }
 0x10c   :  { %5328 = vst [vmem:[%s6949_s2 + $0x160] sm:$0xff] %v4868_v35   ;;  %v727_v38 = vpop.f32.mrf.mxu0 }
 0x10d   :  { %v1296_v39 = vpop.f32.mrf.mxu1 }
 0x10e   :  { %v5595_v40 = vpop.f32.mrf.mxu0 }
 0x10f   :  { %v4723_v41 = vpack.c.bf16 %v5595_v40, %v5594_v36  ;;  %v5667_v42 = vpop.f32.mrf.mxu1 }
 0x110   :  { %v4883_v43 = vpack.c.bf16 %v5667_v42, %v5666_v37  ;;  %v730_v44 = vpop.f32.mrf.mxu0 }
 0x111   :  { %5299 = vst [vmem:[%s6949_s2 + $0x78] sm:$0xff] %v4723_v41   ;;  %v4718_v45 = vpack.c.bf16 %v730_v44, %v727_v38  ;;  %v1299_v46 = vpop.f32.mrf.mxu1 }
 0x112   :  { %5331 = vst [vmem:[%s6949_s2 + $0x178] sm:$0xff] %v4883_v43   ;;  %v4878_v47 = vpack.c.bf16 %v1299_v46, %v1296_v39  ;;  %v5598_v48 = vpop.f32.mrf.mxu0 }
 0x113   :  { %5298 = vst [vmem:[%s6949_s2 + $0x70] sm:$0xff] %v4718_v45   ;;  %v5670_v49 = vpop.f32.mrf.mxu1 }
 0x114   :  { %5330 = vst [vmem:[%s6949_s2 + $0x170] sm:$0xff] %v4878_v47   ;;  %v743_v50 = vpop.f32.mrf.mxu0 }
 0x115   :  { %v1312_v51 = vpop.f32.mrf.mxu1 }
 0x116   :  { %v5599_v52 = vpop.f32.mrf.mxu0 }
 0x117   :  { %v4733_v53 = vpack.c.bf16 %v5599_v52, %v5598_v48  ;;  %v5671_v54 = vpop.f32.mrf.mxu1 }
 0x118   :  { %v4893_v55 = vpack.c.bf16 %v5671_v54, %v5670_v49  ;;  %v746_v56 = vpop.f32.mrf.mxu0 }
 0x119   :  { %5301 = vst [vmem:[%s6949_s2 + $0x88] sm:$0xff] %v4733_v53   ;;  %v4728_v57 = vpack.c.bf16 %v746_v56, %v743_v50  ;;  %v1315_v58 = vpop.f32.mrf.mxu1 }
 0x11a   :  { %5333 = vst [vmem:[%s6949_s2 + $0x188] sm:$0xff] %v4893_v55   ;;  %v4888_v59 = vpack.c.bf16 %v1315_v58, %v1312_v51  ;;  %v5602_v60 = vpop.f32.mrf.mxu0 }
 0x11b   :  { %5300 = vst [vmem:[%s6949_s2 + $0x80] sm:$0xff] %v4728_v57   ;;  %v5674_v61 = vpop.f32.mrf.mxu1 }
 0x11c   :  { %5332 = vst [vmem:[%s6949_s2 + $0x180] sm:$0xff] %v4888_v59   ;;  %v759_v62 = vpop.f32.mrf.mxu0 }
 0x11d   :  { %v1328_v63 = vpop.f32.mrf.mxu1 }
 0x11e   :  { %v5603_v0 = vpop.f32.mrf.mxu0 }
 0x11f   :  { %v4743_v1 = vpack.c.bf16 %v5603_v0, %v5602_v60  ;;  %v5675_v2 = vpop.f32.mrf.mxu1 }
 0x120   :  { %v4903_v3 = vpack.c.bf16 %v5675_v2, %v5674_v61  ;;  %v762_v4 = vpop.f32.mrf.mxu0 }
 0x121   :  { %5303 = vst [vmem:[%s6949_s2 + $0x98] sm:$0xff] %v4743_v1   ;;  %v4738_v5 = vpack.c.bf16 %v762_v4, %v759_v62  ;;  %v1331_v6 = vpop.f32.mrf.mxu1 }
 0x122   :  { %5335 = vst [vmem:[%s6949_s2 + $0x198] sm:$0xff] %v4903_v3   ;;  %v4898_v7 = vpack.c.bf16 %v1331_v6, %v1328_v63  ;;  %v5606_v8 = vpop.f32.mrf.mxu0 }
 0x123   :  { %5302 = vst [vmem:[%s6949_s2 + $0x90] sm:$0xff] %v4738_v5   ;;  %v5678_v9 = vpop.f32.mrf.mxu1 }
 0x124   :  { %5334 = vst [vmem:[%s6949_s2 + $0x190] sm:$0xff] %v4898_v7   ;;  %v775_v10 = vpop.f32.mrf.mxu0 }
 0x125   :  { %v1344_v11 = vpop.f32.mrf.mxu1 }
 0x126   :  { %v5607_v12 = vpop.f32.mrf.mxu0 }
 0x127   :  { %v4753_v13 = vpack.c.bf16 %v5607_v12, %v5606_v8  ;;  %v5679_v14 = vpop.f32.mrf.mxu1 }
 0x128   :  { %v4913_v15 = vpack.c.bf16 %v5679_v14, %v5678_v9  ;;  %v778_v16 = vpop.f32.mrf.mxu0 }
 0x129   :  { %5305 = vst [vmem:[%s6949_s2 + $0xa8] sm:$0xff] %v4753_v13   ;;  %v4748_v17 = vpack.c.bf16 %v778_v16, %v775_v10  ;;  %v1347_v18 = vpop.f32.mrf.mxu1 }
 0x12a   :  { %5337 = vst [vmem:[%s6949_s2 + $0x1a8] sm:$0xff] %v4913_v15   ;;  %v4908_v19 = vpack.c.bf16 %v1347_v18, %v1344_v11  ;;  %v5610_v20 = vpop.f32.mrf.mxu0 }
 0x12b   :  { %5304 = vst [vmem:[%s6949_s2 + $0xa0] sm:$0xff] %v4748_v17   ;;  %v5682_v21 = vpop.f32.mrf.mxu1 }
 0x12c   :  { %5336 = vst [vmem:[%s6949_s2 + $0x1a0] sm:$0xff] %v4908_v19   ;;  %v791_v22 = vpop.f32.mrf.mxu0 }
 0x12d   :  { %v1360_v23 = vpop.f32.mrf.mxu1 }
 0x12e   :  { %v5611_v24 = vpop.f32.mrf.mxu0 }
 0x12f   :  { %v4763_v25 = vpack.c.bf16 %v5611_v24, %v5610_v20  ;;  %v5683_v26 = vpop.f32.mrf.mxu1 }
 0x130   :  { %v4923_v27 = vpack.c.bf16 %v5683_v26, %v5682_v21  ;;  %v794_v28 = vpop.f32.mrf.mxu0 }
 0x131   :  { %5307 = vst [vmem:[%s6949_s2 + $0xb8] sm:$0xff] %v4763_v25   ;;  %v4758_v29 = vpack.c.bf16 %v794_v28, %v791_v22  ;;  %v1363_v30 = vpop.f32.mrf.mxu1 }
 0x132   :  { %5339 = vst [vmem:[%s6949_s2 + $0x1b8] sm:$0xff] %v4923_v27   ;;  %v4918_v31 = vpack.c.bf16 %v1363_v30, %v1360_v23  ;;  %v5614_v32 = vpop.f32.mrf.mxu0 }
 0x133   :  { %5306 = vst [vmem:[%s6949_s2 + $0xb0] sm:$0xff] %v4758_v29   ;;  %v5686_v33 = vpop.f32.mrf.mxu1 }
 0x134   :  { %5338 = vst [vmem:[%s6949_s2 + $0x1b0] sm:$0xff] %v4918_v31   ;;  %v807_v34 = vpop.f32.mrf.mxu0 }
 0x135   :  { %v1376_v35 = vpop.f32.mrf.mxu1 }
 0x136   :  { %v5615_v36 = vpop.f32.mrf.mxu0 }
 0x137   :  { %v4773_v37 = vpack.c.bf16 %v5615_v36, %v5614_v32  ;;  %v5687_v38 = vpop.f32.mrf.mxu1 }
 0x138   :  { %v4933_v39 = vpack.c.bf16 %v5687_v38, %v5686_v33  ;;  %v810_v40 = vpop.f32.mrf.mxu0 }
 0x139   :  { %5309 = vst [vmem:[%s6949_s2 + $0xc8] sm:$0xff] %v4773_v37   ;;  %v4768_v41 = vpack.c.bf16 %v810_v40, %v807_v34  ;;  %v1379_v42 = vpop.f32.mrf.mxu1 }
 0x13a   :  { %5341 = vst [vmem:[%s6949_s2 + $0x1c8] sm:$0xff] %v4933_v39   ;;  %v4928_v43 = vpack.c.bf16 %v1379_v42, %v1376_v35  ;;  %v5618_v44 = vpop.f32.mrf.mxu0 }
 0x13b   :  { %5308 = vst [vmem:[%s6949_s2 + $0xc0] sm:$0xff] %v4768_v41   ;;  %v5690_v45 = vpop.f32.mrf.mxu1 }
 0x13c   :  { %5340 = vst [vmem:[%s6949_s2 + $0x1c0] sm:$0xff] %v4928_v43   ;;  %v823_v46 = vpop.f32.mrf.mxu0 }
 0x13d   :  { %v1392_v47 = vpop.f32.mrf.mxu1 }
 0x13e   :  { %v5619_v48 = vpop.f32.mrf.mxu0 }
 0x13f   :  { %v4783_v49 = vpack.c.bf16 %v5619_v48, %v5618_v44  ;;  %v5691_v50 = vpop.f32.mrf.mxu1 }
 0x140   :  { %v4943_v51 = vpack.c.bf16 %v5691_v50, %v5690_v45  ;;  %v826_v52 = vpop.f32.mrf.mxu0 }
 0x141   :  { %5311 = vst [vmem:[%s6949_s2 + $0xd8] sm:$0xff] %v4783_v49   ;;  %v4778_v53 = vpack.c.bf16 %v826_v52, %v823_v46  ;;  %v1395_v54 = vpop.f32.mrf.mxu1 }
 0x142   :  { %5343 = vst [vmem:[%s6949_s2 + $0x1d8] sm:$0xff] %v4943_v51   ;;  %v4938_v55 = vpack.c.bf16 %v1395_v54, %v1392_v47  ;;  %v5622_v56 = vpop.f32.mrf.mxu0 }
 0x143   :  { %5310 = vst [vmem:[%s6949_s2 + $0xd0] sm:$0xff] %v4778_v53   ;;  %v5694_v57 = vpop.f32.mrf.mxu1 }
 0x144   :  { %5342 = vst [vmem:[%s6949_s2 + $0x1d0] sm:$0xff] %v4938_v55   ;;  %v839_v58 = vpop.f32.mrf.mxu0 }
 0x145   :  { %v1408_v59 = vpop.f32.mrf.mxu1 }
 0x146   :  { %v5623_v60 = vpop.f32.mrf.mxu0 }
 0x147   :  { %v4793_v61 = vpack.c.bf16 %v5623_v60, %v5622_v56  ;;  %v5695_v62 = vpop.f32.mrf.mxu1 }
 0x148   :  { %v4953_v63 = vpack.c.bf16 %v5695_v62, %v5694_v57  ;;  %v842_v0 = vpop.f32.mrf.mxu0 }
 0x149   :  { %5313 = vst [vmem:[%s6949_s2 + $0xe8] sm:$0xff] %v4793_v61   ;;  %v4788_v1 = vpack.c.bf16 %v842_v0, %v839_v58  ;;  %v1411_v2 = vpop.f32.mrf.mxu1 }
 0x14a   :  { %5345 = vst [vmem:[%s6949_s2 + $0x1e8] sm:$0xff] %v4953_v63   ;;  %v4948_v3 = vpack.c.bf16 %v1411_v2, %v1408_v59  ;;  %v5626_v4 = vpop.f32.mrf.mxu0 }
 0x14b   :  { %5312 = vst [vmem:[%s6949_s2 + $0xe0] sm:$0xff] %v4788_v1   ;;  %v5698_v5 = vpop.f32.mrf.mxu1 }
 0x14c   :  { %5344 = vst [vmem:[%s6949_s2 + $0x1e0] sm:$0xff] %v4948_v3   ;;  %v855_v6 = vpop.f32.mrf.mxu0 }
 0x14d   :  { %v1424_v7 = vpop.f32.mrf.mxu1 }
 0x14e   :  { %v5627_v8 = vpop.f32.mrf.mxu0 }
 0x14f   :  { %v4803_v9 = vpack.c.bf16 %v5627_v8, %v5626_v4  ;;  %v5699_v10 = vpop.f32.mrf.mxu1 }
 0x150   :  { %v4963_v11 = vpack.c.bf16 %v5699_v10, %v5698_v5  ;;  %v858_v12 = vpop.f32.mrf.mxu0 }
 0x151   :  { %5315 = vst [vmem:[%s6949_s2 + $0xf8] sm:$0xff] %v4803_v9   ;;  %v4798_v13 = vpack.c.bf16 %v858_v12, %v855_v6  ;;  %v1427_v14 = vpop.f32.mrf.mxu1 }
 0x152   :  { %5347 = vst [vmem:[%s6949_s2 + $0x1f8] sm:$0xff] %v4963_v11   ;;  %v4958_v15 = vpack.c.bf16 %v1427_v14, %v1424_v7  ;;  %v5710_v16 = vpop.f32.mrf.mxu0 }
 0x153   :  { %5314 = vst [vmem:[%s6949_s2 + $0xf0] sm:$0xff] %v4798_v13   ;;  %v5782_v17 = vpop.f32.mrf.mxu1 }
 0x154   :  { %5346 = vst [vmem:[%s6949_s2 + $0x1f0] sm:$0xff] %v4958_v15   ;;  %v1753_v18 = vpop.f32.mrf.mxu0 }
 0x155   :  { %v2322_v19 = vpop.f32.mrf.mxu1 }
 0x156   :  { %v5711_v20 = vpop.f32.mrf.mxu0 }
 0x157   :  { %v4973_v21 = vpack.c.bf16 %v5711_v20, %v5710_v16  ;;  %v5783_v22 = vpop.f32.mrf.mxu1 }
 0x158   :  { %v5133_v23 = vpack.c.bf16 %v5783_v22, %v5782_v17  ;;  %v1756_v24 = vpop.f32.mrf.mxu0 }
 0x159   :  { %5349 = vst [vmem:[%s6949_s2 + $0x208] sm:$0xff] %v4973_v21   ;;  %v4968_v25 = vpack.c.bf16 %v1756_v24, %v1753_v18  ;;  %v2325_v26 = vpop.f32.mrf.mxu1 }
 0x15a   :  { %5381 = vst [vmem:[%s6949_s2 + $0x308] sm:$0xff] %v5133_v23   ;;  %v5128_v27 = vpack.c.bf16 %v2325_v26, %v2322_v19  ;;  %v5714_v28 = vpop.f32.mrf.mxu0 }
 0x15b   :  { %5348 = vst [vmem:[%s6949_s2 + $0x200] sm:$0xff] %v4968_v25   ;;  %v5786_v29 = vpop.f32.mrf.mxu1 }
 0x15c   :  { %5380 = vst [vmem:[%s6949_s2 + $0x300] sm:$0xff] %v5128_v27   ;;  %v1769_v30 = vpop.f32.mrf.mxu0 }
 0x15d   :  { %v2338_v31 = vpop.f32.mrf.mxu1 }
 0x15e   :  { %v5715_v32 = vpop.f32.mrf.mxu0 }
 0x15f   :  { %v4983_v33 = vpack.c.bf16 %v5715_v32, %v5714_v28  ;;  %v5787_v34 = vpop.f32.mrf.mxu1 }
 0x160   :  { %v5143_v35 = vpack.c.bf16 %v5787_v34, %v5786_v29  ;;  %v1772_v36 = vpop.f32.mrf.mxu0 }
 0x161   :  { %5351 = vst [vmem:[%s6949_s2 + $0x218] sm:$0xff] %v4983_v33   ;;  %v4978_v37 = vpack.c.bf16 %v1772_v36, %v1769_v30  ;;  %v2341_v38 = vpop.f32.mrf.mxu1 }
 0x162   :  { %5383 = vst [vmem:[%s6949_s2 + $0x318] sm:$0xff] %v5143_v35   ;;  %v5138_v39 = vpack.c.bf16 %v2341_v38, %v2338_v31  ;;  %v5718_v40 = vpop.f32.mrf.mxu0 }
 0x163   :  { %5350 = vst [vmem:[%s6949_s2 + $0x210] sm:$0xff] %v4978_v37   ;;  %v5790_v41 = vpop.f32.mrf.mxu1 }
 0x164   :  { %5382 = vst [vmem:[%s6949_s2 + $0x310] sm:$0xff] %v5138_v39   ;;  %v1785_v42 = vpop.f32.mrf.mxu0 }
 0x165   :  { %v2354_v43 = vpop.f32.mrf.mxu1 }
 0x166   :  { %v5719_v44 = vpop.f32.mrf.mxu0 }
 0x167   :  { %v4993_v45 = vpack.c.bf16 %v5719_v44, %v5718_v40  ;;  %v5791_v46 = vpop.f32.mrf.mxu1 }
 0x168   :  { %v5153_v47 = vpack.c.bf16 %v5791_v46, %v5790_v41  ;;  %v1788_v48 = vpop.f32.mrf.mxu0 }
 0x169   :  { %5353 = vst [vmem:[%s6949_s2 + $0x228] sm:$0xff] %v4993_v45   ;;  %v4988_v49 = vpack.c.bf16 %v1788_v48, %v1785_v42  ;;  %v2357_v50 = vpop.f32.mrf.mxu1 }
 0x16a   :  { %5385 = vst [vmem:[%s6949_s2 + $0x328] sm:$0xff] %v5153_v47   ;;  %v5148_v51 = vpack.c.bf16 %v2357_v50, %v2354_v43  ;;  %v5722_v52 = vpop.f32.mrf.mxu0 }
 0x16b   :  { %5352 = vst [vmem:[%s6949_s2 + $0x220] sm:$0xff] %v4988_v49   ;;  %v5794_v53 = vpop.f32.mrf.mxu1 }
 0x16c   :  { %5384 = vst [vmem:[%s6949_s2 + $0x320] sm:$0xff] %v5148_v51   ;;  %v1801_v54 = vpop.f32.mrf.mxu0 }
 0x16d   :  { %v2370_v55 = vpop.f32.mrf.mxu1 }
 0x16e   :  { %v5723_v56 = vpop.f32.mrf.mxu0 }
 0x16f   :  { %v5003_v57 = vpack.c.bf16 %v5723_v56, %v5722_v52  ;;  %v5795_v58 = vpop.f32.mrf.mxu1 }
 0x170   :  { %v5163_v59 = vpack.c.bf16 %v5795_v58, %v5794_v53  ;;  %v1804_v60 = vpop.f32.mrf.mxu0 }
 0x171   :  { %5355 = vst [vmem:[%s6949_s2 + $0x238] sm:$0xff] %v5003_v57   ;;  %v4998_v61 = vpack.c.bf16 %v1804_v60, %v1801_v54  ;;  %v2373_v62 = vpop.f32.mrf.mxu1 }
 0x172   :  { %5387 = vst [vmem:[%s6949_s2 + $0x338] sm:$0xff] %v5163_v59   ;;  %v5158_v63 = vpack.c.bf16 %v2373_v62, %v2370_v55  ;;  %v5726_v0 = vpop.f32.mrf.mxu0 }
 0x173   :  { %5354 = vst [vmem:[%s6949_s2 + $0x230] sm:$0xff] %v4998_v61   ;;  %v5798_v1 = vpop.f32.mrf.mxu1 }
 0x174   :  { %5386 = vst [vmem:[%s6949_s2 + $0x330] sm:$0xff] %v5158_v63   ;;  %v1817_v2 = vpop.f32.mrf.mxu0 }
 0x175   :  { %v2386_v3 = vpop.f32.mrf.mxu1 }
 0x176   :  { %v5727_v4 = vpop.f32.mrf.mxu0 }
 0x177   :  { %v5013_v5 = vpack.c.bf16 %v5727_v4, %v5726_v0  ;;  %v5799_v6 = vpop.f32.mrf.mxu1 }
 0x178   :  { %v5173_v7 = vpack.c.bf16 %v5799_v6, %v5798_v1  ;;  %v1820_v8 = vpop.f32.mrf.mxu0 }
 0x179   :  { %5357 = vst [vmem:[%s6949_s2 + $0x248] sm:$0xff] %v5013_v5   ;;  %v5008_v9 = vpack.c.bf16 %v1820_v8, %v1817_v2  ;;  %v2389_v10 = vpop.f32.mrf.mxu1 }
 0x17a   :  { %5389 = vst [vmem:[%s6949_s2 + $0x348] sm:$0xff] %v5173_v7   ;;  %v5168_v11 = vpack.c.bf16 %v2389_v10, %v2386_v3  ;;  %v5730_v12 = vpop.f32.mrf.mxu0 }
 0x17b   :  { %5356 = vst [vmem:[%s6949_s2 + $0x240] sm:$0xff] %v5008_v9   ;;  %v5802_v13 = vpop.f32.mrf.mxu1 }
 0x17c   :  { %5388 = vst [vmem:[%s6949_s2 + $0x340] sm:$0xff] %v5168_v11   ;;  %v1833_v14 = vpop.f32.mrf.mxu0 }
 0x17d   :  { %v2402_v15 = vpop.f32.mrf.mxu1 }
 0x17e   :  { %v5731_v16 = vpop.f32.mrf.mxu0 }
 0x17f   :  { %v5023_v17 = vpack.c.bf16 %v5731_v16, %v5730_v12  ;;  %v5803_v18 = vpop.f32.mrf.mxu1 }
 0x180   :  { %v5183_v19 = vpack.c.bf16 %v5803_v18, %v5802_v13  ;;  %v1836_v20 = vpop.f32.mrf.mxu0 }
 0x181   :  { %5359 = vst [vmem:[%s6949_s2 + $0x258] sm:$0xff] %v5023_v17   ;;  %v5018_v21 = vpack.c.bf16 %v1836_v20, %v1833_v14  ;;  %v2405_v22 = vpop.f32.mrf.mxu1 }
 0x182   :  { %5391 = vst [vmem:[%s6949_s2 + $0x358] sm:$0xff] %v5183_v19   ;;  %v5178_v23 = vpack.c.bf16 %v2405_v22, %v2402_v15  ;;  %v5734_v24 = vpop.f32.mrf.mxu0 }
 0x183   :  { %5358 = vst [vmem:[%s6949_s2 + $0x250] sm:$0xff] %v5018_v21   ;;  %v5806_v25 = vpop.f32.mrf.mxu1 }
 0x184   :  { %5390 = vst [vmem:[%s6949_s2 + $0x350] sm:$0xff] %v5178_v23   ;;  %v1849_v26 = vpop.f32.mrf.mxu0 }
 0x185   :  { %v2418_v27 = vpop.f32.mrf.mxu1 }
 0x186   :  { %v5735_v28 = vpop.f32.mrf.mxu0 }
 0x187   :  { %v5033_v29 = vpack.c.bf16 %v5735_v28, %v5734_v24  ;;  %v5807_v30 = vpop.f32.mrf.mxu1 }
 0x188   :  { %v5193_v31 = vpack.c.bf16 %v5807_v30, %v5806_v25  ;;  %v1852_v32 = vpop.f32.mrf.mxu0 }
 0x189   :  { %5361 = vst [vmem:[%s6949_s2 + $0x268] sm:$0xff] %v5033_v29   ;;  %v5028_v33 = vpack.c.bf16 %v1852_v32, %v1849_v26  ;;  %v2421_v34 = vpop.f32.mrf.mxu1 }
 0x18a   :  { %5393 = vst [vmem:[%s6949_s2 + $0x368] sm:$0xff] %v5193_v31   ;;  %v5188_v35 = vpack.c.bf16 %v2421_v34, %v2418_v27  ;;  %v5738_v36 = vpop.f32.mrf.mxu0 }
 0x18b   :  { %5360 = vst [vmem:[%s6949_s2 + $0x260] sm:$0xff] %v5028_v33   ;;  %v5810_v37 = vpop.f32.mrf.mxu1 }
 0x18c   :  { %5392 = vst [vmem:[%s6949_s2 + $0x360] sm:$0xff] %v5188_v35   ;;  %v1865_v38 = vpop.f32.mrf.mxu0 }
 0x18d   :  { %v2434_v39 = vpop.f32.mrf.mxu1 }
 0x18e   :  { %v5739_v40 = vpop.f32.mrf.mxu0 }
 0x18f   :  { %v5043_v41 = vpack.c.bf16 %v5739_v40, %v5738_v36  ;;  %v5811_v42 = vpop.f32.mrf.mxu1 }
 0x190   :  { %v5203_v43 = vpack.c.bf16 %v5811_v42, %v5810_v37  ;;  %v1868_v44 = vpop.f32.mrf.mxu0 }
 0x191   :  { %5363 = vst [vmem:[%s6949_s2 + $0x278] sm:$0xff] %v5043_v41   ;;  %v5038_v45 = vpack.c.bf16 %v1868_v44, %v1865_v38  ;;  %v2437_v46 = vpop.f32.mrf.mxu1 }
 0x192   :  { %5395 = vst [vmem:[%s6949_s2 + $0x378] sm:$0xff] %v5203_v43   ;;  %v5198_v47 = vpack.c.bf16 %v2437_v46, %v2434_v39  ;;  %v5742_v48 = vpop.f32.mrf.mxu0 }
 0x193   :  { %5362 = vst [vmem:[%s6949_s2 + $0x270] sm:$0xff] %v5038_v45   ;;  %v5814_v49 = vpop.f32.mrf.mxu1 }
 0x194   :  { %5394 = vst [vmem:[%s6949_s2 + $0x370] sm:$0xff] %v5198_v47   ;;  %v1881_v50 = vpop.f32.mrf.mxu0 }
 0x195   :  { %v2450_v51 = vpop.f32.mrf.mxu1 }
 0x196   :  { %v5743_v52 = vpop.f32.mrf.mxu0 }
 0x197   :  { %v5053_v53 = vpack.c.bf16 %v5743_v52, %v5742_v48  ;;  %v5815_v54 = vpop.f32.mrf.mxu1 }
 0x198   :  { %v5213_v55 = vpack.c.bf16 %v5815_v54, %v5814_v49  ;;  %v1884_v56 = vpop.f32.mrf.mxu0 }
 0x199   :  { %5365 = vst [vmem:[%s6949_s2 + $0x288] sm:$0xff] %v5053_v53   ;;  %v5048_v57 = vpack.c.bf16 %v1884_v56, %v1881_v50  ;;  %v2453_v58 = vpop.f32.mrf.mxu1 }
 0x19a   :  { %5397 = vst [vmem:[%s6949_s2 + $0x388] sm:$0xff] %v5213_v55   ;;  %v5208_v59 = vpack.c.bf16 %v2453_v58, %v2450_v51  ;;  %v5746_v60 = vpop.f32.mrf.mxu0 }
 0x19b   :  { %5364 = vst [vmem:[%s6949_s2 + $0x280] sm:$0xff] %v5048_v57   ;;  %v5818_v61 = vpop.f32.mrf.mxu1 }
 0x19c   :  { %5396 = vst [vmem:[%s6949_s2 + $0x380] sm:$0xff] %v5208_v59   ;;  %v1897_v62 = vpop.f32.mrf.mxu0 }
 0x19d   :  { %v2466_v63 = vpop.f32.mrf.mxu1 }
 0x19e   :  { %v5747_v0 = vpop.f32.mrf.mxu0 }
 0x19f   :  { %v5063_v1 = vpack.c.bf16 %v5747_v0, %v5746_v60  ;;  %v5819_v2 = vpop.f32.mrf.mxu1 }
 0x1a0   :  { %v5223_v3 = vpack.c.bf16 %v5819_v2, %v5818_v61  ;;  %v1900_v4 = vpop.f32.mrf.mxu0 }
 0x1a1   :  { %5367 = vst [vmem:[%s6949_s2 + $0x298] sm:$0xff] %v5063_v1   ;;  %v5058_v5 = vpack.c.bf16 %v1900_v4, %v1897_v62  ;;  %v2469_v6 = vpop.f32.mrf.mxu1 }
 0x1a2   :  { %5399 = vst [vmem:[%s6949_s2 + $0x398] sm:$0xff] %v5223_v3   ;;  %v5218_v7 = vpack.c.bf16 %v2469_v6, %v2466_v63  ;;  %v5750_v8 = vpop.f32.mrf.mxu0 }
 0x1a3   :  { %5366 = vst [vmem:[%s6949_s2 + $0x290] sm:$0xff] %v5058_v5   ;;  %v5822_v9 = vpop.f32.mrf.mxu1 }
 0x1a4   :  { %5398 = vst [vmem:[%s6949_s2 + $0x390] sm:$0xff] %v5218_v7   ;;  %v1913_v10 = vpop.f32.mrf.mxu0 }
 0x1a5   :  { %v2482_v11 = vpop.f32.mrf.mxu1 }
 0x1a6   :  { %v5751_v12 = vpop.f32.mrf.mxu0 }
 0x1a7   :  { %v5073_v13 = vpack.c.bf16 %v5751_v12, %v5750_v8  ;;  %v5823_v14 = vpop.f32.mrf.mxu1 }
 0x1a8   :  { %v5233_v15 = vpack.c.bf16 %v5823_v14, %v5822_v9  ;;  %v1916_v16 = vpop.f32.mrf.mxu0 }
 0x1a9   :  { %5369 = vst [vmem:[%s6949_s2 + $0x2a8] sm:$0xff] %v5073_v13   ;;  %v5068_v17 = vpack.c.bf16 %v1916_v16, %v1913_v10  ;;  %v2485_v18 = vpop.f32.mrf.mxu1 }
 0x1aa   :  { %5401 = vst [vmem:[%s6949_s2 + $0x3a8] sm:$0xff] %v5233_v15   ;;  %v5228_v19 = vpack.c.bf16 %v2485_v18, %v2482_v11  ;;  %v5754_v20 = vpop.f32.mrf.mxu0 }
 0x1ab   :  { %5368 = vst [vmem:[%s6949_s2 + $0x2a0] sm:$0xff] %v5068_v17   ;;  %v5826_v21 = vpop.f32.mrf.mxu1 }
 0x1ac   :  { %5400 = vst [vmem:[%s6949_s2 + $0x3a0] sm:$0xff] %v5228_v19   ;;  %v1929_v22 = vpop.f32.mrf.mxu0 }
 0x1ad   :  { %v2498_v23 = vpop.f32.mrf.mxu1 }
 0x1ae   :  { %v5755_v24 = vpop.f32.mrf.mxu0 }
 0x1af   :  { %v5083_v25 = vpack.c.bf16 %v5755_v24, %v5754_v20  ;;  %v5827_v26 = vpop.f32.mrf.mxu1 }
 0x1b0   :  { %v5243_v27 = vpack.c.bf16 %v5827_v26, %v5826_v21  ;;  %v1932_v28 = vpop.f32.mrf.mxu0 }
 0x1b1   :  { %5371 = vst [vmem:[%s6949_s2 + $0x2b8] sm:$0xff] %v5083_v25   ;;  %v5078_v29 = vpack.c.bf16 %v1932_v28, %v1929_v22  ;;  %v2501_v30 = vpop.f32.mrf.mxu1 }
 0x1b2   :  { %5403 = vst [vmem:[%s6949_s2 + $0x3b8] sm:$0xff] %v5243_v27   ;;  %v5238_v31 = vpack.c.bf16 %v2501_v30, %v2498_v23  ;;  %v5758_v32 = vpop.f32.mrf.mxu0 }
 0x1b3   :  { %5370 = vst [vmem:[%s6949_s2 + $0x2b0] sm:$0xff] %v5078_v29   ;;  %v5830_v33 = vpop.f32.mrf.mxu1 }
 0x1b4   :  { %5402 = vst [vmem:[%s6949_s2 + $0x3b0] sm:$0xff] %v5238_v31   ;;  %v1945_v34 = vpop.f32.mrf.mxu0 }
 0x1b5   :  { %v2514_v35 = vpop.f32.mrf.mxu1 }
 0x1b6   :  { %v5759_v36 = vpop.f32.mrf.mxu0 }
 0x1b7   :  { %v5093_v37 = vpack.c.bf16 %v5759_v36, %v5758_v32  ;;  %v5831_v38 = vpop.f32.mrf.mxu1 }
 0x1b8   :  { %v5253_v39 = vpack.c.bf16 %v5831_v38, %v5830_v33  ;;  %v1948_v40 = vpop.f32.mrf.mxu0 }
 0x1b9   :  { %5373 = vst [vmem:[%s6949_s2 + $0x2c8] sm:$0xff] %v5093_v37   ;;  %v5088_v41 = vpack.c.bf16 %v1948_v40, %v1945_v34  ;;  %v2517_v42 = vpop.f32.mrf.mxu1 }
 0x1ba   :  { %5405 = vst [vmem:[%s6949_s2 + $0x3c8] sm:$0xff] %v5253_v39   ;;  %v5248_v43 = vpack.c.bf16 %v2517_v42, %v2514_v35  ;;  %v5762_v44 = vpop.f32.mrf.mxu0 }
 0x1bb   :  { %5372 = vst [vmem:[%s6949_s2 + $0x2c0] sm:$0xff] %v5088_v41   ;;  %v5834_v45 = vpop.f32.mrf.mxu1 }
 0x1bc   :  { %5404 = vst [vmem:[%s6949_s2 + $0x3c0] sm:$0xff] %v5248_v43   ;;  %v1961_v46 = vpop.f32.mrf.mxu0 }
 0x1bd   :  { %v2530_v47 = vpop.f32.mrf.mxu1 }
 0x1be   :  { %v5763_v48 = vpop.f32.mrf.mxu0 }
 0x1bf   :  { %v5103_v49 = vpack.c.bf16 %v5763_v48, %v5762_v44  ;;  %v5835_v50 = vpop.f32.mrf.mxu1 }
 0x1c0   :  { %v5263_v51 = vpack.c.bf16 %v5835_v50, %v5834_v45  ;;  %v1964_v52 = vpop.f32.mrf.mxu0 }
 0x1c1   :  { %5375 = vst [vmem:[%s6949_s2 + $0x2d8] sm:$0xff] %v5103_v49   ;;  %v5098_v53 = vpack.c.bf16 %v1964_v52, %v1961_v46  ;;  %v2533_v54 = vpop.f32.mrf.mxu1 }
 0x1c2   :  { %5407 = vst [vmem:[%s6949_s2 + $0x3d8] sm:$0xff] %v5263_v51   ;;  %v5258_v55 = vpack.c.bf16 %v2533_v54, %v2530_v47  ;;  %v5766_v56 = vpop.f32.mrf.mxu0 }
 0x1c3   :  { %5374 = vst [vmem:[%s6949_s2 + $0x2d0] sm:$0xff] %v5098_v53   ;;  %v5838_v57 = vpop.f32.mrf.mxu1 }
 0x1c4   :  { %5406 = vst [vmem:[%s6949_s2 + $0x3d0] sm:$0xff] %v5258_v55   ;;  %v1977_v58 = vpop.f32.mrf.mxu0 }
 0x1c5   :  { %v2546_v59 = vpop.f32.mrf.mxu1 }
 0x1c6   :  { %v5767_v60 = vpop.f32.mrf.mxu0 }
 0x1c7   :  { %v5113_v61 = vpack.c.bf16 %v5767_v60, %v5766_v56  ;;  %v5839_v62 = vpop.f32.mrf.mxu1 }
 0x1c8   :  { %v5273_v63 = vpack.c.bf16 %v5839_v62, %v5838_v57  ;;  %v1980_v0 = vpop.f32.mrf.mxu0 }
 0x1c9   :  { %5377 = vst [vmem:[%s6949_s2 + $0x2e8] sm:$0xff] %v5113_v61   ;;  %v5108_v1 = vpack.c.bf16 %v1980_v0, %v1977_v58  ;;  %v2549_v2 = vpop.f32.mrf.mxu1 }
 0x1ca   :  { %5409 = vst [vmem:[%s6949_s2 + $0x3e8] sm:$0xff] %v5273_v63   ;;  %v5268_v3 = vpack.c.bf16 %v2549_v2, %v2546_v59  ;;  %v5770_v4 = vpop.f32.mrf.mxu0 }
 0x1cb   :  { %5376 = vst [vmem:[%s6949_s2 + $0x2e0] sm:$0xff] %v5108_v1   ;;  %v5842_v5 = vpop.f32.mrf.mxu1 }
 0x1cc   :  { %5408 = vst [vmem:[%s6949_s2 + $0x3e0] sm:$0xff] %v5268_v3   ;;  %v1993_v6 = vpop.f32.mrf.mxu0 }
 0x1cd   :  { %v2562_v7 = vpop.f32.mrf.mxu1 }
 0x1ce   :  { %v5771_v8 = vpop.f32.mrf.mxu0 }
 0x1cf   :  { %v5123_v9 = vpack.c.bf16 %v5771_v8, %v5770_v4  ;;  %v5843_v10 = vpop.f32.mrf.mxu1 }
 0x1d0   :  { %v5283_v11 = vpack.c.bf16 %v5843_v10, %v5842_v5  ;;  %v1996_v12 = vpop.f32.mrf.mxu0 }
 0x1d1   :  { %5379 = vst [vmem:[%s6949_s2 + $0x2f8] sm:$0xff] %v5123_v9   ;;  %v5118_v13 = vpack.c.bf16 %v1996_v12, %v1993_v6  ;;  %v2565_v14 = vpop.f32.mrf.mxu1 }
 0x1d2   :  { %5411 = vst [vmem:[%s6949_s2 + $0x3f8] sm:$0xff] %v5283_v11   ;;  %v5278_v15 = vpack.c.bf16 %v2565_v14, %v2562_v7 }
 0x1d3   :  { %5378 = vst [vmem:[%s6949_s2 + $0x2f0] sm:$0xff] %v5118_v13  }
 0x1d4   :  { %5410 = vst [vmem:[%s6949_s2 + $0x3f0] sm:$0xff] %v5278_v15  }

</bundles_post_ra>
